<compile_context>
chip_gen: v7x
topology: tpu7x:2x2x1
jax: 0.10.0
libtpu: 0.0.40
codegen_flags: <defaults>
</compile_context>

<pallas_src>
import functools
import jax
import jax.numpy as jnp
from jax.experimental import pallas as pl
from jax.experimental.pallas import tpu as pltpu


def _round_up(x, m):
    return (x + m - 1) // m * m


# ----------------------- fused GRU-stack + head kernel -----------------------
def fused_rnn_kernel(x_ref, w_ih_ref, w_hh_ref, b_x_ref, b_hn_ref,
                     w_out_ref, b_out_ref, out_ref, h_scratch):
    # Shapes (padded; P = padded feature/hidden width, Op = padded output width):
    #   x_ref:     (Tc, BB, P)   time-major chunk
    #   w_ih_ref:  (L, P, 3P)    pre-transposed, gate blocks [r | z | n], each P wide
    #   w_hh_ref:  (L, P, 3P)
    #   b_x_ref:   (L, 1, 3P)    b_ih with b_hh folded in for r/z gates
    #   b_hn_ref:  (L, 1, P)     b_hh for the n gate (stays inside r*(...))
    #   w_out_ref: (P, Op)       b_out_ref: (1, Op)  (padded lanes hold -1e30)
    #   out_ref:   (Tc, BB, Op)
    #   h_scratch: (L, BB, P) f32 — persists across the sequential time-chunk axis
    Tc, BB, P = x_ref.shape
    L = w_ih_ref.shape[0]
    Op = out_ref.shape[2]

    # Reset recurrent state at the first time-chunk of every batch block.
    @pl.when(pl.program_id(1) == 0)
    def _():
        h_scratch[...] = jnp.zeros_like(h_scratch)

    seq = x_ref[...]                                       # (Tc, BB, P)

    for l in range(L):
        # Batched input projection: one big matmul per layer per chunk (off the
        # recurrent critical path), bb*Tc MXU rows instead of bb.
        xg_all = (jnp.dot(seq.reshape(Tc * BB, P), w_ih_ref[l],
                          preferred_element_type=jnp.float32)
                  + b_x_ref[l]).reshape(Tc, BB, 3 * P)
        w_hh = w_hh_ref[l]                                 # (P, 3P)
        b_hn = b_hn_ref[l]                                 # (1, P)
        h = h_scratch[l]                                   # (BB, P) — read once / chunk
        outs = []
        for t in range(Tc):                                # static unroll (LLO visibility)
            hg = jnp.dot(h, w_hh, preferred_element_type=jnp.float32)
            xg = xg_all[t]                                 # contiguous (BB, 3P) slice
            r = jax.nn.sigmoid(xg[:, 0:P] + hg[:, 0:P])
            z = jax.nn.sigmoid(xg[:, P:2 * P] + hg[:, P:2 * P])
            n = jnp.tanh(xg[:, 2 * P:3 * P] + r * (hg[:, 2 * P:3 * P] + b_hn))
            h = (1.0 - z) * n + z * h
            outs.append(h)
        h_scratch[l] = h                                   # write once / chunk
        seq = jnp.stack(outs, axis=0)                      # (Tc, BB, P): tile concat

    # Fused Linear + log_softmax head, hoisted off the recurrence: one well-shaped
    # matmul, one reduction pass, one full-tile store per chunk. Padded output lanes
    # already carry -1e30 via b_out, so no explicit mask is needed.
    logits = (jnp.dot(seq.reshape(Tc * BB, P), w_out_ref[...],
                      preferred_element_type=jnp.float32) + b_out_ref[...])
    m = jnp.max(logits, axis=-1, keepdims=True)
    lse = m + jnp.log(jnp.sum(jnp.exp(logits - m), axis=-1, keepdims=True))
    out_ref[...] = (logits - lse).reshape(Tc, BB, Op)


# --------------------------- parameter preparation ---------------------------
def prepare_params(gru_params, w_out, b_out):
    """PyTorch-layout GRU/Linear params -> padded, pre-transposed, stacked tensors."""
    H = gru_params[0][1].shape[1]
    I = gru_params[0][0].shape[1]
    O = w_out.shape[0]
    P = max(_round_up(I, 128), _round_up(H, 128))
    Op = _round_up(O, 128)

    w_ih_all, w_hh_all, b_x_all, b_hn_all = [], [], [], []
    for (w_ih, w_hh, b_ih, b_hh) in gru_params:
        def pad_gates(w):                 # (3H, in) -> (P, 3P), transposed & gate-padded
            wt = w.T                      # (in, 3H), gate order [r, z, n]
            in_dim = wt.shape[0]
            gates = [wt[:, g * H:(g + 1) * H] for g in range(3)]
            gates = [jnp.pad(g, ((0, P - in_dim), (0, P - H))) for g in gates]
            return jnp.concatenate(gates, axis=1)
        w_ih_all.append(pad_gates(w_ih))
        w_hh_all.append(pad_gates(w_hh))
        # Fold b_hh into the input-side bias for r/z; keep n-gate b_hh separate.
        b_r = b_ih[0:H] + b_hh[0:H]
        b_z = b_ih[H:2 * H] + b_hh[H:2 * H]
        b_n = b_ih[2 * H:3 * H]
        b_x = jnp.concatenate([jnp.pad(b, (0, P - H)) for b in (b_r, b_z, b_n)])
        b_x_all.append(b_x.reshape(1, 3 * P))
        b_hn_all.append(jnp.pad(b_hh[2 * H:3 * H], (0, P - H)).reshape(1, P))

    w_out_p = jnp.pad(w_out.T, ((0, P - H), (0, Op - O)))                    # (P, Op)
    # Bake the padded-column softmax mask into the bias: padded lanes -> -1e30.
    b_out_p = jnp.pad(b_out, (0, Op - O), constant_values=-1e30).reshape(1, Op)
    return (jnp.stack(w_ih_all), jnp.stack(w_hh_all),
            jnp.stack(b_x_all), jnp.stack(b_hn_all), w_out_p, b_out_p)


# ------------------------------- forward pass ---------------------------------
def rnn_forward(x, packed, *, output_size, bb=128, tc=32):
    w_ih_all, w_hh_all, b_x_all, b_hn_all, w_out_p, b_out_p = packed
    L, P, _ = w_ih_all.shape
    Op = w_out_p.shape[1]

    B, T, I = x.shape

    # Batch blocking: fill MXU rows when the batch allows, but keep >=2 batch blocks
    # (when B permits) so v7x's second TensorCore has work on the "parallel" axis.
    Bp0 = _round_up(B, 8)
    if Bp0 >= 16:
        bb = min(bb, max(8, _round_up((Bp0 + 1) // 2, 8)))
    else:
        bb = 8
    Bp = _round_up(Bp0, bb)

    # Time chunking: amortize per-grid-step overhead; chunk stays a multiple of 8.
    Tc = min(_round_up(tc, 8), _round_up(T, 8))
    Tp = _round_up(T, Tc)

    x_p = jnp.pad(x, ((0, Bp - B), (0, Tp - T), (0, P - I)))
    x_tm = jnp.transpose(x_p, (1, 0, 2))        # (Tp, Bp, P) time-major for the kernel

    def nbytes(shape):
        n = 4
        for s in shape:
            n *= s
        return n

    weights = (2 * nbytes((L, P, 3 * P)) + nbytes((L, 1, 3 * P)) + nbytes((L, 1, P))
               + nbytes((P, Op)) + nbytes((1, Op)))
    io_blocks = nbytes((Tc, bb, P)) + nbytes((Tc, bb, Op))
    acts = nbytes((Tc * bb, 3 * P)) + 2 * nbytes((Tc, bb, P)) + nbytes((Tc * bb, Op))
    footprint = 2 * (io_blocks + weights) + nbytes((L, bb, P)) + acts + (4 << 20)
    try:
        vmem_cap = pltpu.get_tpu_info().vmem_capacity_bytes
    except Exception:
        vmem_cap = 64 << 20
    # Never request the full physical VMEM (leave Mosaic internal-scratch headroom).
    vmem_limit = int(min(max(footprint, 16 << 20), (vmem_cap * 7) // 8))

    grid_spec = pltpu.PrefetchScalarGridSpec(
        num_scalar_prefetch=0,
        grid=(Bp // bb, Tp // Tc),
        in_specs=[
            pl.BlockSpec((Tc, bb, P), lambda b, t: (t, b, 0)),
            pl.BlockSpec((L, P, 3 * P), lambda b, t: (0, 0, 0)),
            pl.BlockSpec((L, P, 3 * P), lambda b, t: (0, 0, 0)),
            pl.BlockSpec((L, 1, 3 * P), lambda b, t: (0, 0, 0)),
            pl.BlockSpec((L, 1, P), lambda b, t: (0, 0, 0)),
            pl.BlockSpec((P, Op), lambda b, t: (0, 0)),
            pl.BlockSpec((1, Op), lambda b, t: (0, 0)),
        ],
        out_specs=pl.BlockSpec((Tc, bb, Op), lambda b, t: (t, b, 0)),
        scratch_shapes=[pltpu.VMEM((L, bb, P), jnp.float32)],
    )

    out_tm = pl.pallas_call(
        fused_rnn_kernel,
        out_shape=jax.ShapeDtypeStruct((Tp, Bp, Op), jnp.float32),
        grid_spec=grid_spec,
        compiler_params=pltpu.CompilerParams(
            dimension_semantics=("parallel", "arbitrary"),
            vmem_limit_bytes=vmem_limit),
    )(x_tm, w_ih_all, w_hh_all, b_x_all, b_hn_all, w_out_p, b_out_p)

    out = jnp.transpose(out_tm, (1, 0, 2))
    return out[:B, :T, :output_size]


# --------------------------- pure-JAX reference -------------------------------
def rnn_reference(x, params):
    h_seq = x
    for (w_ih, w_hh, b_ih, b_hh) in params["gru"]:
        B, T, _ = h_seq.shape
        H = w_hh.shape[1]
        hs = []
        h = jnp.zeros((B, H), jnp.float32)
        for t in range(T):
            xg = h_seq[:, t, :] @ w_ih.T + b_ih
            hg = h @ w_hh.T + b_hh
            r = jax.nn.sigmoid(xg[:, :H] + hg[:, :H])
            z = jax.nn.sigmoid(xg[:, H:2 * H] + hg[:, H:2 * H])
            n = jnp.tanh(xg[:, 2 * H:] + r * hg[:, 2 * H:])
            h = (1.0 - z) * n + z * h
            hs.append(h)
        h_seq = jnp.stack(hs, axis=1)
    logits = h_seq @ params["w_out"].T + params["b_out"]
    return jax.nn.log_softmax(logits, axis=2)


# ---------------------------------- main --------------------------------------
if __name__ == "__main__":
    B, T = 2, 8
    input_size, hidden_size, output_size, layers = 16, 32, 8, 2

    key = jax.random.PRNGKey(0)
    k = 1.0 / (hidden_size ** 0.5)

    gru_params = []
    for l in range(layers):
        in_l = input_size if l == 0 else hidden_size
        key, k1, k2, k3, k4 = jax.random.split(key, 5)
        gru_params.append((
            jax.random.uniform(k1, (3 * hidden_size, in_l), jnp.float32, -k, k),
            jax.random.uniform(k2, (3 * hidden_size, hidden_size), jnp.float32, -k, k),
            jax.random.uniform(k3, (3 * hidden_size,), jnp.float32, -k, k),
            jax.random.uniform(k4, (3 * hidden_size,), jnp.float32, -k, k),
        ))
    key, k5, k6, kx = jax.random.split(key, 4)
    params = {
        "gru": gru_params,
        "w_out": jax.random.uniform(k5, (output_size, hidden_size), jnp.float32, -k, k),
        "b_out": jax.random.uniform(k6, (output_size,), jnp.float32, -k, k),
    }

    x = jax.random.normal(kx, (B, T, input_size), jnp.float32)

    packed = prepare_params(params["gru"], params["w_out"], params["b_out"])
    fwd = jax.jit(functools.partial(rnn_forward, output_size=output_size))

    out = jax.block_until_ready(fwd(x, packed))
    ref = jax.block_until_ready(rnn_reference(x, params))

    assert out.shape == (B, T, output_size)
    assert jnp.allclose(out, ref, atol=1e-5, rtol=1e-5), float(jnp.max(jnp.abs(out - ref)))
    print("KERNEL_OK")
</pallas_src>

<mosaic_0001>
module attributes {stable_mosaic.version = 11 : i64} {
  func.func @fused_rnn_kernel(%arg0: i32, %arg1: i32, %arg2: memref<8x8x128xf32, #tpu.memory_space<vmem>>, %arg3: memref<2x128x384xf32, #tpu.memory_space<vmem>>, %arg4: memref<2x128x384xf32, #tpu.memory_space<vmem>>, %arg5: memref<2x1x384xf32, #tpu.memory_space<vmem>>, %arg6: memref<2x1x128xf32, #tpu.memory_space<vmem>>, %arg7: memref<128x128xf32, #tpu.memory_space<vmem>>, %arg8: memref<1x128xf32, #tpu.memory_space<vmem>>, %arg9: memref<8x8x128xf32, #tpu.memory_space<vmem>>, %arg10: memref<2x8x128xf32, #tpu.memory_space<vmem>>) attributes {dimension_semantics = [#tpu.dimension_semantics<parallel>, #tpu.dimension_semantics<arbitrary>], iteration_bounds = array<i64: 1, 1>, scalar_prefetch = 0 : i64, scratch_operands = 1 : i64, tpu.core_type = #tpu.core_type<tc>, window_params = [{transform_indices = @transform_0, window_bounds = array<i64: 8, 8, 128>}, {pipeline_mode = #tpu.pipeline_mode<synchronous>, transform_indices = @transform_1, window_bounds = array<i64: 2, 128, 384>}, {pipeline_mode = #tpu.pipeline_mode<synchronous>, transform_indices = @transform_2, window_bounds = array<i64: 2, 128, 384>}, {pipeline_mode = #tpu.pipeline_mode<synchronous>, transform_indices = @transform_3, window_bounds = array<i64: 2, 1, 384>}, {pipeline_mode = #tpu.pipeline_mode<synchronous>, transform_indices = @transform_4, window_bounds = array<i64: 2, 1, 128>}, {pipeline_mode = #tpu.pipeline_mode<synchronous>, transform_indices = @transform_5, window_bounds = array<i64: 128, 128>}, {pipeline_mode = #tpu.pipeline_mode<synchronous>, transform_indices = @transform_6, window_bounds = array<i64: 1, 128>}, {transform_indices = @transform_7, window_bounds = array<i64: 8, 8, 128>}]} {
    %c0_i32 = arith.constant 0 : i32
    %0 = arith.cmpi eq, %arg1, %c0_i32 : i32
    %1 = arith.extui %0 : i1 to i32
    %c0_i32_0 = arith.constant 0 : i32
    %2 = arith.cmpi ne, %1, %c0_i32_0 : i32
    scf.if %2 {
      %cst_113 = arith.constant 0.000000e+00 : f32
      %573 = vector.broadcast %cst_113 : f32 to vector<2x8x128xf32>
      %c0_114 = arith.constant 0 : index
      %c0_115 = arith.constant 0 : index
      %c0_116 = arith.constant 0 : index
      %574 = vector.load %arg10[%c0_114, %c0_115, %c0_116] : memref<2x8x128xf32, #tpu.memory_space<vmem>>, vector<2x8x128xf32>
      tpu.vector_store %arg10[%c0_114, %c0_115, %c0_116], %573 {strides = array<i32>} : memref<2x8x128xf32, #tpu.memory_space<vmem>>, vector<2x8x128xf32>,
    } else {
    }
    %c0 = arith.constant 0 : index
    %c0_1 = arith.constant 0 : index
    %c0_2 = arith.constant 0 : index
    %3 = vector.load %arg2[%c0, %c0_1, %c0_2] : memref<8x8x128xf32, #tpu.memory_space<vmem>>, vector<8x8x128xf32>
    %4 = vector.shape_cast %3 : vector<8x8x128xf32> to vector<64x128xf32>
    %c0_3 = arith.constant 0 : index
    %c0_4 = arith.constant 0 : index
    %c0_5 = arith.constant 0 : index
    %5 = vector.load %arg3[%c0_3, %c0_4, %c0_5] : memref<2x128x384xf32, #tpu.memory_space<vmem>>, vector<1x128x384xf32>
    %6 = vector.shape_cast %5 : vector<1x128x384xf32> to vector<128x384xf32>
    %cst = arith.constant dense<0.000000e+00> : vector<64x384xf32>
    %7 = tpu.matmul %4, %6, %cst {dimension_numbers = #tpu.dot_dimension_numbers<[1], [0], [0], [1], [0, 0, 1, 1], [], []>} : vector<64x128xf32>, vector<128x384xf32>, vector<64x384xf32> -> vector<64x384xf32>
    %c0_6 = arith.constant 0 : index
    %c0_7 = arith.constant 0 : index
    %c0_8 = arith.constant 0 : index
    %8 = vector.load %arg5[%c0_6, %c0_7, %c0_8] : memref<2x1x384xf32, #tpu.memory_space<vmem>>, vector<1x1x384xf32>
    %9 = vector.shape_cast %8 : vector<1x1x384xf32> to vector<1x384xf32>
    %10 = vector.broadcast %9 : vector<1x384xf32> to vector<64x384xf32>
    %11 = arith.addf %7, %10 : vector<64x384xf32>
    %12 = vector.shape_cast %11 : vector<64x384xf32> to vector<8x8x384xf32>
    %c0_9 = arith.constant 0 : index
    %c0_10 = arith.constant 0 : index
    %c0_11 = arith.constant 0 : index
    %13 = vector.load %arg4[%c0_9, %c0_10, %c0_11] : memref<2x128x384xf32, #tpu.memory_space<vmem>>, vector<1x128x384xf32>
    %14 = vector.shape_cast %13 : vector<1x128x384xf32> to vector<128x384xf32>
    %c0_12 = arith.constant 0 : index
    %c0_13 = arith.constant 0 : index
    %c0_14 = arith.constant 0 : index
    %15 = vector.load %arg6[%c0_12, %c0_13, %c0_14] : memref<2x1x128xf32, #tpu.memory_space<vmem>>, vector<1x1x128xf32>
    %16 = vector.shape_cast %15 : vector<1x1x128xf32> to vector<1x128xf32>
    %c0_15 = arith.constant 0 : index
    %c0_16 = arith.constant 0 : index
    %c0_17 = arith.constant 0 : index
    %17 = vector.load %arg10[%c0_15, %c0_16, %c0_17] : memref<2x8x128xf32, #tpu.memory_space<vmem>>, vector<1x8x128xf32>
    %18 = vector.shape_cast %17 : vector<1x8x128xf32> to vector<8x128xf32>
    %cst_18 = arith.constant dense<0.000000e+00> : vector<8x384xf32>
    %19 = tpu.matmul %18, %14, %cst_18 {dimension_numbers = #tpu.dot_dimension_numbers<[1], [0], [0], [1], [0, 0, 1, 1], [], []>} : vector<8x128xf32>, vector<128x384xf32>, vector<8x384xf32> -> vector<8x384xf32>
    %20 = vector.extract_strided_slice %12 {offsets = [0, 0, 0], sizes = [1, 8, 384], strides = [1, 1, 1]} : vector<8x8x384xf32> to vector<1x8x384xf32>
    %21 = vector.shape_cast %20 : vector<1x8x384xf32> to vector<8x384xf32>
    %22 = vector.extract_strided_slice %21 {offsets = [0, 0], sizes = [8, 128], strides = [1, 1]} : vector<8x384xf32> to vector<8x128xf32>
    %23 = vector.extract_strided_slice %19 {offsets = [0, 0], sizes = [8, 128], strides = [1, 1]} : vector<8x384xf32> to vector<8x128xf32>
    %24 = arith.addf %22, %23 : vector<8x128xf32>
    %25 = arith.negf %24 : vector<8x128xf32>
    %26 = math.exp %25 : vector<8x128xf32>
    %cst_19 = arith.constant 1.000000e+00 : f32
    %27 = vector.broadcast %cst_19 : f32 to vector<8x128xf32>
    %28 = arith.addf %27, %26 : vector<8x128xf32>
    %29 = arith.divf %27, %28 : vector<8x128xf32>
    %30 = vector.extract_strided_slice %21 {offsets = [0, 128], sizes = [8, 128], strides = [1, 1]} : vector<8x384xf32> to vector<8x128xf32>
    %31 = vector.extract_strided_slice %19 {offsets = [0, 128], sizes = [8, 128], strides = [1, 1]} : vector<8x384xf32> to vector<8x128xf32>
    %32 = arith.addf %30, %31 : vector<8x128xf32>
    %33 = arith.negf %32 : vector<8x128xf32>
    %34 = math.exp %33 : vector<8x128xf32>
    %cst_20 = arith.constant 1.000000e+00 : f32
    %35 = vector.broadcast %cst_20 : f32 to vector<8x128xf32>
    %36 = arith.addf %35, %34 : vector<8x128xf32>
    %37 = arith.divf %35, %36 : vector<8x128xf32>
    %38 = vector.extract_strided_slice %21 {offsets = [0, 256], sizes = [8, 128], strides = [1, 1]} : vector<8x384xf32> to vector<8x128xf32>
    %39 = vector.extract_strided_slice %19 {offsets = [0, 256], sizes = [8, 128], strides = [1, 1]} : vector<8x384xf32> to vector<8x128xf32>
    %40 = vector.broadcast %16 : vector<1x128xf32> to vector<8x128xf32>
    %41 = arith.addf %39, %40 : vector<8x128xf32>
    %42 = arith.mulf %29, %41 : vector<8x128xf32>
    %43 = arith.addf %38, %42 : vector<8x128xf32>
    %44 = math.tanh %43 : vector<8x128xf32>
    %cst_21 = arith.constant 1.000000e+00 : f32
    %45 = vector.broadcast %cst_21 : f32 to vector<8x128xf32>
    %46 = arith.subf %45, %37 : vector<8x128xf32>
    %47 = arith.mulf %46, %44 : vector<8x128xf32>
    %48 = arith.mulf %37, %18 : vector<8x128xf32>
    %49 = arith.addf %47, %48 : vector<8x128xf32>
    %cst_22 = arith.constant dense<0.000000e+00> : vector<8x384xf32>
    %50 = tpu.matmul %49, %14, %cst_22 {dimension_numbers = #tpu.dot_dimension_numbers<[1], [0], [0], [1], [0, 0, 1, 1], [], []>} : vector<8x128xf32>, vector<128x384xf32>, vector<8x384xf32> -> vector<8x384xf32>
    %51 = vector.extract_strided_slice %12 {offsets = [1, 0, 0], sizes = [1, 8, 384], strides = [1, 1, 1]} : vector<8x8x384xf32> to vector<1x8x384xf32>
    %52 = vector.shape_cast %51 : vector<1x8x384xf32> to vector<8x384xf32>
    %53 = vector.extract_strided_slice %52 {offsets = [0, 0], sizes = [8, 128], strides = [1, 1]} : vector<8x384xf32> to vector<8x128xf32>
    %54 = vector.extract_strided_slice %50 {offsets = [0, 0], sizes = [8, 128], strides = [1, 1]} : vector<8x384xf32> to vector<8x128xf32>
    %55 = arith.addf %53, %54 : vector<8x128xf32>
    %56 = arith.negf %55 : vector<8x128xf32>
    %57 = math.exp %56 : vector<8x128xf32>
    %cst_23 = arith.constant 1.000000e+00 : f32
    %58 = vector.broadcast %cst_23 : f32 to vector<8x128xf32>
    %59 = arith.addf %58, %57 : vector<8x128xf32>
    %60 = arith.divf %58, %59 : vector<8x128xf32>
    %61 = vector.extract_strided_slice %52 {offsets = [0, 128], sizes = [8, 128], strides = [1, 1]} : vector<8x384xf32> to vector<8x128xf32>
    %62 = vector.extract_strided_slice %50 {offsets = [0, 128], sizes = [8, 128], strides = [1, 1]} : vector<8x384xf32> to vector<8x128xf32>
    %63 = arith.addf %61, %62 : vector<8x128xf32>
    %64 = arith.negf %63 : vector<8x128xf32>
    %65 = math.exp %64 : vector<8x128xf32>
    %cst_24 = arith.constant 1.000000e+00 : f32
    %66 = vector.broadcast %cst_24 : f32 to vector<8x128xf32>
    %67 = arith.addf %66, %65 : vector<8x128xf32>
    %68 = arith.divf %66, %67 : vector<8x128xf32>
    %69 = vector.extract_strided_slice %52 {offsets = [0, 256], sizes = [8, 128], strides = [1, 1]} : vector<8x384xf32> to vector<8x128xf32>
    %70 = vector.extract_strided_slice %50 {offsets = [0, 256], sizes = [8, 128], strides = [1, 1]} : vector<8x384xf32> to vector<8x128xf32>
    %71 = vector.broadcast %16 : vector<1x128xf32> to vector<8x128xf32>
    %72 = arith.addf %70, %71 : vector<8x128xf32>
    %73 = arith.mulf %60, %72 : vector<8x128xf32>
    %74 = arith.addf %69, %73 : vector<8x128xf32>
    %75 = math.tanh %74 : vector<8x128xf32>
    %cst_25 = arith.constant 1.000000e+00 : f32
    %76 = vector.broadcast %cst_25 : f32 to vector<8x128xf32>
    %77 = arith.subf %76, %68 : vector<8x128xf32>
    %78 = arith.mulf %77, %75 : vector<8x128xf32>
    %79 = arith.mulf %68, %49 : vector<8x128xf32>
    %80 = arith.addf %78, %79 : vector<8x128xf32>
    %cst_26 = arith.constant dense<0.000000e+00> : vector<8x384xf32>
    %81 = tpu.matmul %80, %14, %cst_26 {dimension_numbers = #tpu.dot_dimension_numbers<[1], [0], [0], [1], [0, 0, 1, 1], [], []>} : vector<8x128xf32>, vector<128x384xf32>, vector<8x384xf32> -> vector<8x384xf32>
    %82 = vector.extract_strided_slice %12 {offsets = [2, 0, 0], sizes = [1, 8, 384], strides = [1, 1, 1]} : vector<8x8x384xf32> to vector<1x8x384xf32>
    %83 = vector.shape_cast %82 : vector<1x8x384xf32> to vector<8x384xf32>
    %84 = vector.extract_strided_slice %83 {offsets = [0, 0], sizes = [8, 128], strides = [1, 1]} : vector<8x384xf32> to vector<8x128xf32>
    %85 = vector.extract_strided_slice %81 {offsets = [0, 0], sizes = [8, 128], strides = [1, 1]} : vector<8x384xf32> to vector<8x128xf32>
    %86 = arith.addf %84, %85 : vector<8x128xf32>
    %87 = arith.negf %86 : vector<8x128xf32>
    %88 = math.exp %87 : vector<8x128xf32>
    %cst_27 = arith.constant 1.000000e+00 : f32
    %89 = vector.broadcast %cst_27 : f32 to vector<8x128xf32>
    %90 = arith.addf %89, %88 : vector<8x128xf32>
    %91 = arith.divf %89, %90 : vector<8x128xf32>
    %92 = vector.extract_strided_slice %83 {offsets = [0, 128], sizes = [8, 128], strides = [1, 1]} : vector<8x384xf32> to vector<8x128xf32>
    %93 = vector.extract_strided_slice %81 {offsets = [0, 128], sizes = [8, 128], strides = [1, 1]} : vector<8x384xf32> to vector<8x128xf32>
    %94 = arith.addf %92, %93 : vector<8x128xf32>
    %95 = arith.negf %94 : vector<8x128xf32>
    %96 = math.exp %95 : vector<8x128xf32>
    %cst_28 = arith.constant 1.000000e+00 : f32
    %97 = vector.broadcast %cst_28 : f32 to vector<8x128xf32>
    %98 = arith.addf %97, %96 : vector<8x128xf32>
    %99 = arith.divf %97, %98 : vector<8x128xf32>
    %100 = vector.extract_strided_slice %83 {offsets = [0, 256], sizes = [8, 128], strides = [1, 1]} : vector<8x384xf32> to vector<8x128xf32>
    %101 = vector.extract_strided_slice %81 {offsets = [0, 256], sizes = [8, 128], strides = [1, 1]} : vector<8x384xf32> to vector<8x128xf32>
    %102 = vector.broadcast %16 : vector<1x128xf32> to vector<8x128xf32>
    %103 = arith.addf %101, %102 : vector<8x128xf32>
    %104 = arith.mulf %91, %103 : vector<8x128xf32>
    %105 = arith.addf %100, %104 : vector<8x128xf32>
    %106 = math.tanh %105 : vector<8x128xf32>
    %cst_29 = arith.constant 1.000000e+00 : f32
    %107 = vector.broadcast %cst_29 : f32 to vector<8x128xf32>
    %108 = arith.subf %107, %99 : vector<8x128xf32>
    %109 = arith.mulf %108, %106 : vector<8x128xf32>
    %110 = arith.mulf %99, %80 : vector<8x128xf32>
    %111 = arith.addf %109, %110 : vector<8x128xf32>
    %cst_30 = arith.constant dense<0.000000e+00> : vector<8x384xf32>
    %112 = tpu.matmul %111, %14, %cst_30 {dimension_numbers = #tpu.dot_dimension_numbers<[1], [0], [0], [1], [0, 0, 1, 1], [], []>} : vector<8x128xf32>, vector<128x384xf32>, vector<8x384xf32> -> vector<8x384xf32>
    %113 = vector.extract_strided_slice %12 {offsets = [3, 0, 0], sizes = [1, 8, 384], strides = [1, 1, 1]} : vector<8x8x384xf32> to vector<1x8x384xf32>
    %114 = vector.shape_cast %113 : vector<1x8x384xf32> to vector<8x384xf32>
    %115 = vector.extract_strided_slice %114 {offsets = [0, 0], sizes = [8, 128], strides = [1, 1]} : vector<8x384xf32> to vector<8x128xf32>
    %116 = vector.extract_strided_slice %112 {offsets = [0, 0], sizes = [8, 128], strides = [1, 1]} : vector<8x384xf32> to vector<8x128xf32>
    %117 = arith.addf %115, %116 : vector<8x128xf32>
    %118 = arith.negf %117 : vector<8x128xf32>
    %119 = math.exp %118 : vector<8x128xf32>
    %cst_31 = arith.constant 1.000000e+00 : f32
    %120 = vector.broadcast %cst_31 : f32 to vector<8x128xf32>
    %121 = arith.addf %120, %119 : vector<8x128xf32>
    %122 = arith.divf %120, %121 : vector<8x128xf32>
    %123 = vector.extract_strided_slice %114 {offsets = [0, 128], sizes = [8, 128], strides = [1, 1]} : vector<8x384xf32> to vector<8x128xf32>
    %124 = vector.extract_strided_slice %112 {offsets = [0, 128], sizes = [8, 128], strides = [1, 1]} : vector<8x384xf32> to vector<8x128xf32>
    %125 = arith.addf %123, %124 : vector<8x128xf32>
    %126 = arith.negf %125 : vector<8x128xf32>
    %127 = math.exp %126 : vector<8x128xf32>
    %cst_32 = arith.constant 1.000000e+00 : f32
    %128 = vector.broadcast %cst_32 : f32 to vector<8x128xf32>
    %129 = arith.addf %128, %127 : vector<8x128xf32>
    %130 = arith.divf %128, %129 : vector<8x128xf32>
    %131 = vector.extract_strided_slice %114 {offsets = [0, 256], sizes = [8, 128], strides = [1, 1]} : vector<8x384xf32> to vector<8x128xf32>
    %132 = vector.extract_strided_slice %112 {offsets = [0, 256], sizes = [8, 128], strides = [1, 1]} : vector<8x384xf32> to vector<8x128xf32>
    %133 = vector.broadcast %16 : vector<1x128xf32> to vector<8x128xf32>
    %134 = arith.addf %132, %133 : vector<8x128xf32>
    %135 = arith.mulf %122, %134 : vector<8x128xf32>
    %136 = arith.addf %131, %135 : vector<8x128xf32>
    %137 = math.tanh %136 : vector<8x128xf32>
    %cst_33 = arith.constant 1.000000e+00 : f32
    %138 = vector.broadcast %cst_33 : f32 to vector<8x128xf32>
    %139 = arith.subf %138, %130 : vector<8x128xf32>
    %140 = arith.mulf %139, %137 : vector<8x128xf32>
    %141 = arith.mulf %130, %111 : vector<8x128xf32>
    %142 = arith.addf %140, %141 : vector<8x128xf32>
    %cst_34 = arith.constant dense<0.000000e+00> : vector<8x384xf32>
    %143 = tpu.matmul %142, %14, %cst_34 {dimension_numbers = #tpu.dot_dimension_numbers<[1], [0], [0], [1], [0, 0, 1, 1], [], []>} : vector<8x128xf32>, vector<128x384xf32>, vector<8x384xf32> -> vector<8x384xf32>
    %144 = vector.extract_strided_slice %12 {offsets = [4, 0, 0], sizes = [1, 8, 384], strides = [1, 1, 1]} : vector<8x8x384xf32> to vector<1x8x384xf32>
    %145 = vector.shape_cast %144 : vector<1x8x384xf32> to vector<8x384xf32>
    %146 = vector.extract_strided_slice %145 {offsets = [0, 0], sizes = [8, 128], strides = [1, 1]} : vector<8x384xf32> to vector<8x128xf32>
    %147 = vector.extract_strided_slice %143 {offsets = [0, 0], sizes = [8, 128], strides = [1, 1]} : vector<8x384xf32> to vector<8x128xf32>
    %148 = arith.addf %146, %147 : vector<8x128xf32>
    %149 = arith.negf %148 : vector<8x128xf32>
    %150 = math.exp %149 : vector<8x128xf32>
    %cst_35 = arith.constant 1.000000e+00 : f32
    %151 = vector.broadcast %cst_35 : f32 to vector<8x128xf32>
    %152 = arith.addf %151, %150 : vector<8x128xf32>
    %153 = arith.divf %151, %152 : vector<8x128xf32>
    %154 = vector.extract_strided_slice %145 {offsets = [0, 128], sizes = [8, 128], strides = [1, 1]} : vector<8x384xf32> to vector<8x128xf32>
    %155 = vector.extract_strided_slice %143 {offsets = [0, 128], sizes = [8, 128], strides = [1, 1]} : vector<8x384xf32> to vector<8x128xf32>
    %156 = arith.addf %154, %155 : vector<8x128xf32>
    %157 = arith.negf %156 : vector<8x128xf32>
    %158 = math.exp %157 : vector<8x128xf32>
    %cst_36 = arith.constant 1.000000e+00 : f32
    %159 = vector.broadcast %cst_36 : f32 to vector<8x128xf32>
    %160 = arith.addf %159, %158 : vector<8x128xf32>
    %161 = arith.divf %159, %160 : vector<8x128xf32>
    %162 = vector.extract_strided_slice %145 {offsets = [0, 256], sizes = [8, 128], strides = [1, 1]} : vector<8x384xf32> to vector<8x128xf32>
    %163 = vector.extract_strided_slice %143 {offsets = [0, 256], sizes = [8, 128], strides = [1, 1]} : vector<8x384xf32> to vector<8x128xf32>
    %164 = vector.broadcast %16 : vector<1x128xf32> to vector<8x128xf32>
    %165 = arith.addf %163, %164 : vector<8x128xf32>
    %166 = arith.mulf %153, %165 : vector<8x128xf32>
    %167 = arith.addf %162, %166 : vector<8x128xf32>
    %168 = math.tanh %167 : vector<8x128xf32>
    %cst_37 = arith.constant 1.000000e+00 : f32
    %169 = vector.broadcast %cst_37 : f32 to vector<8x128xf32>
    %170 = arith.subf %169, %161 : vector<8x128xf32>
    %171 = arith.mulf %170, %168 : vector<8x128xf32>
    %172 = arith.mulf %161, %142 : vector<8x128xf32>
    %173 = arith.addf %171, %172 : vector<8x128xf32>
    %cst_38 = arith.constant dense<0.000000e+00> : vector<8x384xf32>
    %174 = tpu.matmul %173, %14, %cst_38 {dimension_numbers = #tpu.dot_dimension_numbers<[1], [0], [0], [1], [0, 0, 1, 1], [], []>} : vector<8x128xf32>, vector<128x384xf32>, vector<8x384xf32> -> vector<8x384xf32>
    %175 = vector.extract_strided_slice %12 {offsets = [5, 0, 0], sizes = [1, 8, 384], strides = [1, 1, 1]} : vector<8x8x384xf32> to vector<1x8x384xf32>
    %176 = vector.shape_cast %175 : vector<1x8x384xf32> to vector<8x384xf32>
    %177 = vector.extract_strided_slice %176 {offsets = [0, 0], sizes = [8, 128], strides = [1, 1]} : vector<8x384xf32> to vector<8x128xf32>
    %178 = vector.extract_strided_slice %174 {offsets = [0, 0], sizes = [8, 128], strides = [1, 1]} : vector<8x384xf32> to vector<8x128xf32>
    %179 = arith.addf %177, %178 : vector<8x128xf32>
    %180 = arith.negf %179 : vector<8x128xf32>
    %181 = math.exp %180 : vector<8x128xf32>
    %cst_39 = arith.constant 1.000000e+00 : f32
    %182 = vector.broadcast %cst_39 : f32 to vector<8x128xf32>
    %183 = arith.addf %182, %181 : vector<8x128xf32>
    %184 = arith.divf %182, %183 : vector<8x128xf32>
    %185 = vector.extract_strided_slice %176 {offsets = [0, 128], sizes = [8, 128], strides = [1, 1]} : vector<8x384xf32> to vector<8x128xf32>
    %186 = vector.extract_strided_slice %174 {offsets = [0, 128], sizes = [8, 128], strides = [1, 1]} : vector<8x384xf32> to vector<8x128xf32>
    %187 = arith.addf %185, %186 : vector<8x128xf32>
    %188 = arith.negf %187 : vector<8x128xf32>
    %189 = math.exp %188 : vector<8x128xf32>
    %cst_40 = arith.constant 1.000000e+00 : f32
    %190 = vector.broadcast %cst_40 : f32 to vector<8x128xf32>
    %191 = arith.addf %190, %189 : vector<8x128xf32>
    %192 = arith.divf %190, %191 : vector<8x128xf32>
    %193 = vector.extract_strided_slice %176 {offsets = [0, 256], sizes = [8, 128], strides = [1, 1]} : vector<8x384xf32> to vector<8x128xf32>
    %194 = vector.extract_strided_slice %174 {offsets = [0, 256], sizes = [8, 128], strides = [1, 1]} : vector<8x384xf32> to vector<8x128xf32>
    %195 = vector.broadcast %16 : vector<1x128xf32> to vector<8x128xf32>
    %196 = arith.addf %194, %195 : vector<8x128xf32>
    %197 = arith.mulf %184, %196 : vector<8x128xf32>
    %198 = arith.addf %193, %197 : vector<8x128xf32>
    %199 = math.tanh %198 : vector<8x128xf32>
    %cst_41 = arith.constant 1.000000e+00 : f32
    %200 = vector.broadcast %cst_41 : f32 to vector<8x128xf32>
    %201 = arith.subf %200, %192 : vector<8x128xf32>
    %202 = arith.mulf %201, %199 : vector<8x128xf32>
    %203 = arith.mulf %192, %173 : vector<8x128xf32>
    %204 = arith.addf %202, %203 : vector<8x128xf32>
    %cst_42 = arith.constant dense<0.000000e+00> : vector<8x384xf32>
    %205 = tpu.matmul %204, %14, %cst_42 {dimension_numbers = #tpu.dot_dimension_numbers<[1], [0], [0], [1], [0, 0, 1, 1], [], []>} : vector<8x128xf32>, vector<128x384xf32>, vector<8x384xf32> -> vector<8x384xf32>
    %206 = vector.extract_strided_slice %12 {offsets = [6, 0, 0], sizes = [1, 8, 384], strides = [1, 1, 1]} : vector<8x8x384xf32> to vector<1x8x384xf32>
    %207 = vector.shape_cast %206 : vector<1x8x384xf32> to vector<8x384xf32>
    %208 = vector.extract_strided_slice %207 {offsets = [0, 0], sizes = [8, 128], strides = [1, 1]} : vector<8x384xf32> to vector<8x128xf32>
    %209 = vector.extract_strided_slice %205 {offsets = [0, 0], sizes = [8, 128], strides = [1, 1]} : vector<8x384xf32> to vector<8x128xf32>
    %210 = arith.addf %208, %209 : vector<8x128xf32>
    %211 = arith.negf %210 : vector<8x128xf32>
    %212 = math.exp %211 : vector<8x128xf32>
    %cst_43 = arith.constant 1.000000e+00 : f32
    %213 = vector.broadcast %cst_43 : f32 to vector<8x128xf32>
    %214 = arith.addf %213, %212 : vector<8x128xf32>
    %215 = arith.divf %213, %214 : vector<8x128xf32>
    %216 = vector.extract_strided_slice %207 {offsets = [0, 128], sizes = [8, 128], strides = [1, 1]} : vector<8x384xf32> to vector<8x128xf32>
    %217 = vector.extract_strided_slice %205 {offsets = [0, 128], sizes = [8, 128], strides = [1, 1]} : vector<8x384xf32> to vector<8x128xf32>
    %218 = arith.addf %216, %217 : vector<8x128xf32>
    %219 = arith.negf %218 : vector<8x128xf32>
    %220 = math.exp %219 : vector<8x128xf32>
    %cst_44 = arith.constant 1.000000e+00 : f32
    %221 = vector.broadcast %cst_44 : f32 to vector<8x128xf32>
    %222 = arith.addf %221, %220 : vector<8x128xf32>
    %223 = arith.divf %221, %222 : vector<8x128xf32>
    %224 = vector.extract_strided_slice %207 {offsets = [0, 256], sizes = [8, 128], strides = [1, 1]} : vector<8x384xf32> to vector<8x128xf32>
    %225 = vector.extract_strided_slice %205 {offsets = [0, 256], sizes = [8, 128], strides = [1, 1]} : vector<8x384xf32> to vector<8x128xf32>
    %226 = vector.broadcast %16 : vector<1x128xf32> to vector<8x128xf32>
    %227 = arith.addf %225, %226 : vector<8x128xf32>
    %228 = arith.mulf %215, %227 : vector<8x128xf32>
    %229 = arith.addf %224, %228 : vector<8x128xf32>
    %230 = math.tanh %229 : vector<8x128xf32>
    %cst_45 = arith.constant 1.000000e+00 : f32
    %231 = vector.broadcast %cst_45 : f32 to vector<8x128xf32>
    %232 = arith.subf %231, %223 : vector<8x128xf32>
    %233 = arith.mulf %232, %230 : vector<8x128xf32>
    %234 = arith.mulf %223, %204 : vector<8x128xf32>
    %235 = arith.addf %233, %234 : vector<8x128xf32>
    %cst_46 = arith.constant dense<0.000000e+00> : vector<8x384xf32>
    %236 = tpu.matmul %235, %14, %cst_46 {dimension_numbers = #tpu.dot_dimension_numbers<[1], [0], [0], [1], [0, 0, 1, 1], [], []>} : vector<8x128xf32>, vector<128x384xf32>, vector<8x384xf32> -> vector<8x384xf32>
    %237 = vector.extract_strided_slice %12 {offsets = [7, 0, 0], sizes = [1, 8, 384], strides = [1, 1, 1]} : vector<8x8x384xf32> to vector<1x8x384xf32>
    %238 = vector.shape_cast %237 : vector<1x8x384xf32> to vector<8x384xf32>
    %239 = vector.extract_strided_slice %238 {offsets = [0, 0], sizes = [8, 128], strides = [1, 1]} : vector<8x384xf32> to vector<8x128xf32>
    %240 = vector.extract_strided_slice %236 {offsets = [0, 0], sizes = [8, 128], strides = [1, 1]} : vector<8x384xf32> to vector<8x128xf32>
    %241 = arith.addf %239, %240 : vector<8x128xf32>
    %242 = arith.negf %241 : vector<8x128xf32>
    %243 = math.exp %242 : vector<8x128xf32>
    %cst_47 = arith.constant 1.000000e+00 : f32
    %244 = vector.broadcast %cst_47 : f32 to vector<8x128xf32>
    %245 = arith.addf %244, %243 : vector<8x128xf32>
    %246 = arith.divf %244, %245 : vector<8x128xf32>
    %247 = vector.extract_strided_slice %238 {offsets = [0, 128], sizes = [8, 128], strides = [1, 1]} : vector<8x384xf32> to vector<8x128xf32>
    %248 = vector.extract_strided_slice %236 {offsets = [0, 128], sizes = [8, 128], strides = [1, 1]} : vector<8x384xf32> to vector<8x128xf32>
    %249 = arith.addf %247, %248 : vector<8x128xf32>
    %250 = arith.negf %249 : vector<8x128xf32>
    %251 = math.exp %250 : vector<8x128xf32>
    %cst_48 = arith.constant 1.000000e+00 : f32
    %252 = vector.broadcast %cst_48 : f32 to vector<8x128xf32>
    %253 = arith.addf %252, %251 : vector<8x128xf32>
    %254 = arith.divf %252, %253 : vector<8x128xf32>
    %255 = vector.extract_strided_slice %238 {offsets = [0, 256], sizes = [8, 128], strides = [1, 1]} : vector<8x384xf32> to vector<8x128xf32>
    %256 = vector.extract_strided_slice %236 {offsets = [0, 256], sizes = [8, 128], strides = [1, 1]} : vector<8x384xf32> to vector<8x128xf32>
    %257 = vector.broadcast %16 : vector<1x128xf32> to vector<8x128xf32>
    %258 = arith.addf %256, %257 : vector<8x128xf32>
    %259 = arith.mulf %246, %258 : vector<8x128xf32>
    %260 = arith.addf %255, %259 : vector<8x128xf32>
    %261 = math.tanh %260 : vector<8x128xf32>
    %cst_49 = arith.constant 1.000000e+00 : f32
    %262 = vector.broadcast %cst_49 : f32 to vector<8x128xf32>
    %263 = arith.subf %262, %254 : vector<8x128xf32>
    %264 = arith.mulf %263, %261 : vector<8x128xf32>
    %265 = arith.mulf %254, %235 : vector<8x128xf32>
    %266 = arith.addf %264, %265 : vector<8x128xf32>
    %c0_50 = arith.constant 0 : index
    %c0_51 = arith.constant 0 : index
    %c0_52 = arith.constant 0 : index
    %267 = vector.load %arg10[%c0_50, %c0_51, %c0_52] : memref<2x8x128xf32, #tpu.memory_space<vmem>>, vector<1x8x128xf32>
    %268 = vector.shape_cast %267 : vector<1x8x128xf32> to vector<8x128xf32>
    %269 = vector.shape_cast %266 : vector<8x128xf32> to vector<1x8x128xf32>
    tpu.vector_store %arg10[%c0_50, %c0_51, %c0_52], %269 {strides = array<i32>} : memref<2x8x128xf32, #tpu.memory_space<vmem>>, vector<1x8x128xf32>,
    %270 = vector.shape_cast %49 : vector<8x128xf32> to vector<1x8x128xf32>
    %271 = vector.shape_cast %80 : vector<8x128xf32> to vector<1x8x128xf32>
    %272 = vector.shape_cast %111 : vector<8x128xf32> to vector<1x8x128xf32>
    %273 = vector.shape_cast %142 : vector<8x128xf32> to vector<1x8x128xf32>
    %274 = vector.shape_cast %173 : vector<8x128xf32> to vector<1x8x128xf32>
    %275 = vector.shape_cast %204 : vector<8x128xf32> to vector<1x8x128xf32>
    %276 = vector.shape_cast %235 : vector<8x128xf32> to vector<1x8x128xf32>
    %277 = vector.shape_cast %266 : vector<8x128xf32> to vector<1x8x128xf32>
    %278 = tpu.concatenate %270, %271, %272, %273, %274, %275, %276, %277 in 0 : vector<1x8x128xf32>, vector<1x8x128xf32>, vector<1x8x128xf32>, vector<1x8x128xf32>, vector<1x8x128xf32>, vector<1x8x128xf32>, vector<1x8x128xf32>, vector<1x8x128xf32> -> vector<8x8x128xf32>
    %279 = vector.shape_cast %278 : vector<8x8x128xf32> to vector<64x128xf32>
    %c1 = arith.constant 1 : index
    %c0_53 = arith.constant 0 : index
    %c0_54 = arith.constant 0 : index
    %280 = vector.load %arg3[%c1, %c0_53, %c0_54] : memref<2x128x384xf32, #tpu.memory_space<vmem>>, vector<1x128x384xf32>
    %281 = vector.shape_cast %280 : vector<1x128x384xf32> to vector<128x384xf32>
    %cst_55 = arith.constant dense<0.000000e+00> : vector<64x384xf32>
    %282 = tpu.matmul %279, %281, %cst_55 {dimension_numbers = #tpu.dot_dimension_numbers<[1], [0], [0], [1], [0, 0, 1, 1], [], []>} : vector<64x128xf32>, vector<128x384xf32>, vector<64x384xf32> -> vector<64x384xf32>
    %c1_56 = arith.constant 1 : index
    %c0_57 = arith.constant 0 : index
    %c0_58 = arith.constant 0 : index
    %283 = vector.load %arg5[%c1_56, %c0_57, %c0_58] : memref<2x1x384xf32, #tpu.memory_space<vmem>>, vector<1x1x384xf32>
    %284 = vector.shape_cast %283 : vector<1x1x384xf32> to vector<1x384xf32>
    %285 = vector.broadcast %284 : vector<1x384xf32> to vector<64x384xf32>
    %286 = arith.addf %282, %285 : vector<64x384xf32>
    %287 = vector.shape_cast %286 : vector<64x384xf32> to vector<8x8x384xf32>
    %c1_59 = arith.constant 1 : index
    %c0_60 = arith.constant 0 : index
    %c0_61 = arith.constant 0 : index
    %288 = vector.load %arg4[%c1_59, %c0_60, %c0_61] : memref<2x128x384xf32, #tpu.memory_space<vmem>>, vector<1x128x384xf32>
    %289 = vector.shape_cast %288 : vector<1x128x384xf32> to vector<128x384xf32>
    %c1_62 = arith.constant 1 : index
    %c0_63 = arith.constant 0 : index
    %c0_64 = arith.constant 0 : index
    %290 = vector.load %arg6[%c1_62, %c0_63, %c0_64] : memref<2x1x128xf32, #tpu.memory_space<vmem>>, vector<1x1x128xf32>
    %291 = vector.shape_cast %290 : vector<1x1x128xf32> to vector<1x128xf32>
    %c1_65 = arith.constant 1 : index
    %c0_66 = arith.constant 0 : index
    %c0_67 = arith.constant 0 : index
    %292 = vector.load %arg10[%c1_65, %c0_66, %c0_67] : memref<2x8x128xf32, #tpu.memory_space<vmem>>, vector<1x8x128xf32>
    %293 = vector.shape_cast %292 : vector<1x8x128xf32> to vector<8x128xf32>
    %cst_68 = arith.constant dense<0.000000e+00> : vector<8x384xf32>
    %294 = tpu.matmul %293, %289, %cst_68 {dimension_numbers = #tpu.dot_dimension_numbers<[1], [0], [0], [1], [0, 0, 1, 1], [], []>} : vector<8x128xf32>, vector<128x384xf32>, vector<8x384xf32> -> vector<8x384xf32>
    %295 = vector.extract_strided_slice %287 {offsets = [0, 0, 0], sizes = [1, 8, 384], strides = [1, 1, 1]} : vector<8x8x384xf32> to vector<1x8x384xf32>
    %296 = vector.shape_cast %295 : vector<1x8x384xf32> to vector<8x384xf32>
    %297 = vector.extract_strided_slice %296 {offsets = [0, 0], sizes = [8, 128], strides = [1, 1]} : vector<8x384xf32> to vector<8x128xf32>
    %298 = vector.extract_strided_slice %294 {offsets = [0, 0], sizes = [8, 128], strides = [1, 1]} : vector<8x384xf32> to vector<8x128xf32>
    %299 = arith.addf %297, %298 : vector<8x128xf32>
    %300 = arith.negf %299 : vector<8x128xf32>
    %301 = math.exp %300 : vector<8x128xf32>
    %cst_69 = arith.constant 1.000000e+00 : f32
    %302 = vector.broadcast %cst_69 : f32 to vector<8x128xf32>
    %303 = arith.addf %302, %301 : vector<8x128xf32>
    %304 = arith.divf %302, %303 : vector<8x128xf32>
    %305 = vector.extract_strided_slice %296 {offsets = [0, 128], sizes = [8, 128], strides = [1, 1]} : vector<8x384xf32> to vector<8x128xf32>
    %306 = vector.extract_strided_slice %294 {offsets = [0, 128], sizes = [8, 128], strides = [1, 1]} : vector<8x384xf32> to vector<8x128xf32>
    %307 = arith.addf %305, %306 : vector<8x128xf32>
    %308 = arith.negf %307 : vector<8x128xf32>
    %309 = math.exp %308 : vector<8x128xf32>
    %cst_70 = arith.constant 1.000000e+00 : f32
    %310 = vector.broadcast %cst_70 : f32 to vector<8x128xf32>
    %311 = arith.addf %310, %309 : vector<8x128xf32>
    %312 = arith.divf %310, %311 : vector<8x128xf32>
    %313 = vector.extract_strided_slice %296 {offsets = [0, 256], sizes = [8, 128], strides = [1, 1]} : vector<8x384xf32> to vector<8x128xf32>
    %314 = vector.extract_strided_slice %294 {offsets = [0, 256], sizes = [8, 128], strides = [1, 1]} : vector<8x384xf32> to vector<8x128xf32>
    %315 = vector.broadcast %291 : vector<1x128xf32> to vector<8x128xf32>
    %316 = arith.addf %314, %315 : vector<8x128xf32>
    %317 = arith.mulf %304, %316 : vector<8x128xf32>
    %318 = arith.addf %313, %317 : vector<8x128xf32>
    %319 = math.tanh %318 : vector<8x128xf32>
    %cst_71 = arith.constant 1.000000e+00 : f32
    %320 = vector.broadcast %cst_71 : f32 to vector<8x128xf32>
    %321 = arith.subf %320, %312 : vector<8x128xf32>
    %322 = arith.mulf %321, %319 : vector<8x128xf32>
    %323 = arith.mulf %312, %293 : vector<8x128xf32>
    %324 = arith.addf %322, %323 : vector<8x128xf32>
    %cst_72 = arith.constant dense<0.000000e+00> : vector<8x384xf32>
    %325 = tpu.matmul %324, %289, %cst_72 {dimension_numbers = #tpu.dot_dimension_numbers<[1], [0], [0], [1], [0, 0, 1, 1], [], []>} : vector<8x128xf32>, vector<128x384xf32>, vector<8x384xf32> -> vector<8x384xf32>
    %326 = vector.extract_strided_slice %287 {offsets = [1, 0, 0], sizes = [1, 8, 384], strides = [1, 1, 1]} : vector<8x8x384xf32> to vector<1x8x384xf32>
    %327 = vector.shape_cast %326 : vector<1x8x384xf32> to vector<8x384xf32>
    %328 = vector.extract_strided_slice %327 {offsets = [0, 0], sizes = [8, 128], strides = [1, 1]} : vector<8x384xf32> to vector<8x128xf32>
    %329 = vector.extract_strided_slice %325 {offsets = [0, 0], sizes = [8, 128], strides = [1, 1]} : vector<8x384xf32> to vector<8x128xf32>
    %330 = arith.addf %328, %329 : vector<8x128xf32>
    %331 = arith.negf %330 : vector<8x128xf32>
    %332 = math.exp %331 : vector<8x128xf32>
    %cst_73 = arith.constant 1.000000e+00 : f32
    %333 = vector.broadcast %cst_73 : f32 to vector<8x128xf32>
    %334 = arith.addf %333, %332 : vector<8x128xf32>
    %335 = arith.divf %333, %334 : vector<8x128xf32>
    %336 = vector.extract_strided_slice %327 {offsets = [0, 128], sizes = [8, 128], strides = [1, 1]} : vector<8x384xf32> to vector<8x128xf32>
    %337 = vector.extract_strided_slice %325 {offsets = [0, 128], sizes = [8, 128], strides = [1, 1]} : vector<8x384xf32> to vector<8x128xf32>
    %338 = arith.addf %336, %337 : vector<8x128xf32>
    %339 = arith.negf %338 : vector<8x128xf32>
    %340 = math.exp %339 : vector<8x128xf32>
    %cst_74 = arith.constant 1.000000e+00 : f32
    %341 = vector.broadcast %cst_74 : f32 to vector<8x128xf32>
    %342 = arith.addf %341, %340 : vector<8x128xf32>
    %343 = arith.divf %341, %342 : vector<8x128xf32>
    %344 = vector.extract_strided_slice %327 {offsets = [0, 256], sizes = [8, 128], strides = [1, 1]} : vector<8x384xf32> to vector<8x128xf32>
    %345 = vector.extract_strided_slice %325 {offsets = [0, 256], sizes = [8, 128], strides = [1, 1]} : vector<8x384xf32> to vector<8x128xf32>
    %346 = vector.broadcast %291 : vector<1x128xf32> to vector<8x128xf32>
    %347 = arith.addf %345, %346 : vector<8x128xf32>
    %348 = arith.mulf %335, %347 : vector<8x128xf32>
    %349 = arith.addf %344, %348 : vector<8x128xf32>
    %350 = math.tanh %349 : vector<8x128xf32>
    %cst_75 = arith.constant 1.000000e+00 : f32
    %351 = vector.broadcast %cst_75 : f32 to vector<8x128xf32>
    %352 = arith.subf %351, %343 : vector<8x128xf32>
    %353 = arith.mulf %352, %350 : vector<8x128xf32>
    %354 = arith.mulf %343, %324 : vector<8x128xf32>
    %355 = arith.addf %353, %354 : vector<8x128xf32>
    %cst_76 = arith.constant dense<0.000000e+00> : vector<8x384xf32>
    %356 = tpu.matmul %355, %289, %cst_76 {dimension_numbers = #tpu.dot_dimension_numbers<[1], [0], [0], [1], [0, 0, 1, 1], [], []>} : vector<8x128xf32>, vector<128x384xf32>, vector<8x384xf32> -> vector<8x384xf32>
    %357 = vector.extract_strided_slice %287 {offsets = [2, 0, 0], sizes = [1, 8, 384], strides = [1, 1, 1]} : vector<8x8x384xf32> to vector<1x8x384xf32>
    %358 = vector.shape_cast %357 : vector<1x8x384xf32> to vector<8x384xf32>
    %359 = vector.extract_strided_slice %358 {offsets = [0, 0], sizes = [8, 128], strides = [1, 1]} : vector<8x384xf32> to vector<8x128xf32>
    %360 = vector.extract_strided_slice %356 {offsets = [0, 0], sizes = [8, 128], strides = [1, 1]} : vector<8x384xf32> to vector<8x128xf32>
    %361 = arith.addf %359, %360 : vector<8x128xf32>
    %362 = arith.negf %361 : vector<8x128xf32>
    %363 = math.exp %362 : vector<8x128xf32>
    %cst_77 = arith.constant 1.000000e+00 : f32
    %364 = vector.broadcast %cst_77 : f32 to vector<8x128xf32>
    %365 = arith.addf %364, %363 : vector<8x128xf32>
    %366 = arith.divf %364, %365 : vector<8x128xf32>
    %367 = vector.extract_strided_slice %358 {offsets = [0, 128], sizes = [8, 128], strides = [1, 1]} : vector<8x384xf32> to vector<8x128xf32>
    %368 = vector.extract_strided_slice %356 {offsets = [0, 128], sizes = [8, 128], strides = [1, 1]} : vector<8x384xf32> to vector<8x128xf32>
    %369 = arith.addf %367, %368 : vector<8x128xf32>
    %370 = arith.negf %369 : vector<8x128xf32>
    %371 = math.exp %370 : vector<8x128xf32>
    %cst_78 = arith.constant 1.000000e+00 : f32
    %372 = vector.broadcast %cst_78 : f32 to vector<8x128xf32>
    %373 = arith.addf %372, %371 : vector<8x128xf32>
    %374 = arith.divf %372, %373 : vector<8x128xf32>
    %375 = vector.extract_strided_slice %358 {offsets = [0, 256], sizes = [8, 128], strides = [1, 1]} : vector<8x384xf32> to vector<8x128xf32>
    %376 = vector.extract_strided_slice %356 {offsets = [0, 256], sizes = [8, 128], strides = [1, 1]} : vector<8x384xf32> to vector<8x128xf32>
    %377 = vector.broadcast %291 : vector<1x128xf32> to vector<8x128xf32>
    %378 = arith.addf %376, %377 : vector<8x128xf32>
    %379 = arith.mulf %366, %378 : vector<8x128xf32>
    %380 = arith.addf %375, %379 : vector<8x128xf32>
    %381 = math.tanh %380 : vector<8x128xf32>
    %cst_79 = arith.constant 1.000000e+00 : f32
    %382 = vector.broadcast %cst_79 : f32 to vector<8x128xf32>
    %383 = arith.subf %382, %374 : vector<8x128xf32>
    %384 = arith.mulf %383, %381 : vector<8x128xf32>
    %385 = arith.mulf %374, %355 : vector<8x128xf32>
    %386 = arith.addf %384, %385 : vector<8x128xf32>
    %cst_80 = arith.constant dense<0.000000e+00> : vector<8x384xf32>
    %387 = tpu.matmul %386, %289, %cst_80 {dimension_numbers = #tpu.dot_dimension_numbers<[1], [0], [0], [1], [0, 0, 1, 1], [], []>} : vector<8x128xf32>, vector<128x384xf32>, vector<8x384xf32> -> vector<8x384xf32>
    %388 = vector.extract_strided_slice %287 {offsets = [3, 0, 0], sizes = [1, 8, 384], strides = [1, 1, 1]} : vector<8x8x384xf32> to vector<1x8x384xf32>
    %389 = vector.shape_cast %388 : vector<1x8x384xf32> to vector<8x384xf32>
    %390 = vector.extract_strided_slice %389 {offsets = [0, 0], sizes = [8, 128], strides = [1, 1]} : vector<8x384xf32> to vector<8x128xf32>
    %391 = vector.extract_strided_slice %387 {offsets = [0, 0], sizes = [8, 128], strides = [1, 1]} : vector<8x384xf32> to vector<8x128xf32>
    %392 = arith.addf %390, %391 : vector<8x128xf32>
    %393 = arith.negf %392 : vector<8x128xf32>
    %394 = math.exp %393 : vector<8x128xf32>
    %cst_81 = arith.constant 1.000000e+00 : f32
    %395 = vector.broadcast %cst_81 : f32 to vector<8x128xf32>
    %396 = arith.addf %395, %394 : vector<8x128xf32>
    %397 = arith.divf %395, %396 : vector<8x128xf32>
    %398 = vector.extract_strided_slice %389 {offsets = [0, 128], sizes = [8, 128], strides = [1, 1]} : vector<8x384xf32> to vector<8x128xf32>
    %399 = vector.extract_strided_slice %387 {offsets = [0, 128], sizes = [8, 128], strides = [1, 1]} : vector<8x384xf32> to vector<8x128xf32>
    %400 = arith.addf %398, %399 : vector<8x128xf32>
    %401 = arith.negf %400 : vector<8x128xf32>
    %402 = math.exp %401 : vector<8x128xf32>
    %cst_82 = arith.constant 1.000000e+00 : f32
    %403 = vector.broadcast %cst_82 : f32 to vector<8x128xf32>
    %404 = arith.addf %403, %402 : vector<8x128xf32>
    %405 = arith.divf %403, %404 : vector<8x128xf32>
    %406 = vector.extract_strided_slice %389 {offsets = [0, 256], sizes = [8, 128], strides = [1, 1]} : vector<8x384xf32> to vector<8x128xf32>
    %407 = vector.extract_strided_slice %387 {offsets = [0, 256], sizes = [8, 128], strides = [1, 1]} : vector<8x384xf32> to vector<8x128xf32>
    %408 = vector.broadcast %291 : vector<1x128xf32> to vector<8x128xf32>
    %409 = arith.addf %407, %408 : vector<8x128xf32>
    %410 = arith.mulf %397, %409 : vector<8x128xf32>
    %411 = arith.addf %406, %410 : vector<8x128xf32>
    %412 = math.tanh %411 : vector<8x128xf32>
    %cst_83 = arith.constant 1.000000e+00 : f32
    %413 = vector.broadcast %cst_83 : f32 to vector<8x128xf32>
    %414 = arith.subf %413, %405 : vector<8x128xf32>
    %415 = arith.mulf %414, %412 : vector<8x128xf32>
    %416 = arith.mulf %405, %386 : vector<8x128xf32>
    %417 = arith.addf %415, %416 : vector<8x128xf32>
    %cst_84 = arith.constant dense<0.000000e+00> : vector<8x384xf32>
    %418 = tpu.matmul %417, %289, %cst_84 {dimension_numbers = #tpu.dot_dimension_numbers<[1], [0], [0], [1], [0, 0, 1, 1], [], []>} : vector<8x128xf32>, vector<128x384xf32>, vector<8x384xf32> -> vector<8x384xf32>
    %419 = vector.extract_strided_slice %287 {offsets = [4, 0, 0], sizes = [1, 8, 384], strides = [1, 1, 1]} : vector<8x8x384xf32> to vector<1x8x384xf32>
    %420 = vector.shape_cast %419 : vector<1x8x384xf32> to vector<8x384xf32>
    %421 = vector.extract_strided_slice %420 {offsets = [0, 0], sizes = [8, 128], strides = [1, 1]} : vector<8x384xf32> to vector<8x128xf32>
    %422 = vector.extract_strided_slice %418 {offsets = [0, 0], sizes = [8, 128], strides = [1, 1]} : vector<8x384xf32> to vector<8x128xf32>
    %423 = arith.addf %421, %422 : vector<8x128xf32>
    %424 = arith.negf %423 : vector<8x128xf32>
    %425 = math.exp %424 : vector<8x128xf32>
    %cst_85 = arith.constant 1.000000e+00 : f32
    %426 = vector.broadcast %cst_85 : f32 to vector<8x128xf32>
    %427 = arith.addf %426, %425 : vector<8x128xf32>
    %428 = arith.divf %426, %427 : vector<8x128xf32>
    %429 = vector.extract_strided_slice %420 {offsets = [0, 128], sizes = [8, 128], strides = [1, 1]} : vector<8x384xf32> to vector<8x128xf32>
    %430 = vector.extract_strided_slice %418 {offsets = [0, 128], sizes = [8, 128], strides = [1, 1]} : vector<8x384xf32> to vector<8x128xf32>
    %431 = arith.addf %429, %430 : vector<8x128xf32>
    %432 = arith.negf %431 : vector<8x128xf32>
    %433 = math.exp %432 : vector<8x128xf32>
    %cst_86 = arith.constant 1.000000e+00 : f32
    %434 = vector.broadcast %cst_86 : f32 to vector<8x128xf32>
    %435 = arith.addf %434, %433 : vector<8x128xf32>
    %436 = arith.divf %434, %435 : vector<8x128xf32>
    %437 = vector.extract_strided_slice %420 {offsets = [0, 256], sizes = [8, 128], strides = [1, 1]} : vector<8x384xf32> to vector<8x128xf32>
    %438 = vector.extract_strided_slice %418 {offsets = [0, 256], sizes = [8, 128], strides = [1, 1]} : vector<8x384xf32> to vector<8x128xf32>
    %439 = vector.broadcast %291 : vector<1x128xf32> to vector<8x128xf32>
    %440 = arith.addf %438, %439 : vector<8x128xf32>
    %441 = arith.mulf %428, %440 : vector<8x128xf32>
    %442 = arith.addf %437, %441 : vector<8x128xf32>
    %443 = math.tanh %442 : vector<8x128xf32>
    %cst_87 = arith.constant 1.000000e+00 : f32
    %444 = vector.broadcast %cst_87 : f32 to vector<8x128xf32>
    %445 = arith.subf %444, %436 : vector<8x128xf32>
    %446 = arith.mulf %445, %443 : vector<8x128xf32>
    %447 = arith.mulf %436, %417 : vector<8x128xf32>
    %448 = arith.addf %446, %447 : vector<8x128xf32>
    %cst_88 = arith.constant dense<0.000000e+00> : vector<8x384xf32>
    %449 = tpu.matmul %448, %289, %cst_88 {dimension_numbers = #tpu.dot_dimension_numbers<[1], [0], [0], [1], [0, 0, 1, 1], [], []>} : vector<8x128xf32>, vector<128x384xf32>, vector<8x384xf32> -> vector<8x384xf32>
    %450 = vector.extract_strided_slice %287 {offsets = [5, 0, 0], sizes = [1, 8, 384], strides = [1, 1, 1]} : vector<8x8x384xf32> to vector<1x8x384xf32>
    %451 = vector.shape_cast %450 : vector<1x8x384xf32> to vector<8x384xf32>
    %452 = vector.extract_strided_slice %451 {offsets = [0, 0], sizes = [8, 128], strides = [1, 1]} : vector<8x384xf32> to vector<8x128xf32>
    %453 = vector.extract_strided_slice %449 {offsets = [0, 0], sizes = [8, 128], strides = [1, 1]} : vector<8x384xf32> to vector<8x128xf32>
    %454 = arith.addf %452, %453 : vector<8x128xf32>
    %455 = arith.negf %454 : vector<8x128xf32>
    %456 = math.exp %455 : vector<8x128xf32>
    %cst_89 = arith.constant 1.000000e+00 : f32
    %457 = vector.broadcast %cst_89 : f32 to vector<8x128xf32>
    %458 = arith.addf %457, %456 : vector<8x128xf32>
    %459 = arith.divf %457, %458 : vector<8x128xf32>
    %460 = vector.extract_strided_slice %451 {offsets = [0, 128], sizes = [8, 128], strides = [1, 1]} : vector<8x384xf32> to vector<8x128xf32>
    %461 = vector.extract_strided_slice %449 {offsets = [0, 128], sizes = [8, 128], strides = [1, 1]} : vector<8x384xf32> to vector<8x128xf32>
    %462 = arith.addf %460, %461 : vector<8x128xf32>
    %463 = arith.negf %462 : vector<8x128xf32>
    %464 = math.exp %463 : vector<8x128xf32>
    %cst_90 = arith.constant 1.000000e+00 : f32
    %465 = vector.broadcast %cst_90 : f32 to vector<8x128xf32>
    %466 = arith.addf %465, %464 : vector<8x128xf32>
    %467 = arith.divf %465, %466 : vector<8x128xf32>
    %468 = vector.extract_strided_slice %451 {offsets = [0, 256], sizes = [8, 128], strides = [1, 1]} : vector<8x384xf32> to vector<8x128xf32>
    %469 = vector.extract_strided_slice %449 {offsets = [0, 256], sizes = [8, 128], strides = [1, 1]} : vector<8x384xf32> to vector<8x128xf32>
    %470 = vector.broadcast %291 : vector<1x128xf32> to vector<8x128xf32>
    %471 = arith.addf %469, %470 : vector<8x128xf32>
    %472 = arith.mulf %459, %471 : vector<8x128xf32>
    %473 = arith.addf %468, %472 : vector<8x128xf32>
    %474 = math.tanh %473 : vector<8x128xf32>
    %cst_91 = arith.constant 1.000000e+00 : f32
    %475 = vector.broadcast %cst_91 : f32 to vector<8x128xf32>
    %476 = arith.subf %475, %467 : vector<8x128xf32>
    %477 = arith.mulf %476, %474 : vector<8x128xf32>
    %478 = arith.mulf %467, %448 : vector<8x128xf32>
    %479 = arith.addf %477, %478 : vector<8x128xf32>
    %cst_92 = arith.constant dense<0.000000e+00> : vector<8x384xf32>
    %480 = tpu.matmul %479, %289, %cst_92 {dimension_numbers = #tpu.dot_dimension_numbers<[1], [0], [0], [1], [0, 0, 1, 1], [], []>} : vector<8x128xf32>, vector<128x384xf32>, vector<8x384xf32> -> vector<8x384xf32>
    %481 = vector.extract_strided_slice %287 {offsets = [6, 0, 0], sizes = [1, 8, 384], strides = [1, 1, 1]} : vector<8x8x384xf32> to vector<1x8x384xf32>
    %482 = vector.shape_cast %481 : vector<1x8x384xf32> to vector<8x384xf32>
    %483 = vector.extract_strided_slice %482 {offsets = [0, 0], sizes = [8, 128], strides = [1, 1]} : vector<8x384xf32> to vector<8x128xf32>
    %484 = vector.extract_strided_slice %480 {offsets = [0, 0], sizes = [8, 128], strides = [1, 1]} : vector<8x384xf32> to vector<8x128xf32>
    %485 = arith.addf %483, %484 : vector<8x128xf32>
    %486 = arith.negf %485 : vector<8x128xf32>
    %487 = math.exp %486 : vector<8x128xf32>
    %cst_93 = arith.constant 1.000000e+00 : f32
    %488 = vector.broadcast %cst_93 : f32 to vector<8x128xf32>
    %489 = arith.addf %488, %487 : vector<8x128xf32>
    %490 = arith.divf %488, %489 : vector<8x128xf32>
    %491 = vector.extract_strided_slice %482 {offsets = [0, 128], sizes = [8, 128], strides = [1, 1]} : vector<8x384xf32> to vector<8x128xf32>
    %492 = vector.extract_strided_slice %480 {offsets = [0, 128], sizes = [8, 128], strides = [1, 1]} : vector<8x384xf32> to vector<8x128xf32>
    %493 = arith.addf %491, %492 : vector<8x128xf32>
    %494 = arith.negf %493 : vector<8x128xf32>
    %495 = math.exp %494 : vector<8x128xf32>
    %cst_94 = arith.constant 1.000000e+00 : f32
    %496 = vector.broadcast %cst_94 : f32 to vector<8x128xf32>
    %497 = arith.addf %496, %495 : vector<8x128xf32>
    %498 = arith.divf %496, %497 : vector<8x128xf32>
    %499 = vector.extract_strided_slice %482 {offsets = [0, 256], sizes = [8, 128], strides = [1, 1]} : vector<8x384xf32> to vector<8x128xf32>
    %500 = vector.extract_strided_slice %480 {offsets = [0, 256], sizes = [8, 128], strides = [1, 1]} : vector<8x384xf32> to vector<8x128xf32>
    %501 = vector.broadcast %291 : vector<1x128xf32> to vector<8x128xf32>
    %502 = arith.addf %500, %501 : vector<8x128xf32>
    %503 = arith.mulf %490, %502 : vector<8x128xf32>
    %504 = arith.addf %499, %503 : vector<8x128xf32>
    %505 = math.tanh %504 : vector<8x128xf32>
    %cst_95 = arith.constant 1.000000e+00 : f32
    %506 = vector.broadcast %cst_95 : f32 to vector<8x128xf32>
    %507 = arith.subf %506, %498 : vector<8x128xf32>
    %508 = arith.mulf %507, %505 : vector<8x128xf32>
    %509 = arith.mulf %498, %479 : vector<8x128xf32>
    %510 = arith.addf %508, %509 : vector<8x128xf32>
    %cst_96 = arith.constant dense<0.000000e+00> : vector<8x384xf32>
    %511 = tpu.matmul %510, %289, %cst_96 {dimension_numbers = #tpu.dot_dimension_numbers<[1], [0], [0], [1], [0, 0, 1, 1], [], []>} : vector<8x128xf32>, vector<128x384xf32>, vector<8x384xf32> -> vector<8x384xf32>
    %512 = vector.extract_strided_slice %287 {offsets = [7, 0, 0], sizes = [1, 8, 384], strides = [1, 1, 1]} : vector<8x8x384xf32> to vector<1x8x384xf32>
    %513 = vector.shape_cast %512 : vector<1x8x384xf32> to vector<8x384xf32>
    %514 = vector.extract_strided_slice %513 {offsets = [0, 0], sizes = [8, 128], strides = [1, 1]} : vector<8x384xf32> to vector<8x128xf32>
    %515 = vector.extract_strided_slice %511 {offsets = [0, 0], sizes = [8, 128], strides = [1, 1]} : vector<8x384xf32> to vector<8x128xf32>
    %516 = arith.addf %514, %515 : vector<8x128xf32>
    %517 = arith.negf %516 : vector<8x128xf32>
    %518 = math.exp %517 : vector<8x128xf32>
    %cst_97 = arith.constant 1.000000e+00 : f32
    %519 = vector.broadcast %cst_97 : f32 to vector<8x128xf32>
    %520 = arith.addf %519, %518 : vector<8x128xf32>
    %521 = arith.divf %519, %520 : vector<8x128xf32>
    %522 = vector.extract_strided_slice %513 {offsets = [0, 128], sizes = [8, 128], strides = [1, 1]} : vector<8x384xf32> to vector<8x128xf32>
    %523 = vector.extract_strided_slice %511 {offsets = [0, 128], sizes = [8, 128], strides = [1, 1]} : vector<8x384xf32> to vector<8x128xf32>
    %524 = arith.addf %522, %523 : vector<8x128xf32>
    %525 = arith.negf %524 : vector<8x128xf32>
    %526 = math.exp %525 : vector<8x128xf32>
    %cst_98 = arith.constant 1.000000e+00 : f32
    %527 = vector.broadcast %cst_98 : f32 to vector<8x128xf32>
    %528 = arith.addf %527, %526 : vector<8x128xf32>
    %529 = arith.divf %527, %528 : vector<8x128xf32>
    %530 = vector.extract_strided_slice %513 {offsets = [0, 256], sizes = [8, 128], strides = [1, 1]} : vector<8x384xf32> to vector<8x128xf32>
    %531 = vector.extract_strided_slice %511 {offsets = [0, 256], sizes = [8, 128], strides = [1, 1]} : vector<8x384xf32> to vector<8x128xf32>
    %532 = vector.broadcast %291 : vector<1x128xf32> to vector<8x128xf32>
    %533 = arith.addf %531, %532 : vector<8x128xf32>
    %534 = arith.mulf %521, %533 : vector<8x128xf32>
    %535 = arith.addf %530, %534 : vector<8x128xf32>
    %536 = math.tanh %535 : vector<8x128xf32>
    %cst_99 = arith.constant 1.000000e+00 : f32
    %537 = vector.broadcast %cst_99 : f32 to vector<8x128xf32>
    %538 = arith.subf %537, %529 : vector<8x128xf32>
    %539 = arith.mulf %538, %536 : vector<8x128xf32>
    %540 = arith.mulf %529, %510 : vector<8x128xf32>
    %541 = arith.addf %539, %540 : vector<8x128xf32>
    %c1_100 = arith.constant 1 : index
    %c0_101 = arith.constant 0 : index
    %c0_102 = arith.constant 0 : index
    %542 = vector.load %arg10[%c1_100, %c0_101, %c0_102] : memref<2x8x128xf32, #tpu.memory_space<vmem>>, vector<1x8x128xf32>
    %543 = vector.shape_cast %542 : vector<1x8x128xf32> to vector<8x128xf32>
    %544 = vector.shape_cast %541 : vector<8x128xf32> to vector<1x8x128xf32>
    tpu.vector_store %arg10[%c1_100, %c0_101, %c0_102], %544 {strides = array<i32>} : memref<2x8x128xf32, #tpu.memory_space<vmem>>, vector<1x8x128xf32>,
    %545 = vector.shape_cast %324 : vector<8x128xf32> to vector<1x8x128xf32>
    %546 = vector.shape_cast %355 : vector<8x128xf32> to vector<1x8x128xf32>
    %547 = vector.shape_cast %386 : vector<8x128xf32> to vector<1x8x128xf32>
    %548 = vector.shape_cast %417 : vector<8x128xf32> to vector<1x8x128xf32>
    %549 = vector.shape_cast %448 : vector<8x128xf32> to vector<1x8x128xf32>
    %550 = vector.shape_cast %479 : vector<8x128xf32> to vector<1x8x128xf32>
    %551 = vector.shape_cast %510 : vector<8x128xf32> to vector<1x8x128xf32>
    %552 = vector.shape_cast %541 : vector<8x128xf32> to vector<1x8x128xf32>
    %553 = tpu.concatenate %545, %546, %547, %548, %549, %550, %551, %552 in 0 : vector<1x8x128xf32>, vector<1x8x128xf32>, vector<1x8x128xf32>, vector<1x8x128xf32>, vector<1x8x128xf32>, vector<1x8x128xf32>, vector<1x8x128xf32>, vector<1x8x128xf32> -> vector<8x8x128xf32>
    %554 = vector.shape_cast %553 : vector<8x8x128xf32> to vector<64x128xf32>
    %c0_103 = arith.constant 0 : index
    %c0_104 = arith.constant 0 : index
    %555 = vector.load %arg7[%c0_103, %c0_104] : memref<128x128xf32, #tpu.memory_space<vmem>>, vector<128x128xf32>
    %cst_105 = arith.constant dense<0.000000e+00> : vector<64x128xf32>
    %556 = tpu.matmul %554, %555, %cst_105 {dimension_numbers = #tpu.dot_dimension_numbers<[1], [0], [0], [1], [0, 0, 1, 1], [], []>} : vector<64x128xf32>, vector<128x128xf32>, vector<64x128xf32> -> vector<64x128xf32>
    %c0_106 = arith.constant 0 : index
    %c0_107 = arith.constant 0 : index
    %557 = vector.load %arg8[%c0_106, %c0_107] : memref<1x128xf32, #tpu.memory_space<vmem>>, vector<1x128xf32>
    %558 = vector.broadcast %557 : vector<1x128xf32> to vector<64x128xf32>
    %559 = arith.addf %556, %558 : vector<64x128xf32>
    %cst_108 = arith.constant dense<0xFF800000> : vector<64xf32>
    %560 = vector.multi_reduction <maximumf>, %559, %cst_108 [1] : vector<64x128xf32> to vector<64xf32>
    %561 = vector.shape_cast %560 : vector<64xf32> to vector<64x1xf32>
    %562 = vector.broadcast %561 : vector<64x1xf32> to vector<64x128xf32>
    %563 = arith.subf %559, %562 : vector<64x128xf32>
    %564 = math.exp %563 : vector<64x128xf32>
    %cst_109 = arith.constant dense<0.000000e+00> : vector<64xf32>
    %565 = vector.multi_reduction <add>, %564, %cst_109 [1] : vector<64x128xf32> to vector<64xf32>
    %566 = vector.shape_cast %565 : vector<64xf32> to vector<64x1xf32>
    %567 = math.log %566 : vector<64x1xf32>
    %568 = arith.addf %561, %567 : vector<64x1xf32>
    %569 = vector.broadcast %568 : vector<64x1xf32> to vector<64x128xf32>
    %570 = arith.subf %559, %569 : vector<64x128xf32>
    %571 = vector.shape_cast %570 : vector<64x128xf32> to vector<8x8x128xf32>
    %c0_110 = arith.constant 0 : index
    %c0_111 = arith.constant 0 : index
    %c0_112 = arith.constant 0 : index
    %572 = vector.load %arg9[%c0_110, %c0_111, %c0_112] : memref<8x8x128xf32, #tpu.memory_space<vmem>>, vector<8x8x128xf32>
    tpu.vector_store %arg9[%c0_110, %c0_111, %c0_112], %571 {strides = array<i32>} : memref<8x8x128xf32, #tpu.memory_space<vmem>>, vector<8x8x128xf32>,
    return
  }
  func.func @transform_0(%arg0: i32, %arg1: i32) -> (i32, i32, i32) {
    %c0_i32 = arith.constant 0 : i32
    %c0_i32_0 = arith.constant 0 : i32
    return %arg1, %arg0, %c0_i32 : i32, i32, i32
  }
  func.func @transform_1(%arg0: i32, %arg1: i32) -> (i32, i32, i32) {
    %c0_i32 = arith.constant 0 : i32
    %c0_i32_0 = arith.constant 0 : i32
    %c0_i32_1 = arith.constant 0 : i32
    %c0_i32_2 = arith.constant 0 : i32
    return %c0_i32, %c0_i32_0, %c0_i32_1 : i32, i32, i32
  }
  func.func @transform_2(%arg0: i32, %arg1: i32) -> (i32, i32, i32) {
    %c0_i32 = arith.constant 0 : i32
    %c0_i32_0 = arith.constant 0 : i32
    %c0_i32_1 = arith.constant 0 : i32
    %c0_i32_2 = arith.constant 0 : i32
    return %c0_i32, %c0_i32_0, %c0_i32_1 : i32, i32, i32
  }
  func.func @transform_3(%arg0: i32, %arg1: i32) -> (i32, i32, i32) {
    %c0_i32 = arith.constant 0 : i32
    %c0_i32_0 = arith.constant 0 : i32
    %c0_i32_1 = arith.constant 0 : i32
    %c0_i32_2 = arith.constant 0 : i32
    return %c0_i32, %c0_i32_0, %c0_i32_1 : i32, i32, i32
  }
  func.func @transform_4(%arg0: i32, %arg1: i32) -> (i32, i32, i32) {
    %c0_i32 = arith.constant 0 : i32
    %c0_i32_0 = arith.constant 0 : i32
    %c0_i32_1 = arith.constant 0 : i32
    %c0_i32_2 = arith.constant 0 : i32
    return %c0_i32, %c0_i32_0, %c0_i32_1 : i32, i32, i32
  }
  func.func @transform_5(%arg0: i32, %arg1: i32) -> (i32, i32) {
    %c0_i32 = arith.constant 0 : i32
    %c0_i32_0 = arith.constant 0 : i32
    %c0_i32_1 = arith.constant 0 : i32
    return %c0_i32, %c0_i32_0 : i32, i32
  }
  func.func @transform_6(%arg0: i32, %arg1: i32) -> (i32, i32) {
    %c0_i32 = arith.constant 0 : i32
    %c0_i32_0 = arith.constant 0 : i32
    %c0_i32_1 = arith.constant 0 : i32
    return %c0_i32, %c0_i32_0 : i32, i32
  }
  func.func @transform_7(%arg0: i32, %arg1: i32) -> (i32, i32, i32) {
    %c0_i32 = arith.constant 0 : i32
    %c0_i32_0 = arith.constant 0 : i32
    return %arg1, %arg0, %c0_i32 : i32, i32, i32
  }
}

</mosaic_0001>

<bundles_post_ra>
// kernel: rnn_forward.1
= control target key start
LH: loop header
LB: loop body
LE: loop exit
PB: predicated region body
PF: predicated region fallthrough
CT: control target
= control target key end

     0   :  { %12 = vsyncpa [#allocation4], 0  ;;  %s7266_s0 = inlined_call_operand.vmem [shape: f32[8,8,128], index: 0, kind: input, shape index: {}]   ;;  %s7267_s1 = inlined_call_operand.hbm [shape: f32[2,128,384], index: 1, kind: input, shape index: {}]   ;;  %s7268_s2 = inlined_call_operand.hbm [shape: f32[2,128,384], index: 2, kind: input, shape index: {}]   ;;  %s7269_s3 = inlined_call_operand.hbm [shape: f32[2,1,384], index: 3, kind: input, shape index: {}]   ;;  %s7270_s4 = inlined_call_operand.vmem [shape: f32[2,1,128], index: 4, kind: input, shape index: {}]   ;;  %s7271_s5 = inlined_call_operand.vmem [shape: f32[128,128], index: 5, kind: input, shape index: {}]   ;;  %s7272_s6 = inlined_call_operand.vmem [shape: f32[1,128], index: 6, kind: input, shape index: {}]   ;;  %s7273_s7 = inlined_call_operand.vmem [shape: f32[8,8,128], index: 7, kind: output, shape index: {}]  }
   0x1   :  { %13 = vsyncpa [#allocation6], 0  ;;  %s6069_s24 = smov [#allocation5]   ;;  %s6070_s26 = smov [#allocation3]  }
   0x2   :  { %s33_s25 = sshll.u32 %s6069_s24, 4  ;;  %s21_s27 = sshll.u32 %s6070_s26, 4  ;;  %s34_s25 = int_to_ptr.vmem [resolvable:$true] %s33_s25  ;;  %s6119_s27 = int_to_ptr.vmem [resolvable:$true] %s21_s27 }
   0x3   :  { %s5999_s30 = scalar_lea.hbm %s7268_s2, 12288 }
   0x4   :  { %p6000_p0 = scmp.ne.s32.totalorder %s7268_s2, %s5999_s30  ;;  %p6003_p1 = scmp.lt.u32.totalorder %s5999_s30, %s7268_s2 }
   0x6   :  { %p6005_p2 = pnand %p6003_p1, %p6000_p0 }
   0x8   :  { %6008 = shalt.err (!%p6005_p2)
}
   0x9   :  { %s6009_s12 = scalar_lea.vmem %s34_s25, 12288  ;;  %p6014_p4 = scmp.lt.s32.totalorder %s34_s25, %s34_s25 }
   0xa   :  { %p6010_p3 = scmp.ne.s32.totalorder %s34_s25, %s6009_s12  ;;  %p6015_p5 = scmp.lt.s32.totalorder %s6009_s12, %s6009_s12 }
   0xc   :  { %p6016_p6 = por %p6015_p5, %p6014_p4 }
   0xe   :  { %p6017_p7 = pnand %p6016_p6, %p6010_p3 }
  0x10   :  { %6020 = shalt.err (!%p6017_p7)
}
  0x11   :  { %s6071_s13 = smov 384   ;;  %s6072_s14 = smov 24  }
  0x12   :  { %39 = dma.hbm_to_vmem [thread:$0]  %s7268_s2, 12288, %s34_s25, [#allocation6], %s6071_s13, %s6071_s13, %s6072_s14  }
  0x13   :  { %s6021_s19 = scalar_lea.hbm %s7267_s1, 12288 }
  0x14   :  { %p6022_p8 = scmp.ne.s32.totalorder %s7267_s1, %s6021_s19  ;;  %p6025_p9 = scmp.lt.u32.totalorder %s6021_s19, %s7267_s1 }
  0x16   :  { %p6027_p10 = pnand %p6025_p9, %p6022_p8 }
  0x18   :  { %6030 = shalt.err (!%p6027_p10)
}
  0x19   :  { %s6031_s24 = scalar_lea.vmem %s6119_s27, 12288  ;;  %p6036_p12 = scmp.lt.s32.totalorder %s6119_s27, %s6119_s27 }
  0x1a   :  { %p6032_p11 = scmp.ne.s32.totalorder %s6119_s27, %s6031_s24  ;;  %p6037_p13 = scmp.lt.s32.totalorder %s6031_s24, %s6031_s24 }
  0x1c   :  { %p6038_p0 = por %p6037_p13, %p6036_p12 }
  0x1e   :  { %p6039_p1 = pnand %p6038_p0, %p6032_p11 }
  0x20   :  { %6042 = shalt.err (!%p6039_p1)
}
  0x21   :  { %27 = dma.hbm_to_vmem [thread:$0]  %s7267_s1, 12288, %s6119_s27, [#allocation4], %s6071_s13, %s6071_s13, %s6072_s14  }
  0x22   :  { %s6073_s26 = smov [#allocation7]   ;;  %s6043_s8 = scalar_lea.hbm %s7269_s3, 96 }
  0x23   :  { %s45_s28 = sshll.u32 %s6073_s26, 4  ;;  %p6044_p2 = scmp.ne.s32.totalorder %s7269_s3, %s6043_s8  ;;  %s46_s28 = int_to_ptr.vmem [resolvable:$true] %s45_s28 }
  0x24   :  { %p6047_p3 = scmp.lt.u32.totalorder %s6043_s8, %s7269_s3 }
  0x26   :  { %p6049_p4 = pnand %p6047_p3, %p6044_p2 }
  0x28   :  { %6052 = shalt.err (!%p6049_p4)
}
  0x29   :  { %s6053_s15 = scalar_lea.vmem %s46_s28, 96  ;;  %p6058_p6 = scmp.lt.s32.totalorder %s46_s28, %s46_s28 }
  0x2a   :  { %p6054_p5 = scmp.ne.s32.totalorder %s46_s28, %s6053_s15  ;;  %p6059_p7 = scmp.lt.s32.totalorder %s6053_s15, %s6053_s15 }
  0x2c   :  { %p6060_p8 = por %p6059_p7, %p6058_p6 }
  0x2e   :  { %p6061_p9 = pnand %p6060_p8, %p6054_p5 }
  0x30   :  { %6064 = shalt.err (!%p6061_p9)
}
  0x31   :  { %s6074_s1 = smov 48   ;;  %s6075_s27 = smov 3  }
  0x32   :  { %51 = dma.hbm_to_vmem [thread:$0]  %s7269_s3, 96, %s46_s28, [#allocation6], %s6074_s1, %s6074_s1, %s6075_s27  }
  0x33   :  { %6065 = dma.done.wait [#allocation4], 12288  }
  0x34   :  { %6066 = vsyncadd [#allocation4], 4294955008 }
  0x35   :  { %6067 = dma.done.wait [#allocation6], 12384  }
  0x36   :  { %6068 = vsyncadd [#allocation6], 4294954912  ;;  %v7277_v0 = vmov 0.0   ;;  %v82_v1 = vld [vmem:[#allocation3 + $0x8] sm:$0xff]  ;;  %v85_v2 = vld [vmem:[#allocation3 + $0x20] sm:$0xff]  ;;  %vm6078_vm0 = vmmov 0  }
  0x37   :  { %210 = vmatprep.mubr.f32.mxu1 %v7277_v0  ;;  %478 = vmatprep.mubr.f32.mxu0 %v7277_v0  ;;  %v81_v3 = vld [vmem:[#allocation3] sm:$0xff]  ;;  %v4676_v4 = vpack.c.bf16 %v85_v2, %v82_v1  ;;  %v84_v5 = vld [vmem:[#allocation3 + $0x18] sm:$0xff]  ;;  %v365_v6 = vld [vmem:[#allocation5 + $0x8] sm:$0xff] }
  0x38   :  { %v368_v7 = vld [vmem:[#allocation5 + $0x20] sm:$0xff]  ;;  %v4678_v8 = vpack.c.bf16 %v84_v5, %v81_v3  ;;  %v367_v11 = vld [vmem:[#allocation5 + $0x18] sm:$0xff]  ;;  %v91_v14 = vld [vmem:[#allocation3 + $0x50] sm:$0xff] }
  0x39   :  { %v6164_v9 = vpack.c.bf16 %v368_v7, %v365_v6  ;;  %v364_v10 = vld [vmem:[#allocation5] sm:$0xff]  ;;  %v88_v12 = vld [vmem:[#allocation3 + $0x38] sm:$0xff]  ;;  %4677 = vmatprep.subr.bf16.mxu1 %v4676_v4  ;;  %v87_v15 = vld [vmem:[#allocation3 + $0x30] sm:$0xff] }
  0x3a   :  { %v6166_v13 = vpack.c.bf16 %v367_v11, %v364_v10  ;;  %v90_v16 = vld [vmem:[#allocation3 + $0x48] sm:$0xff]  ;;  %4679 = vmatpush1.bf16.msra.mxu1 %v4678_v8  ;;  %v4680_v17 = vpack.c.bf16 %v91_v14, %v88_v12  ;;  %v371_v19 = vld [vmem:[#allocation5 + $0x38] sm:$0xff]  ;;  %v374_v20 = vld [vmem:[#allocation5 + $0x50] sm:$0xff] }
  0x3b   :  { %4741 = vmatprep.subr.bf16.mxu0 %v6164_v9  ;;  %v4682_v18 = vpack.c.bf16 %v90_v16, %v87_v15  ;;  %v370_v21 = vld [vmem:[#allocation5 + $0x30] sm:$0xff]  ;;  %v6170_v22 = vpack.c.bf16 %v374_v20, %v371_v19  ;;  %v373_v23 = vld [vmem:[#allocation5 + $0x48] sm:$0xff]  ;;  %v97_v25 = vld [vmem:[#allocation3 + $0x80] sm:$0xff] }
  0x3c   :  { %4743 = vmatpush1.bf16.msra.mxu0 %v6166_v13  ;;  %v94_v24 = vld [vmem:[#allocation3 + $0x68] sm:$0xff]  ;;  %4681 = vmatprep.subr.bf16.mxu1 %v4680_v17  ;;  %v6172_v26 = vpack.c.bf16 %v373_v23, %v370_v21  ;;  %v93_v28 = vld [vmem:[#allocation3 + $0x60] sm:$0xff]  ;;  %v96_v29 = vld [vmem:[#allocation3 + $0x78] sm:$0xff] }
  0x3d   :  { %v4684_v27 = vpack.c.bf16 %v97_v25, %v94_v24  ;;  %v377_v30 = vld [vmem:[#allocation5 + $0x68] sm:$0xff]  ;;  %4745 = vmatprep.subr.bf16.mxu0 %v6170_v22  ;;  %v380_v31 = vld [vmem:[#allocation5 + $0x80] sm:$0xff]  ;;  %v379_v33 = vld [vmem:[#allocation5 + $0x78] sm:$0xff]  ;;  %v4686_v34 = vpack.c.bf16 %v96_v29, %v93_v28 }
  0x3e   :  { %v376_v32 = vld [vmem:[#allocation5 + $0x60] sm:$0xff]  ;;  %4683 = vmatpush1.bf16.msra.mxu1 %v4682_v18  ;;  %v6175_v35 = vpack.c.bf16 %v380_v31, %v377_v30  ;;  %v100_v36 = vld [vmem:[#allocation3 + $0x98] sm:$0xff]  ;;  %v103_v37 = vld [vmem:[#allocation3 + $0xb0] sm:$0xff] }
  0x3f   :  { %v99_v38 = vld [vmem:[#allocation3 + $0x90] sm:$0xff]  ;;  %4685 = vmatprep.subr.bf16.mxu1 %v4684_v27  ;;  %v6178_v39 = vpack.c.bf16 %v379_v33, %v376_v32  ;;  %v4688_v40 = vpack.c.bf16 %v103_v37, %v100_v36  ;;  %v102_v41 = vld [vmem:[#allocation3 + $0xa8] sm:$0xff]  ;;  %v383_v42 = vld [vmem:[#allocation5 + $0x98] sm:$0xff] }
  0x40   :  { %4747 = vmatpush1.bf16.msra.mxu0 %v6172_v26  ;;  %v386_v43 = vld [vmem:[#allocation5 + $0xb0] sm:$0xff]  ;;  %v385_v46 = vld [vmem:[#allocation5 + $0xa8] sm:$0xff]  ;;  %v109_v48 = vld [vmem:[#allocation3 + $0xe0] sm:$0xff]  ;;  %v4690_v49 = vpack.c.bf16 %v102_v41, %v99_v38 }
  0x41   :  { %4749 = vmatprep.subr.bf16.mxu0 %v6175_v35  ;;  %v6181_v44 = vpack.c.bf16 %v386_v43, %v383_v42  ;;  %v382_v45 = vld [vmem:[#allocation5 + $0x90] sm:$0xff]  ;;  %v106_v47 = vld [vmem:[#allocation3 + $0xc8] sm:$0xff]  ;;  %v392_v51 = vld [vmem:[#allocation5 + $0xe0] sm:$0xff] }
  0x42   :  { %4687 = vmatpush1.bf16.msra.mxu1 %v4686_v34  ;;  %v389_v50 = vld [vmem:[#allocation5 + $0xc8] sm:$0xff]  ;;  %v6184_v52 = vpack.c.bf16 %v385_v46, %v382_v45  ;;  %v4692_v53 = vpack.c.bf16 %v109_v48, %v106_v47  ;;  %v105_v54 = vld [vmem:[#allocation3 + $0xc0] sm:$0xff]  ;;  %v108_v55 = vld [vmem:[#allocation3 + $0xd8] sm:$0xff] }
  0x43   :  { %4689 = vmatprep.subr.bf16.mxu1 %v4688_v40  ;;  %v388_v56 = vld [vmem:[#allocation5 + $0xc0] sm:$0xff]  ;;  %v6187_v57 = vpack.c.bf16 %v392_v51, %v389_v50  ;;  %v391_v58 = vld [vmem:[#allocation5 + $0xd8] sm:$0xff]  ;;  %v115_v60 = vld [vmem:[#allocation3 + $0x110] sm:$0xff]  ;;  %v4694_v63 = vpack.c.bf16 %v108_v55, %v105_v54 }
  0x44   :  { %4751 = vmatpush1.bf16.msra.mxu0 %v6178_v39  ;;  %v112_v59 = vld [vmem:[#allocation3 + $0xf8] sm:$0xff]  ;;  %v398_v62 = vld [vmem:[#allocation5 + $0x110] sm:$0xff]  ;;  %v6190_v1 = vpack.c.bf16 %v391_v58, %v388_v56  ;;  %v114_v4 = vld [vmem:[#allocation3 + $0x108] sm:$0xff] }
  0x45   :  { %4753 = vmatprep.subr.bf16.mxu0 %v6181_v44  ;;  %v395_v61 = vld [vmem:[#allocation5 + $0xf8] sm:$0xff]  ;;  %v4696_v2 = vpack.c.bf16 %v115_v60, %v112_v59  ;;  %v111_v3 = vld [vmem:[#allocation3 + $0xf0] sm:$0xff]  ;;  %v397_v7 = vld [vmem:[#allocation5 + $0x108] sm:$0xff] }
  0x46   :  { %4691 = vmatpush1.bf16.msra.mxu1 %v4690_v49  ;;  %v394_v5 = vld [vmem:[#allocation5 + $0xf0] sm:$0xff]  ;;  %v6193_v6 = vpack.c.bf16 %v398_v62, %v395_v61  ;;  %v118_v8 = vld [vmem:[#allocation3 + $0x128] sm:$0xff]  ;;  %v121_v10 = vld [vmem:[#allocation3 + $0x140] sm:$0xff]  ;;  %v4698_v14 = vpack.c.bf16 %v114_v4, %v111_v3 }
  0x47   :  { %4693 = vmatprep.subr.bf16.mxu1 %v4692_v53  ;;  %v401_v11 = vld [vmem:[#allocation5 + $0x128] sm:$0xff]  ;;  %v404_v12 = vld [vmem:[#allocation5 + $0x140] sm:$0xff]  ;;  %v6196_v15 = vpack.c.bf16 %v397_v7, %v394_v5  ;;  %v4700_v16 = vpack.c.bf16 %v121_v10, %v118_v8  ;;  %v120_v18 = vld [vmem:[#allocation3 + $0x138] sm:$0xff] }
  0x48   :  { %4755 = vmatpush1.bf16.msra.mxu0 %v6184_v52  ;;  %v117_v17 = vld [vmem:[#allocation3 + $0x120] sm:$0xff]  ;;  %v6199_v20 = vpack.c.bf16 %v404_v12, %v401_v11  ;;  %v403_v21 = vld [vmem:[#allocation5 + $0x138] sm:$0xff]  ;;  %v127_v24 = vld [vmem:[#allocation3 + $0x170] sm:$0xff] }
  0x49   :  { %4757 = vmatprep.subr.bf16.mxu0 %v6187_v57  ;;  %v400_v19 = vld [vmem:[#allocation5 + $0x120] sm:$0xff]  ;;  %v124_v23 = vld [vmem:[#allocation3 + $0x158] sm:$0xff]  ;;  %v410_v27 = vld [vmem:[#allocation5 + $0x170] sm:$0xff]  ;;  %v4702_v28 = vpack.c.bf16 %v120_v18, %v117_v17 }
  0x4a   :  { %4695 = vmatpush1.bf16.msra.mxu1 %v4694_v63  ;;  %v407_v25 = vld [vmem:[#allocation5 + $0x158] sm:$0xff]  ;;  %v6202_v29 = vpack.c.bf16 %v403_v21, %v400_v19  ;;  %v4704_v30 = vpack.c.bf16 %v127_v24, %v124_v23  ;;  %v123_v31 = vld [vmem:[#allocation3 + $0x150] sm:$0xff]  ;;  %v126_v32 = vld [vmem:[#allocation3 + $0x168] sm:$0xff]  ;;  %v7279_v21 = vmov 0.0|0.0  }
  0x4b   :  { %4697 = vmatprep.subr.bf16.mxu1 %v4696_v2  ;;  %v406_v33 = vld [vmem:[#allocation5 + $0x150] sm:$0xff]  ;;  %v6205_v34 = vpack.c.bf16 %v410_v27, %v407_v25  ;;  %v409_v36 = vld [vmem:[#allocation5 + $0x168] sm:$0xff]  ;;  %v4706_v40 = vpack.c.bf16 %v126_v32, %v123_v31  ;;  %v89_v43 = vld [vmem:[#allocation3 + $0x40] sm:$0xff] }
  0x4c   :  { %4759 = vmatpush1.bf16.msra.mxu0 %v6190_v1  ;;  %v83_v37 = vld [vmem:[#allocation3 + $0x10] sm:$0xff]  ;;  %v86_v38 = vld [vmem:[#allocation3 + $0x28] sm:$0xff]  ;;  %v6208_v41 = vpack.c.bf16 %v409_v36, %v406_v33  ;;  %v92_v45 = vld [vmem:[#allocation3 + $0x58] sm:$0xff] }
  0x4d   :  { %4761 = vmatprep.subr.bf16.mxu0 %v6193_v6  ;;  %v4708_v42 = vpack.c.bf16 %v86_v38, %v83_v37  ;;  %v6214_v46 = vld [vmem:[%s7266_s0] sm:$0xff]  ;;  %v4712_v47 = vpack.c.bf16 %v92_v45, %v89_v43  ;;  %v95_v48 = vld [vmem:[#allocation3 + $0x70] sm:$0xff]  ;;  %v98_v49 = vld [vmem:[#allocation3 + $0x88] sm:$0xff] }
  0x4e   :  { %4699 = vmatpush1.bf16.msra.mxu1 %v4698_v14  ;;  %v6223_v50 = vld [vmem:[%s7266_s0 + $0x8] sm:$0xff]  ;;  %v4716_v51 = vpack.c.bf16 %v98_v49, %v95_v48  ;;  %v101_v53 = vld [vmem:[#allocation3 + $0xa0] sm:$0xff]  ;;  %v104_v54 = vld [vmem:[#allocation3 + $0xb8] sm:$0xff] }
  0x4f   :  { %4701 = vmatprep.subr.bf16.mxu1 %v4700_v16  ;;  %v6234_v55 = vld [vmem:[%s7266_s0 + $0x10] sm:$0xff]  ;;  %v4720_v56 = vpack.c.bf16 %v104_v54, %v101_v53  ;;  %v110_v59 = vld [vmem:[#allocation3 + $0xe8] sm:$0xff]  ;;  %v76_v60 = vld [vmem:[%s7266_s0 + $0x18] sm:$0xff] }
  0x50   :  { %4763 = vmatpush1.bf16.msra.mxu0 %v6196_v15  ;;  %v107_v58 = vld [vmem:[#allocation3 + $0xd0] sm:$0xff]  ;;  %v113_v62 = vld [vmem:[#allocation3 + $0x100] sm:$0xff]  ;;  %v116_v63 = vld [vmem:[#allocation3 + $0x118] sm:$0xff] }
  0x51   :  { %4765 = vmatprep.subr.bf16.mxu0 %v6199_v20  ;;  %v4724_v61 = vpack.c.bf16 %v110_v59, %v107_v58  ;;  %v77_v2 = vld [vmem:[%s7266_s0 + $0x20] sm:$0xff]  ;;  %v4728_v3 = vpack.c.bf16 %v116_v63, %v113_v62  ;;  %v119_v4 = vld [vmem:[#allocation3 + $0x130] sm:$0xff]  ;;  %v122_v5 = vld [vmem:[#allocation3 + $0x148] sm:$0xff] }
  0x52   :  { %4703 = vmatpush1.bf16.msra.mxu1 %v4702_v28  ;;  %v78_v7 = vld [vmem:[%s7266_s0 + $0x28] sm:$0xff]  ;;  %v4732_v8 = vpack.c.bf16 %v122_v5, %v119_v4  ;;  %v125_v10 = vld [vmem:[#allocation3 + $0x160] sm:$0xff]  ;;  %v128_v11 = vld [vmem:[#allocation3 + $0x178] sm:$0xff] }
  0x53   :  { %4705 = vmatprep.subr.bf16.mxu1 %v4704_v30  ;;  %v79_v12 = vld [vmem:[%s7266_s0 + $0x30] sm:$0xff]  ;;  %v4736_v14 = vpack.c.bf16 %v128_v11, %v125_v10  ;;  %v80_v16 = vld [vmem:[%s7266_s0 + $0x38] sm:$0xff]  ;;  %v369_v18 = vld [vmem:[#allocation5 + $0x28] sm:$0xff] }
  0x54   :  { %4767 = vmatpush1.bf16.msra.mxu0 %v6202_v29  ;;  %v366_v17 = vld [vmem:[#allocation5 + $0x10] sm:$0xff]  ;;  %v372_v23 = vld [vmem:[#allocation5 + $0x40] sm:$0xff]  ;;  %v375_v24 = vld [vmem:[#allocation5 + $0x58] sm:$0xff] }
  0x55   :  { %4769 = vmatprep.subr.bf16.mxu0 %v6205_v34  ;;  %v6270_v19 = vpack.c.bf16 %v369_v18, %v366_v17  ;;  %v6277_v25 = vpack.c.bf16 %v375_v24, %v372_v23  ;;  %v378_v27 = vld [vmem:[#allocation5 + $0x70] sm:$0xff]  ;;  %v381_v28 = vld [vmem:[#allocation5 + $0x88] sm:$0xff]  ;;  %v384_v31 = vld [vmem:[#allocation5 + $0xa0] sm:$0xff] }
  0x56   :  { %4707 = vmatpush1.bf16.msra.mxu1 %v4706_v40  ;;  %v6282_v30 = vpack.c.bf16 %v381_v28, %v378_v27  ;;  %v387_v32 = vld [vmem:[#allocation5 + $0xb8] sm:$0xff]  ;;  %v390_v36 = vld [vmem:[#allocation5 + $0xd0] sm:$0xff]  ;;  %v393_v37 = vld [vmem:[#allocation5 + $0xe8] sm:$0xff] }
  0x57   :  { %4709 = vmatprep.subr.bf16.mxu1 %v4708_v42  ;;  %v6286_v33 = vpack.c.bf16 %v387_v32, %v384_v31  ;;  %v6290_v38 = vpack.c.bf16 %v393_v37, %v390_v36  ;;  %v396_v40 = vld [vmem:[#allocation5 + $0x100] sm:$0xff]  ;;  %v402_v45 = vld [vmem:[#allocation5 + $0x130] sm:$0xff]  ;;  %v411_v49 = vld [vmem:[#allocation5 + $0x178] sm:$0xff] }
  0x58   :  { %4771 = vmatpush1.bf16.msra.mxu0 %v6208_v41  ;;  %v408_v48 = vld [vmem:[#allocation5 + $0x160] sm:$0xff] }
  0x59   :  { %4797 = vmatprep.subr.bf16.mxu0 %v6164_v9  ;;  %211 = vmatmul.mubr.f32.vlgmr.msra.gmra.mrb[0].mxu1 %v6214_v46 }
  0x5a   :  { %4711 = vmatpush3.bf16.msra.mxu1 %v4708_v42  ;;  %216 = vmatprep.mubr.f32.mxu1 %v7277_v0  ;;  %v399_v42 = vld [vmem:[#allocation5 + $0x118] sm:$0xff] }
  0x5b   :  { %479 = vmatmul.mubr.f32.vlgmr.msra.gmra.mrb[0].mxu0 %v7277_v0  ;;  %4713 = vmatprep.subr.bf16.mxu1 %v4712_v47  ;;  %v6296_v43 = vpack.c.bf16 %v399_v42, %v396_v40 }
  0x5c   :  { %4799 = vmatpush1.bf16.msra.mxu0 %v6166_v13  ;;  %647 = vmatprep.mubr.f32.mxu0 %v7277_v0 }
  0x5d   :  { %217 = vmatmul.mubr.f32.gmra.mrb[2].mxu1 %v6223_v50  ;;  %4801 = vmatprep.subr.bf16.mxu0 %v6170_v22 }
  0x5e   :  { %4715 = vmatpush3.bf16.msra.mxu1 %v4712_v47  ;;  %222 = vmatprep.mubr.f32.mxu1 %v7277_v0 }
  0x5f   :  { %4717 = vmatprep.subr.bf16.mxu1 %v4716_v51 }
  0x60   :  { %4803 = vmatpush1.bf16.msra.mxu0 %v6172_v26 }
  0x61   :  { %223 = vmatmul.mubr.f32.gmra.mrb[4].mxu1 %v6234_v55  ;;  %4805 = vmatprep.subr.bf16.mxu0 %v6175_v35 }
  0x62   :  { %4719 = vmatpush3.bf16.msra.mxu1 %v4716_v51  ;;  %228 = vmatprep.mubr.f32.mxu1 %v7277_v0  ;;  %v131_v51 = vlaneseq }
  0x63   :  { %4721 = vmatprep.subr.bf16.mxu1 %v4720_v56 }
  0x64   :  { %4807 = vmatpush1.bf16.msra.mxu0 %v6178_v39  ;;  %v6328_v53 = vshrl.u32 %v131_v51, 7 }
  0x65   :  { %229 = vmatmul.mubr.f32.gmra.mrb[6].mxu1 %v76_v60  ;;  %4809 = vmatprep.subr.bf16.mxu0 %v6181_v44 }
  0x66   :  { %4723 = vmatpush3.bf16.msra.mxu1 %v4720_v56  ;;  %234 = vmatprep.mubr.f32.mxu1 %v7277_v0  ;;  %7283 = vst [vmem:[#allocation10_spill] sm:$0xff] %v6328_v53  ;;  %v7276_v54 = vsub.s32 0, %v6328_v53  ;;  %v7275_v56 = vsub.s32 1, %v6328_v53  ;;  %v7274_v51 = vsub.s32 2, %v6328_v53 }
  0x67   :  { %4725 = vmatprep.subr.bf16.mxu1 %v4724_v61 }
  0x68   :  { %4811 = vmatpush1.bf16.msra.mxu0 %v6184_v52 }
  0x69   :  { %235 = vmatmul.mubr.f32.gmra.mrb[8].mxu1 %v77_v2  ;;  %4813 = vmatprep.subr.bf16.mxu0 %v6187_v57 }
  0x6a   :  { %4727 = vmatpush3.bf16.msra.mxu1 %v4724_v61  ;;  %240 = vmatprep.mubr.f32.mxu1 %v7277_v0 }
  0x6b   :  { %4729 = vmatprep.subr.bf16.mxu1 %v4728_v3 }
  0x6c   :  { %4815 = vmatpush1.bf16.msra.mxu0 %v6190_v1 }
  0x6d   :  { %241 = vmatmul.mubr.f32.gmra.mrb[10].mxu1 %v78_v7  ;;  %4817 = vmatprep.subr.bf16.mxu0 %v6193_v6 }
  0x6e   :  { %4731 = vmatpush3.bf16.msra.mxu1 %v4728_v3  ;;  %246 = vmatprep.mubr.f32.mxu1 %v7277_v0 }
  0x6f   :  { %4733 = vmatprep.subr.bf16.mxu1 %v4732_v8 }
  0x70   :  { %4819 = vmatpush1.bf16.msra.mxu0 %v6196_v15 }
  0x71   :  { %247 = vmatmul.mubr.f32.gmra.mrb[12].mxu1 %v79_v12  ;;  %4821 = vmatprep.subr.bf16.mxu0 %v6199_v20 }
  0x72   :  { %4735 = vmatpush3.bf16.msra.mxu1 %v4732_v8  ;;  %252 = vmatprep.mubr.f32.mxu1 %v7277_v0 }
  0x73   :  { %4737 = vmatprep.subr.bf16.mxu1 %v4736_v14 }
  0x74   :  { %4823 = vmatpush1.bf16.msra.mxu0 %v6202_v29 }
  0x75   :  { %253 = vmatmul.mubr.f32.gmra.mrb[14].mxu1 %v80_v16  ;;  %4825 = vmatprep.subr.bf16.mxu0 %v6205_v34 }
  0x76   :  { %4739 = vmatpush3.bf16.msra.mxu1 %v4736_v14  ;;  %4016 = vmatprep.mubr.f32.mxu1 %v6214_v46  ;;  %v405_v46 = vld [vmem:[#allocation5 + $0x148] sm:$0xff] }
  0x77   :  { %4772 = vmatprep.subr.bf16.mxu1 %v7279_v21  ;;  %v6300_v47 = vpack.c.bf16 %v405_v46, %v402_v45 }
  0x78   :  { %4827 = vmatpush1.bf16.msra.mxu0 %v6208_v41 }
  0x79   :  { %4017 = vmatmul.mubr.f32.vlgmr.msra.gmra.mrb[16].mxu1 %v6223_v50  ;;  %4853 = vmatprep.subr.bf16.mxu0 %v6164_v9  ;;  %v6304_v50 = vpack.c.bf16 %v411_v49, %v408_v48 }
  0x7a   :  { %4774 = vmatpush3.bf16.msra.mxu1 %v6270_v19  ;;  %4019 = vmatprep.mubr.f32.mxu1 %v6234_v55  ;;  %v129_v55 = vld [vmem:[#allocation7] sm:$0x7] }
  0x7b   :  { %4775 = vmatprep.subr.bf16.mxu1 %v7279_v21  ;;  %v134_v58 = vrot.slane %v129_v55, %v7276_v54  ;;  %v138_v59 = vrot.slane %v129_v55, %v7275_v56 }
  0x7d   :  { %4020 = vmatmul.mubr.f32.gmra.mrb[18].mxu1 %v76_v60 }
  0x7e   :  { %4777 = vmatpush3.bf16.msra.mxu1 %v6277_v25  ;;  %4022 = vmatprep.mubr.f32.mxu1 %v77_v2 }
  0x7f   :  { %4778 = vmatprep.subr.bf16.mxu1 %v7279_v21 }
  0x81   :  { %4023 = vmatmul.mubr.f32.gmra.mrb[20].mxu1 %v78_v7 }
  0x82   :  { %4780 = vmatpush3.bf16.msra.mxu1 %v6282_v30  ;;  %4025 = vmatprep.mubr.f32.mxu1 %v79_v12 }
  0x83   :  { %4781 = vmatprep.subr.bf16.mxu1 %v7279_v21 }
  0x85   :  { %4026 = vmatmul.mubr.f32.gmra.mrb[22].mxu1 %v80_v16 }
  0x86   :  { %4783 = vmatpush3.bf16.msra.mxu1 %v6286_v33  ;;  %4060 = vmatprep.mubr.msk.f32.mxu1 %vm6078_vm0, %v7277_v0 }
  0x87   :  { %4784 = vmatprep.subr.bf16.mxu1 %v7279_v21 }
  0x8a   :  { %4786 = vmatpush3.bf16.msra.mxu1 %v6290_v38 }
  0x8b   :  { %4787 = vmatprep.subr.bf16.mxu1 %v7279_v21 }
  0x8e   :  { %4789 = vmatpush3.bf16.msra.mxu1 %v6296_v43 }
  0x8f   :  { %4790 = vmatprep.subr.bf16.mxu1 %v7279_v21 }
  0x92   :  { %4792 = vmatpush3.bf16.msra.mxu1 %v6300_v47 }
  0x93   :  { %4793 = vmatprep.subr.bf16.mxu1 %v7279_v21 }
  0x96   :  { %4795 = vmatpush3.bf16.msra.mxu1 %v6304_v50 }
  0x97   :  { %4828 = vmatprep.subr.bf16.mxu1 %v7279_v21 }
  0x99   :  { %4061 = vmatmul.mubr.f32.vlgmr.msra.gmra.mrb[24].mxu1 %v7277_v0 }
  0x9a   :  { %4830 = vmatpush3.bf16.msra.mxu1 %v6270_v19  ;;  %4095 = vmatprep.mubr.msk.f32.mxu1 %vm6078_vm0, %v7277_v0 }
  0x9b   :  { %4831 = vmatprep.subr.bf16.mxu1 %v7279_v21 }
  0x9e   :  { %4833 = vmatpush3.bf16.msra.mxu1 %v6277_v25 }
  0x9f   :  { %4834 = vmatprep.subr.bf16.mxu1 %v7279_v21 }
  0xa2   :  { %4836 = vmatpush3.bf16.msra.mxu1 %v6282_v30 }
  0xa3   :  { %4837 = vmatprep.subr.bf16.mxu1 %v7279_v21 }
  0xa6   :  { %4839 = vmatpush3.bf16.msra.mxu1 %v6286_v33 }
  0xa7   :  { %4840 = vmatprep.subr.bf16.mxu1 %v7279_v21 }
  0xaa   :  { %4842 = vmatpush3.bf16.msra.mxu1 %v6290_v38 }
  0xab   :  { %4843 = vmatprep.subr.bf16.mxu1 %v7279_v21 }
  0xae   :  { %4845 = vmatpush3.bf16.msra.mxu1 %v6296_v43 }
  0xaf   :  { %4846 = vmatprep.subr.bf16.mxu1 %v7279_v21 }
  0xb2   :  { %4848 = vmatpush3.bf16.msra.mxu1 %v6300_v47 }
  0xb3   :  { %4849 = vmatprep.subr.bf16.mxu1 %v7279_v21 }
  0xb6   :  { %4851 = vmatpush3.bf16.msra.mxu1 %v6304_v50 }
  0xb7   :  { %4884 = vmatprep.subr.bf16.mxu1 %v7279_v21 }
 0x12c   :  { %v212_v60 = vpop.f32.mrb[0].mxu1 }
 0x12d   :  { %v213_v61 = vadd.f32 %v212_v60, %v134_v58  ;;  %v214_v62 = vpop.f32.mrb[1].mxu1 }
 0x12e   :  { %v480_v63 = vpop.f32.mrb[0].mxu0  ;;  %v215_v2 = vadd.f32 %v214_v62, %v138_v59 }
 0x12f   :  { %v482_v3 = vpop.f32.mrb[1].mxu0  ;;  %v555_v4 = vadd.f32 %v480_v63, %v213_v61 }
 0x130   :  { %v562_v5 = vadd.f32 %v482_v3, %v215_v2  ;;  %v218_v7 = vpop.f32.mrb[2].mxu1  ;;  %v142_v2 = vrot.slane %v129_v55, %v7274_v51 }
 0x131   :  { %v6336_v8 = vadd.f32 %v218_v7, %v134_v58  ;;  %v220_v10 = vpop.f32.mrb[3].mxu1 }
 0x132   :  { %v6338_v11 = vadd.f32 %v220_v10, %v138_v59 }
 0x134   :  { %v224_v12 = vpop.f32.mrb[4].mxu1 }
 0x135   :  { %v6340_v14 = vadd.f32 %v224_v12, %v134_v58  ;;  %v226_v16 = vpop.f32.mrb[5].mxu1 }
 0x136   :  { %v6342_v17 = vadd.f32 %v226_v16, %v138_v59  ;;  %v3604_v16 = vmul.f32 -1.442695, %v555_v4 }
 0x138   :  { %v230_v18 = vpop.f32.mrb[6].mxu1  ;;  %5806 = vpow2.f32 %v3604_v16  ;;  %v6384_v16 = vld [vmem:[%s7270_s4] ss:$0 sm:$0xff] }
 0x139   :  { %v6344_v23 = vadd.f32 %v230_v18, %v134_v58  ;;  %v232_v24 = vpop.f32.mrb[7].mxu1 }
 0x13a   :  { %v6346_v27 = vadd.f32 %v232_v24, %v138_v59 }
 0x13c   :  { %v236_v28 = vpop.f32.mrb[8].mxu1 }
 0x13d   :  { %v6348_v31 = vadd.f32 %v236_v28, %v134_v58  ;;  %v238_v32 = vpop.f32.mrb[9].mxu1 }
 0x13e   :  { %v6350_v36 = vadd.f32 %v238_v32, %v138_v59 }
 0x140   :  { %v242_v37 = vpop.f32.mrb[10].mxu1 }
 0x141   :  { %v6352_v40 = vadd.f32 %v242_v37, %v134_v58  ;;  %v244_v42 = vpop.f32.mrb[11].mxu1 }
 0x142   :  { %v6354_v45 = vadd.f32 %v244_v42, %v138_v59  ;;  %v5807_v4 = vpop.eup %5806 }
 0x144   :  { %v248_v46 = vpop.f32.mrb[12].mxu1 }
 0x145   :  { %v6356_v48 = vadd.f32 %v248_v46, %v134_v58  ;;  %v250_v49 = vpop.f32.mrb[13].mxu1 }
 0x146   :  { %v6359_v60 = vadd.f32 %v250_v49, %v138_v59 }
 0x148   :  { %v254_v61 = vpop.f32.mrb[14].mxu1 }
 0x149   :  { %v6361_v62 = vadd.f32 %v254_v61, %v134_v58  ;;  %v256_v63 = vpop.f32.mrb[15].mxu1  ;;  %v3605_v61 = vmul.f32 -1.442695, %v562_v5 }
 0x14a   :  { %v6365_v3 = vadd.f32 %v256_v63, %v138_v59 }
 0x14b   :  { %5808 = vpow2.f32 %v3605_v61 }
 0x14c   :  { %v4018_v7 = vpop.f32.mrb[16].mxu1 }
 0x14d   :  { %v6367_v10 = vadd.f32 %v4018_v7, %v142_v2  ;;  %v325_v12 = vpop.f32.mrb[17].mxu1  ;;  %v559_v7 = vadd.f32 1.0, %v5807_v4 }
 0x14e   :  { %v326_v5 = vadd.f32 %v325_v12, %v142_v2 }
 0x14f   :  { %5810 = vrcp.f32 %v559_v7 }
 0x150   :  { %v4021_v18 = vpop.f32.mrb[18].mxu1 }
 0x151   :  { %v6369_v24 = vadd.f32 %v4021_v18, %v142_v2  ;;  %v335_v28 = vpop.f32.mrb[19].mxu1 }
 0x152   :  { %v6371_v32 = vadd.f32 %v335_v28, %v142_v2 }
 0x154   :  { %v4024_v58 = vpop.f32.mrb[20].mxu1 }
 0x155   :  { %v6373_v37 = vadd.f32 %v4024_v58, %v142_v2  ;;  %v345_v42 = vpop.f32.mrb[21].mxu1  ;;  %v5809_v18 = vpop.eup %5808 }
 0x156   :  { %v6375_v46 = vadd.f32 %v345_v42, %v142_v2  ;;  %v566_v28 = vadd.f32 1.0, %v5809_v18 }
 0x158   :  { %v4027_v55 = vpop.f32.mrb[22].mxu1  ;;  %5812 = vrcp.f32 %v566_v28 }
 0x159   :  { %v6377_v59 = vadd.f32 %v4027_v55, %v142_v2  ;;  %v355_v49 = vpop.f32.mrb[23].mxu1  ;;  %v5811_v51 = vpop.eup %5810 }
 0x15a   :  { %v6379_v63 = vadd.f32 %v355_v49, %v142_v2 }
 0x162   :  { %v5813_v61 = vpop.eup %5812 }
 0x163   :  { %v579_v4 = vsub.f32 1.0, %v5813_v61  ;;  %v581_v0 = vmul.f32 0.0, %v5813_v61 }
 0x16c   :  { %v551_v58 = vpop.f32.mrb[24].mxu1 }
 0x16d   :  { %v575_v42 = vadd.f32 %v6384_v16, %v551_v58  ;;  %v4062_v55 = vpop.f32.mrb[25].mxu1 }
 0x16f   :  { %v576_v49 = vmul.f32 %v5811_v51, %v575_v42  ;;  %v7284_v51 = vmov 0.0|0.0  }
 0x171   :  { %v577_v56 = vadd.f32 %v576_v49, %v326_v5 }
 0x173   :  { %5814 = vtanh.f32 %v577_v56  ;;  %v7285_v56 = vmov 0.0  }
 0x17d   :  { %v5815_v7 = vpop.eup %5814 }
 0x17e   :  { %v580_v54 = vmul.f32 %v5815_v7, %v579_v4 }
 0x180   :  { %v6387_v21 = vadd.f32 %v581_v0, %v580_v54 }
 0x182   :  { %648 = vmatmul.mubr.f32.vlgmr.msra.gmra.mrb[2].mxu0 %v6387_v21  ;;  %4096 = vmatmul.mubr.f32.vlgmr.msra.gmra.mrb[26].mxu1 %v6387_v21 }
 0x183   :  { %4855 = vmatpush1.bf16.msra.mxu0 %v6166_v13  ;;  %4886 = vmatpush3.bf16.msra.mxu1 %v6270_v19 }
 0x184   :  { %4857 = vmatprep.subr.bf16.mxu0 %v6170_v22  ;;  %4887 = vmatprep.subr.bf16.mxu1 %v7284_v51 }
 0x185   :  { %810 = vmatprep.mubr.f32.mxu0 %v7285_v56  ;;  %4130 = vmatprep.mubr.msk.f32.mxu1 %vm6078_vm0, %v7285_v56 }
 0x187   :  { %4859 = vmatpush1.bf16.msra.mxu0 %v6172_v26  ;;  %4889 = vmatpush3.bf16.msra.mxu1 %v6277_v25 }
 0x188   :  { %4861 = vmatprep.subr.bf16.mxu0 %v6175_v35  ;;  %4890 = vmatprep.subr.bf16.mxu1 %v7284_v51 }
 0x18b   :  { %4863 = vmatpush1.bf16.msra.mxu0 %v6178_v39  ;;  %4892 = vmatpush3.bf16.msra.mxu1 %v6282_v30 }
 0x18c   :  { %4865 = vmatprep.subr.bf16.mxu0 %v6181_v44  ;;  %4893 = vmatprep.subr.bf16.mxu1 %v7284_v51 }
 0x18f   :  { %4867 = vmatpush1.bf16.msra.mxu0 %v6184_v52  ;;  %4895 = vmatpush3.bf16.msra.mxu1 %v6286_v33 }
 0x190   :  { %4869 = vmatprep.subr.bf16.mxu0 %v6187_v57  ;;  %4896 = vmatprep.subr.bf16.mxu1 %v7284_v51 }
 0x193   :  { %4871 = vmatpush1.bf16.msra.mxu0 %v6190_v1  ;;  %4898 = vmatpush3.bf16.msra.mxu1 %v6290_v38 }
 0x194   :  { %4873 = vmatprep.subr.bf16.mxu0 %v6193_v6  ;;  %4899 = vmatprep.subr.bf16.mxu1 %v7284_v51 }
 0x197   :  { %4875 = vmatpush1.bf16.msra.mxu0 %v6196_v15  ;;  %4901 = vmatpush3.bf16.msra.mxu1 %v6296_v43 }
 0x198   :  { %4877 = vmatprep.subr.bf16.mxu0 %v6199_v20  ;;  %4902 = vmatprep.subr.bf16.mxu1 %v7284_v51 }
 0x19b   :  { %4879 = vmatpush1.bf16.msra.mxu0 %v6202_v29  ;;  %4904 = vmatpush3.bf16.msra.mxu1 %v6300_v47 }
 0x19c   :  { %4881 = vmatprep.subr.bf16.mxu0 %v6205_v34  ;;  %4905 = vmatprep.subr.bf16.mxu1 %v7284_v51 }
 0x19f   :  { %4883 = vmatpush1.bf16.msra.mxu0 %v6208_v41  ;;  %4907 = vmatpush3.bf16.msra.mxu1 %v6304_v50 }
 0x1a0   :  { %4909 = vmatprep.subr.bf16.mxu0 %v6164_v9  ;;  %4940 = vmatprep.subr.bf16.mxu1 %v7284_v51 }
 0x255   :  { %v649_v0 = vpop.f32.mrb[2].mxu0  ;;  %v720_v54 = vpop.f32.mrb[26].mxu1 }
 0x256   :  { %v724_v2 = vadd.f32 %v649_v0, %v6336_v8  ;;  %v651_v12 = vpop.f32.mrb[3].mxu0  ;;  %v4097_v18 = vpop.f32.mrb[27].mxu1  ;;  %v738_v4 = vadd.f32 %v6384_v16, %v720_v54 }
 0x257   :  { %v731_v28 = vadd.f32 %v651_v12, %v6338_v11 }
 0x258   :  { %v3607_v58 = vmul.f32 -1.442695, %v724_v2 }
 0x259   :  { %v3608_v42 = vmul.f32 -1.442695, %v731_v28 }
 0x25a   :  { %5816 = vpow2.f32 %v3607_v58 }
 0x25b   :  { %5818 = vpow2.f32 %v3608_v42 }
 0x264   :  { %v5817_v55 = vpop.eup %5816 }
 0x265   :  { %v728_v5 = vadd.f32 1.0, %v5817_v55  ;;  %v5819_v49 = vpop.eup %5818 }
 0x266   :  { %v735_v61 = vadd.f32 1.0, %v5819_v49 }
 0x267   :  { %5820 = vrcp.f32 %v728_v5 }
 0x268   :  { %5822 = vrcp.f32 %v735_v61 }
 0x271   :  { %v5821_v7 = vpop.eup %5820 }
 0x272   :  { %v739_v53 = vmul.f32 %v5821_v7, %v738_v4  ;;  %v5823_v0 = vpop.eup %5822 }
 0x273   :  { %v742_v18 = vsub.f32 1.0, %v5823_v0  ;;  %v744_v12 = vmul.f32 %v5823_v0, %v6387_v21 }
 0x274   :  { %v740_v8 = vadd.f32 %v739_v53, %v6367_v10 }
 0x276   :  { %5824 = vtanh.f32 %v740_v8 }
 0x280   :  { %v5825_v11 = vpop.eup %5824 }
 0x281   :  { %v743_v2 = vmul.f32 %v5825_v11, %v742_v18 }
 0x283   :  { %v6431_v28 = vadd.f32 %v744_v12, %v743_v2 }
 0x285   :  { %811 = vmatmul.mubr.f32.vlgmr.msra.gmra.mrb[4].mxu0 %v6431_v28  ;;  %4131 = vmatmul.mubr.f32.vlgmr.msra.gmra.mrb[28].mxu1 %v6431_v28 }
 0x286   :  { %4911 = vmatpush1.bf16.msra.mxu0 %v6166_v13  ;;  %4942 = vmatpush3.bf16.msra.mxu1 %v6270_v19 }
 0x287   :  { %4913 = vmatprep.subr.bf16.mxu0 %v6170_v22  ;;  %4943 = vmatprep.subr.bf16.mxu1 %v7284_v51 }
 0x288   :  { %973 = vmatprep.mubr.f32.mxu0 %v7285_v56  ;;  %4165 = vmatprep.mubr.msk.f32.mxu1 %vm6078_vm0, %v7285_v56 }
 0x28a   :  { %4915 = vmatpush1.bf16.msra.mxu0 %v6172_v26  ;;  %4945 = vmatpush3.bf16.msra.mxu1 %v6277_v25 }
 0x28b   :  { %4917 = vmatprep.subr.bf16.mxu0 %v6175_v35  ;;  %4946 = vmatprep.subr.bf16.mxu1 %v7284_v51 }
 0x28e   :  { %4919 = vmatpush1.bf16.msra.mxu0 %v6178_v39  ;;  %4948 = vmatpush3.bf16.msra.mxu1 %v6282_v30 }
 0x28f   :  { %4921 = vmatprep.subr.bf16.mxu0 %v6181_v44  ;;  %4949 = vmatprep.subr.bf16.mxu1 %v7284_v51 }
 0x292   :  { %4923 = vmatpush1.bf16.msra.mxu0 %v6184_v52  ;;  %4951 = vmatpush3.bf16.msra.mxu1 %v6286_v33 }
 0x293   :  { %4925 = vmatprep.subr.bf16.mxu0 %v6187_v57  ;;  %4952 = vmatprep.subr.bf16.mxu1 %v7284_v51 }
 0x296   :  { %4927 = vmatpush1.bf16.msra.mxu0 %v6190_v1  ;;  %4954 = vmatpush3.bf16.msra.mxu1 %v6290_v38 }
 0x297   :  { %4929 = vmatprep.subr.bf16.mxu0 %v6193_v6  ;;  %4955 = vmatprep.subr.bf16.mxu1 %v7284_v51 }
 0x29a   :  { %4931 = vmatpush1.bf16.msra.mxu0 %v6196_v15  ;;  %4957 = vmatpush3.bf16.msra.mxu1 %v6296_v43 }
 0x29b   :  { %4933 = vmatprep.subr.bf16.mxu0 %v6199_v20  ;;  %4958 = vmatprep.subr.bf16.mxu1 %v7284_v51 }
 0x29e   :  { %4935 = vmatpush1.bf16.msra.mxu0 %v6202_v29  ;;  %4960 = vmatpush3.bf16.msra.mxu1 %v6300_v47 }
 0x29f   :  { %4937 = vmatprep.subr.bf16.mxu0 %v6205_v34  ;;  %4961 = vmatprep.subr.bf16.mxu1 %v7284_v51 }
 0x2a2   :  { %4939 = vmatpush1.bf16.msra.mxu0 %v6208_v41  ;;  %4963 = vmatpush3.bf16.msra.mxu1 %v6304_v50 }
 0x2a3   :  { %4965 = vmatprep.subr.bf16.mxu0 %v6164_v9  ;;  %4996 = vmatprep.subr.bf16.mxu1 %v7284_v51 }
 0x358   :  { %v812_v53 = vpop.f32.mrb[4].mxu0  ;;  %v883_v10 = vpop.f32.mrb[28].mxu1 }
 0x359   :  { %v887_v54 = vadd.f32 %v812_v53, %v6340_v14  ;;  %v814_v58 = vpop.f32.mrb[5].mxu0  ;;  %v4132_v42 = vpop.f32.mrb[29].mxu1  ;;  %v901_v0 = vadd.f32 %v6384_v16, %v883_v10 }
 0x35a   :  { %v894_v55 = vadd.f32 %v814_v58, %v6342_v17 }
 0x35b   :  { %v3609_v5 = vmul.f32 -1.442695, %v887_v54 }
 0x35c   :  { %v3610_v49 = vmul.f32 -1.442695, %v894_v55 }
 0x35d   :  { %5826 = vpow2.f32 %v3609_v5 }
 0x35e   :  { %5828 = vpow2.f32 %v3610_v49 }
 0x367   :  { %v5827_v61 = vpop.eup %5826 }
 0x368   :  { %v891_v4 = vadd.f32 1.0, %v5827_v61  ;;  %v5829_v7 = vpop.eup %5828 }
 0x369   :  { %v898_v8 = vadd.f32 1.0, %v5829_v7 }
 0x36a   :  { %5830 = vrcp.f32 %v891_v4 }
 0x36b   :  { %5832 = vrcp.f32 %v898_v8 }
 0x374   :  { %v5831_v18 = vpop.eup %5830 }
 0x375   :  { %v902_v11 = vmul.f32 %v5831_v18, %v901_v0  ;;  %v5833_v2 = vpop.eup %5832 }
 0x376   :  { %v905_v12 = vsub.f32 1.0, %v5833_v2  ;;  %v907_v54 = vmul.f32 %v5833_v2, %v6431_v28 }
 0x377   :  { %v903_v14 = vadd.f32 %v902_v11, %v6371_v32 }
 0x379   :  { %5834 = vtanh.f32 %v903_v14 }
 0x383   :  { %v5835_v17 = vpop.eup %5834 }
 0x384   :  { %v906_v53 = vmul.f32 %v5835_v17, %v905_v12 }
 0x386   :  { %v6475_v58 = vadd.f32 %v907_v54, %v906_v53 }
 0x388   :  { %974 = vmatmul.mubr.f32.vlgmr.msra.gmra.mrb[6].mxu0 %v6475_v58  ;;  %4166 = vmatmul.mubr.f32.vlgmr.msra.gmra.mrb[30].mxu1 %v6475_v58 }
 0x389   :  { %4967 = vmatpush1.bf16.msra.mxu0 %v6166_v13  ;;  %4998 = vmatpush3.bf16.msra.mxu1 %v6270_v19 }
 0x38a   :  { %4969 = vmatprep.subr.bf16.mxu0 %v6170_v22  ;;  %4999 = vmatprep.subr.bf16.mxu1 %v7284_v51 }
 0x38b   :  { %1136 = vmatprep.mubr.f32.mxu0 %v7285_v56  ;;  %4200 = vmatprep.mubr.msk.f32.mxu1 %vm6078_vm0, %v7285_v56 }
 0x38d   :  { %4971 = vmatpush1.bf16.msra.mxu0 %v6172_v26  ;;  %5001 = vmatpush3.bf16.msra.mxu1 %v6277_v25 }
 0x38e   :  { %4973 = vmatprep.subr.bf16.mxu0 %v6175_v35  ;;  %5002 = vmatprep.subr.bf16.mxu1 %v7284_v51 }
 0x391   :  { %4975 = vmatpush1.bf16.msra.mxu0 %v6178_v39  ;;  %5004 = vmatpush3.bf16.msra.mxu1 %v6282_v30 }
 0x392   :  { %4977 = vmatprep.subr.bf16.mxu0 %v6181_v44  ;;  %5005 = vmatprep.subr.bf16.mxu1 %v7284_v51 }
 0x395   :  { %4979 = vmatpush1.bf16.msra.mxu0 %v6184_v52  ;;  %5007 = vmatpush3.bf16.msra.mxu1 %v6286_v33 }
 0x396   :  { %4981 = vmatprep.subr.bf16.mxu0 %v6187_v57  ;;  %5008 = vmatprep.subr.bf16.mxu1 %v7284_v51 }
 0x399   :  { %4983 = vmatpush1.bf16.msra.mxu0 %v6190_v1  ;;  %5010 = vmatpush3.bf16.msra.mxu1 %v6290_v38 }
 0x39a   :  { %4985 = vmatprep.subr.bf16.mxu0 %v6193_v6  ;;  %5011 = vmatprep.subr.bf16.mxu1 %v7284_v51 }
 0x39d   :  { %4987 = vmatpush1.bf16.msra.mxu0 %v6196_v15  ;;  %5013 = vmatpush3.bf16.msra.mxu1 %v6296_v43 }
 0x39e   :  { %4989 = vmatprep.subr.bf16.mxu0 %v6199_v20  ;;  %5014 = vmatprep.subr.bf16.mxu1 %v7284_v51 }
 0x3a1   :  { %4991 = vmatpush1.bf16.msra.mxu0 %v6202_v29  ;;  %5016 = vmatpush3.bf16.msra.mxu1 %v6300_v47 }
 0x3a2   :  { %4993 = vmatprep.subr.bf16.mxu0 %v6205_v34  ;;  %5017 = vmatprep.subr.bf16.mxu1 %v7284_v51 }
 0x3a5   :  { %4995 = vmatpush1.bf16.msra.mxu0 %v6208_v41  ;;  %5019 = vmatpush3.bf16.msra.mxu1 %v6304_v50 }
 0x3a6   :  { %5021 = vmatprep.subr.bf16.mxu0 %v6164_v9  ;;  %5052 = vmatprep.subr.bf16.mxu1 %v7284_v51 }
 0x45b   :  { %v975_v32 = vpop.f32.mrb[6].mxu0  ;;  %v1046_v10 = vpop.f32.mrb[30].mxu1 }
 0x45c   :  { %v1050_v42 = vadd.f32 %v975_v32, %v6344_v23  ;;  %v977_v55 = vpop.f32.mrb[7].mxu0  ;;  %v4167_v5 = vpop.f32.mrb[31].mxu1  ;;  %v1064_v11 = vadd.f32 %v6384_v16, %v1046_v10 }
 0x45d   :  { %v1057_v49 = vadd.f32 %v977_v55, %v6346_v27 }
 0x45e   :  { %v3611_v61 = vmul.f32 -1.442695, %v1050_v42 }
 0x45f   :  { %v3612_v4 = vmul.f32 -1.442695, %v1057_v49 }
 0x460   :  { %5836 = vpow2.f32 %v3611_v61 }
 0x461   :  { %5838 = vpow2.f32 %v3612_v4 }
 0x46a   :  { %v5837_v7 = vpop.eup %5836 }
 0x46b   :  { %v1054_v8 = vadd.f32 1.0, %v5837_v7  ;;  %v5839_v0 = vpop.eup %5838 }
 0x46c   :  { %v1061_v18 = vadd.f32 1.0, %v5839_v0 }
 0x46d   :  { %5840 = vrcp.f32 %v1054_v8 }
 0x46e   :  { %5842 = vrcp.f32 %v1061_v18 }
 0x477   :  { %v5841_v14 = vpop.eup %5840 }
 0x478   :  { %v1065_v2 = vmul.f32 %v5841_v14, %v1064_v11  ;;  %v5843_v12 = vpop.eup %5842 }
 0x479   :  { %v1068_v17 = vsub.f32 1.0, %v5843_v12  ;;  %v1070_v54 = vmul.f32 %v5843_v12, %v6475_v58 }
 0x47a   :  { %v1066_v23 = vadd.f32 %v1065_v2, %v6369_v24 }
 0x47c   :  { %5844 = vtanh.f32 %v1066_v23 }
 0x486   :  { %v5845_v27 = vpop.eup %5844 }
 0x487   :  { %v1069_v53 = vmul.f32 %v5845_v27, %v1068_v17 }
 0x489   :  { %v6519_v32 = vadd.f32 %v1070_v54, %v1069_v53 }
 0x48b   :  { %1137 = vmatmul.mubr.f32.vlgmr.msra.gmra.mrb[8].mxu0 %v6519_v32  ;;  %4201 = vmatmul.mubr.f32.vlgmr.msra.gmra.mrb[32].mxu1 %v6519_v32 }
 0x48c   :  { %5023 = vmatpush1.bf16.msra.mxu0 %v6166_v13  ;;  %5054 = vmatpush3.bf16.msra.mxu1 %v6270_v19 }
 0x48d   :  { %5025 = vmatprep.subr.bf16.mxu0 %v6170_v22  ;;  %5055 = vmatprep.subr.bf16.mxu1 %v7284_v51 }
 0x48e   :  { %1299 = vmatprep.mubr.f32.mxu0 %v7285_v56  ;;  %4235 = vmatprep.mubr.msk.f32.mxu1 %vm6078_vm0, %v7285_v56 }
 0x490   :  { %5027 = vmatpush1.bf16.msra.mxu0 %v6172_v26  ;;  %5057 = vmatpush3.bf16.msra.mxu1 %v6277_v25 }
 0x491   :  { %5029 = vmatprep.subr.bf16.mxu0 %v6175_v35  ;;  %5058 = vmatprep.subr.bf16.mxu1 %v7284_v51 }
 0x494   :  { %5031 = vmatpush1.bf16.msra.mxu0 %v6178_v39  ;;  %5060 = vmatpush3.bf16.msra.mxu1 %v6282_v30 }
 0x495   :  { %5033 = vmatprep.subr.bf16.mxu0 %v6181_v44  ;;  %5061 = vmatprep.subr.bf16.mxu1 %v7284_v51 }
 0x498   :  { %5035 = vmatpush1.bf16.msra.mxu0 %v6184_v52  ;;  %5063 = vmatpush3.bf16.msra.mxu1 %v6286_v33 }
 0x499   :  { %5037 = vmatprep.subr.bf16.mxu0 %v6187_v57  ;;  %5064 = vmatprep.subr.bf16.mxu1 %v7284_v51 }
 0x49c   :  { %5039 = vmatpush1.bf16.msra.mxu0 %v6190_v1  ;;  %5066 = vmatpush3.bf16.msra.mxu1 %v6290_v38 }
 0x49d   :  { %5041 = vmatprep.subr.bf16.mxu0 %v6193_v6  ;;  %5067 = vmatprep.subr.bf16.mxu1 %v7284_v51 }
 0x4a0   :  { %5043 = vmatpush1.bf16.msra.mxu0 %v6196_v15  ;;  %5069 = vmatpush3.bf16.msra.mxu1 %v6296_v43 }
 0x4a1   :  { %5045 = vmatprep.subr.bf16.mxu0 %v6199_v20  ;;  %5070 = vmatprep.subr.bf16.mxu1 %v7284_v51 }
 0x4a4   :  { %5047 = vmatpush1.bf16.msra.mxu0 %v6202_v29  ;;  %5072 = vmatpush3.bf16.msra.mxu1 %v6300_v47 }
 0x4a5   :  { %5049 = vmatprep.subr.bf16.mxu0 %v6205_v34  ;;  %5073 = vmatprep.subr.bf16.mxu1 %v7284_v51 }
 0x4a8   :  { %5051 = vmatpush1.bf16.msra.mxu0 %v6208_v41  ;;  %5075 = vmatpush3.bf16.msra.mxu1 %v6304_v50 }
 0x4a9   :  { %5077 = vmatprep.subr.bf16.mxu0 %v6164_v9  ;;  %5108 = vmatprep.subr.bf16.mxu1 %v7284_v51 }
 0x55e   :  { %v1138_v24 = vpop.f32.mrb[8].mxu0  ;;  %v1209_v10 = vpop.f32.mrb[32].mxu1 }
 0x55f   :  { %v1213_v42 = vadd.f32 %v1138_v24, %v6348_v31  ;;  %v1140_v55 = vpop.f32.mrb[9].mxu0  ;;  %v4202_v5 = vpop.f32.mrb[33].mxu1  ;;  %v1227_v11 = vadd.f32 %v6384_v16, %v1209_v10 }
 0x560   :  { %v1220_v49 = vadd.f32 %v1140_v55, %v6350_v36 }
 0x561   :  { %v3613_v61 = vmul.f32 -1.442695, %v1213_v42 }
 0x562   :  { %v3614_v4 = vmul.f32 -1.442695, %v1220_v49 }
 0x563   :  { %5846 = vpow2.f32 %v3613_v61 }
 0x564   :  { %5848 = vpow2.f32 %v3614_v4 }
 0x56d   :  { %v5847_v7 = vpop.eup %5846 }
 0x56e   :  { %v1217_v8 = vadd.f32 1.0, %v5847_v7  ;;  %v5849_v0 = vpop.eup %5848 }
 0x56f   :  { %v1224_v18 = vadd.f32 1.0, %v5849_v0 }
 0x570   :  { %5850 = vrcp.f32 %v1217_v8 }
 0x571   :  { %5852 = vrcp.f32 %v1224_v18 }
 0x57a   :  { %v5851_v14 = vpop.eup %5850 }
 0x57b   :  { %v1228_v2 = vmul.f32 %v5851_v14, %v1227_v11  ;;  %v5853_v23 = vpop.eup %5852 }
 0x57c   :  { %v1231_v12 = vsub.f32 1.0, %v5853_v23  ;;  %v1233_v27 = vmul.f32 %v5853_v23, %v6519_v32 }
 0x57d   :  { %v1229_v31 = vadd.f32 %v1228_v2, %v6375_v46 }
 0x57f   :  { %5854 = vtanh.f32 %v1229_v31 }
 0x589   :  { %v5855_v36 = vpop.eup %5854 }
 0x58a   :  { %v1232_v17 = vmul.f32 %v5855_v36, %v1231_v12  ;;  %v1733_v36 = vld [vmem:[#allocation3 + $0x1b8] sm:$0xff] }
 0x58c   :  { %v6563_v53 = vadd.f32 %v1233_v27, %v1232_v17  ;;  %v1736_v17 = vld [vmem:[#allocation3 + $0x1d0] sm:$0xff] }
 0x58e   :  { %1300 = vmatmul.mubr.f32.vlgmr.msra.gmra.mrb[10].mxu0 %v6563_v53  ;;  %4236 = vmatmul.mubr.f32.vlgmr.msra.gmra.mrb[34].mxu1 %v6563_v53 }
 0x58f   :  { %5079 = vmatpush1.bf16.msra.mxu0 %v6166_v13  ;;  %5110 = vmatpush3.bf16.msra.mxu1 %v6270_v19 }
 0x590   :  { %5081 = vmatprep.subr.bf16.mxu0 %v6170_v22  ;;  %5111 = vmatprep.subr.bf16.mxu1 %v7284_v51 }
 0x591   :  { %1462 = vmatprep.mubr.f32.mxu0 %v7285_v56  ;;  %4270 = vmatprep.mubr.msk.f32.mxu1 %vm6078_vm0, %v7285_v56 }
 0x593   :  { %5083 = vmatpush1.bf16.msra.mxu0 %v6172_v26  ;;  %5113 = vmatpush3.bf16.msra.mxu1 %v6277_v25 }
 0x594   :  { %5085 = vmatprep.subr.bf16.mxu0 %v6175_v35  ;;  %5114 = vmatprep.subr.bf16.mxu1 %v7284_v51 }
 0x597   :  { %5087 = vmatpush1.bf16.msra.mxu0 %v6178_v39  ;;  %5116 = vmatpush3.bf16.msra.mxu1 %v6282_v30 }
 0x598   :  { %5089 = vmatprep.subr.bf16.mxu0 %v6181_v44  ;;  %5117 = vmatprep.subr.bf16.mxu1 %v7284_v51 }
 0x59b   :  { %5091 = vmatpush1.bf16.msra.mxu0 %v6184_v52  ;;  %5119 = vmatpush3.bf16.msra.mxu1 %v6286_v33 }
 0x59c   :  { %5093 = vmatprep.subr.bf16.mxu0 %v6187_v57  ;;  %5120 = vmatprep.subr.bf16.mxu1 %v7284_v51 }
 0x59f   :  { %5095 = vmatpush1.bf16.msra.mxu0 %v6190_v1  ;;  %5122 = vmatpush3.bf16.msra.mxu1 %v6290_v38 }
 0x5a0   :  { %5097 = vmatprep.subr.bf16.mxu0 %v6193_v6  ;;  %5123 = vmatprep.subr.bf16.mxu1 %v7284_v51 }
 0x5a3   :  { %5099 = vmatpush1.bf16.msra.mxu0 %v6196_v15  ;;  %5125 = vmatpush3.bf16.msra.mxu1 %v6296_v43 }
 0x5a4   :  { %5101 = vmatprep.subr.bf16.mxu0 %v6199_v20  ;;  %5126 = vmatprep.subr.bf16.mxu1 %v7284_v51 }
 0x5a7   :  { %5103 = vmatpush1.bf16.msra.mxu0 %v6202_v29  ;;  %5128 = vmatpush3.bf16.msra.mxu1 %v6300_v47 }
 0x5a8   :  { %5105 = vmatprep.subr.bf16.mxu0 %v6205_v34  ;;  %5129 = vmatprep.subr.bf16.mxu1 %v7284_v51 }
 0x5ab   :  { %5107 = vmatpush1.bf16.msra.mxu0 %v6208_v41  ;;  %5131 = vmatpush3.bf16.msra.mxu1 %v6304_v50 }
 0x5ac   :  { %5133 = vmatprep.subr.bf16.mxu0 %v6164_v9  ;;  %5164 = vmatprep.subr.bf16.mxu1 %v7284_v51 }
 0x661   :  { %v1301_v46 = vpop.f32.mrb[10].mxu0  ;;  %v1372_v54 = vpop.f32.mrb[34].mxu1 }
 0x662   :  { %v1376_v24 = vadd.f32 %v1301_v46, %v6352_v40  ;;  %v1303_v10 = vpop.f32.mrb[11].mxu0  ;;  %v4237_v42 = vpop.f32.mrb[35].mxu1  ;;  %v1390_v9 = vadd.f32 %v6384_v16, %v1372_v54  ;;  %v1734_v54 = vld [vmem:[#allocation3 + $0x1c0] sm:$0xff] }
 0x663   :  { %v1383_v55 = vadd.f32 %v1303_v10, %v6354_v45  ;;  %v5192_v42 = vpack.c.bf16 %v1736_v17, %v1733_v36 }
 0x664   :  { %v3615_v5 = vmul.f32 -1.442695, %v1376_v24  ;;  %v1737_v24 = vld [vmem:[#allocation3 + $0x1d8] sm:$0xff] }
 0x665   :  { %v3616_v49 = vmul.f32 -1.442695, %v1383_v55  ;;  %v1732_v55 = vld [vmem:[#allocation3 + $0x1b0] sm:$0xff] }
 0x666   :  { %5856 = vpow2.f32 %v3615_v5  ;;  %v1735_v5 = vld [vmem:[#allocation3 + $0x1c8] sm:$0xff] }
 0x667   :  { %5858 = vpow2.f32 %v3616_v49  ;;  %v5224_v49 = vpack.c.bf16 %v1737_v24, %v1734_v54  ;;  %v1769_v54 = vld [vmem:[#allocation3 + $0x2d8] sm:$0xff]  ;;  %v1772_v24 = vld [vmem:[#allocation3 + $0x2f0] sm:$0xff] }
 0x670   :  { %v5857_v61 = vpop.eup %5856 }
 0x671   :  { %v1380_v4 = vadd.f32 1.0, %v5857_v61  ;;  %v5859_v7 = vpop.eup %5858  ;;  %v1742_v61 = vld [vmem:[#allocation3 + $0x200] sm:$0xff] }
 0x672   :  { %v1387_v8 = vadd.f32 1.0, %v5859_v7  ;;  %v1743_v7 = vld [vmem:[#allocation3 + $0x208] sm:$0xff] }
 0x673   :  { %5860 = vrcp.f32 %v1380_v4  ;;  %v1740_v4 = vld [vmem:[#allocation3 + $0x1f0] sm:$0xff] }
 0x674   :  { %5862 = vrcp.f32 %v1387_v8  ;;  %v5194_v8 = vpack.c.bf16 %v1735_v5, %v1732_v55  ;;  %v5216_v5 = vpack.c.bf16 %v1772_v24, %v1769_v54  ;;  %v2053_v54 = vld [vmem:[#allocation5 + $0x2d0] sm:$0xff]  ;;  %v2056_v24 = vld [vmem:[#allocation5 + $0x2e8] sm:$0xff] }
 0x67d   :  { %v5861_v0 = vpop.eup %5860 }
 0x67e   :  { %v1391_v18 = vmul.f32 %v5861_v0, %v1390_v9  ;;  %v5863_v11 = vpop.eup %5862  ;;  %v5228_v0 = vpack.c.bf16 %v1743_v7, %v1740_v4  ;;  %v2011_v7 = vld [vmem:[#allocation5 + $0x180] sm:$0xff] }
 0x67f   :  { %v1394_v14 = vsub.f32 1.0, %v5863_v11  ;;  %v1396_v31 = vmul.f32 %v5863_v11, %v6563_v53  ;;  %v1745_v11 = vld [vmem:[#allocation3 + $0x218] sm:$0xff] }
 0x680   :  { %v1392_v40 = vadd.f32 %v1391_v18, %v6373_v37  ;;  %v1729_v37 = vld [vmem:[#allocation3 + $0x198] sm:$0xff]  ;;  %v1738_v18 = vld [vmem:[#allocation3 + $0x1e0] sm:$0xff] }
 0x682   :  { %5864 = vtanh.f32 %v1392_v40  ;;  %v1741_v40 = vld [vmem:[#allocation3 + $0x1f8] sm:$0xff] }
 0x68c   :  { %v5865_v45 = vpop.eup %5864 }
 0x68d   :  { %v1395_v2 = vmul.f32 %v5865_v45, %v1394_v14  ;;  %v1748_v14 = vld [vmem:[#allocation3 + $0x230] sm:$0xff]  ;;  %v1746_v45 = vld [vmem:[#allocation3 + $0x220] sm:$0xff] }
 0x68f   :  { %v6607_v23 = vadd.f32 %v1396_v31, %v1395_v2  ;;  %v1749_v2 = vld [vmem:[#allocation3 + $0x238] sm:$0xff]  ;;  %v5198_v31 = vpack.c.bf16 %v1741_v40, %v1738_v18  ;;  %v2020_v18 = vld [vmem:[#allocation5 + $0x1c8] sm:$0xff] }
 0x691   :  { %1463 = vmatmul.mubr.f32.vlgmr.msra.gmra.mrb[12].mxu0 %v6607_v23  ;;  %4271 = vmatmul.mubr.f32.vlgmr.msra.gmra.mrb[36].mxu1 %v6607_v23 }
 0x692   :  { %5135 = vmatpush1.bf16.msra.mxu0 %v6166_v13  ;;  %5166 = vmatpush3.bf16.msra.mxu1 %v6270_v19  ;;  %v1727_v13 = vld [vmem:[#allocation3 + $0x188] sm:$0xff] }
 0x693   :  { %5137 = vmatprep.subr.bf16.mxu0 %v6170_v22  ;;  %5167 = vmatprep.subr.bf16.mxu1 %v7284_v51  ;;  %v1730_v22 = vld [vmem:[#allocation3 + $0x1a0] sm:$0xff] }
 0x694   :  { %1625 = vmatprep.mubr.f32.mxu0 %v7285_v56  ;;  %4305 = vmatprep.mubr.msk.f32.mxu1 %vm6078_vm0, %v7285_v56 }
 0x696   :  { %5139 = vmatpush1.bf16.msra.mxu0 %v6172_v26  ;;  %5169 = vmatpush3.bf16.msra.mxu1 %v6277_v25  ;;  %v1728_v26 = vld [vmem:[#allocation3 + $0x190] sm:$0xff] }
 0x697   :  { %5141 = vmatprep.subr.bf16.mxu0 %v6175_v35  ;;  %5170 = vmatprep.subr.bf16.mxu1 %v7284_v51  ;;  %v5188_v35 = vpack.c.bf16 %v1730_v22, %v1727_v13  ;;  %v5200_v13 = vpack.c.bf16 %v1748_v14, %v1745_v11  ;;  %v5232_v22 = vpack.c.bf16 %v1749_v2, %v1746_v45  ;;  %v2024_v11 = vld [vmem:[#allocation5 + $0x1e8] sm:$0xff]  ;;  %v2027_v14 = vld [vmem:[#allocation5 + $0x200] sm:$0xff] }
 0x698   :  { %v6688_v45 = vpack.c.bf16 %v2027_v14, %v2024_v11  ;;  %v2023_v2 = vld [vmem:[#allocation5 + $0x1e0] sm:$0xff]  ;;  %v2049_v11 = vld [vmem:[#allocation5 + $0x2b0] sm:$0xff]  ;;  %v2052_v14 = vld [vmem:[#allocation5 + $0x2c8] sm:$0xff] }
 0x69a   :  { %5143 = vmatpush1.bf16.msra.mxu0 %v6178_v39  ;;  %5172 = vmatpush3.bf16.msra.mxu1 %v6282_v30  ;;  %v1731_v39 = vld [vmem:[#allocation3 + $0x1a8] sm:$0xff] }
 0x69b   :  { %5145 = vmatprep.subr.bf16.mxu0 %v6181_v44  ;;  %5173 = vmatprep.subr.bf16.mxu1 %v7284_v51  ;;  %v5220_v44 = vpack.c.bf16 %v1731_v39, %v1728_v26  ;;  %v1744_v26 = vld [vmem:[#allocation3 + $0x210] sm:$0xff]  ;;  %v1751_v39 = vld [vmem:[#allocation3 + $0x248] sm:$0xff] }
 0x69e   :  { %5147 = vmatpush1.bf16.msra.mxu0 %v6184_v52  ;;  %5175 = vmatpush3.bf16.msra.mxu1 %v6286_v33 }
 0x69f   :  { %5149 = vmatprep.subr.bf16.mxu0 %v6187_v57  ;;  %5176 = vmatprep.subr.bf16.mxu1 %v7284_v51 }
 0x6a2   :  { %5151 = vmatpush1.bf16.msra.mxu0 %v6190_v1  ;;  %5178 = vmatpush3.bf16.msra.mxu1 %v6290_v38 }
 0x6a3   :  { %5153 = vmatprep.subr.bf16.mxu0 %v6193_v6  ;;  %5179 = vmatprep.subr.bf16.mxu1 %v7284_v51 }
 0x6a6   :  { %5155 = vmatpush1.bf16.msra.mxu0 %v6196_v15  ;;  %5181 = vmatpush3.bf16.msra.mxu1 %v6296_v43 }
 0x6a7   :  { %5157 = vmatprep.subr.bf16.mxu0 %v6199_v20  ;;  %5182 = vmatprep.subr.bf16.mxu1 %v7284_v51 }
 0x6aa   :  { %5159 = vmatpush1.bf16.msra.mxu0 %v6202_v29  ;;  %5184 = vmatpush3.bf16.msra.mxu1 %v6300_v47 }
 0x6ab   :  { %5161 = vmatprep.subr.bf16.mxu0 %v6205_v34  ;;  %5185 = vmatprep.subr.bf16.mxu1 %v7284_v51 }
 0x6ae   :  { %5163 = vmatpush1.bf16.msra.mxu0 %v6208_v41  ;;  %5187 = vmatpush3.bf16.msra.mxu1 %v6304_v50 }
 0x6af   :  { %5189 = vmatprep.subr.bf16.mxu0 %v5188_v35  ;;  %5221 = vmatprep.subr.bf16.mxu1 %v5220_v44  ;;  %v1747_v35 = vld [vmem:[#allocation3 + $0x228] sm:$0xff] }
 0x764   :  { %v1464_v52 = vpop.f32.mrb[12].mxu0  ;;  %v1535_v57 = vpop.f32.mrb[36].mxu1 }
 0x765   :  { %v1539_v1 = vadd.f32 %v1464_v52, %v6356_v48  ;;  %v1466_v6 = vpop.f32.mrb[13].mxu0  ;;  %v4272_v15 = vpop.f32.mrb[37].mxu1  ;;  %v1553_v33 = vadd.f32 %v6384_v16, %v1535_v57  ;;  %v1752_v52 = vld [vmem:[#allocation3 + $0x250] sm:$0xff]  ;;  %v1755_v57 = vld [vmem:[#allocation3 + $0x268] sm:$0xff] }
 0x766   :  { %v1546_v20 = vadd.f32 %v1466_v6, %v6359_v60  ;;  %v1726_v60 = vld [vmem:[#allocation3 + $0x180] sm:$0xff]  ;;  %v5236_v15 = vpack.c.bf16 %v1755_v57, %v1752_v52  ;;  %v2036_v57 = vld [vmem:[#allocation5 + $0x248] sm:$0xff] }
 0x767   :  { %v3617_v29 = vmul.f32 -1.442695, %v1539_v1  ;;  %v5190_v10 = vpack.c.bf16 %v1729_v37, %v1726_v60  ;;  %v5202_v1 = vpack.c.bf16 %v1747_v35, %v1744_v26  ;;  %v1764_v60 = vld [vmem:[#allocation3 + $0x2b0] sm:$0xff]  ;;  %v1767_v37 = vld [vmem:[#allocation3 + $0x2c8] sm:$0xff] }
 0x768   :  { %v3618_v34 = vmul.f32 -1.442695, %v1546_v20  ;;  %v1750_v20 = vld [vmem:[#allocation3 + $0x240] sm:$0xff]  ;;  %v5244_v17 = vpack.c.bf16 %v1767_v37, %v1764_v60  ;;  %v2033_v26 = vld [vmem:[#allocation5 + $0x230] sm:$0xff]  ;;  %v2016_v37 = vld [vmem:[#allocation5 + $0x1a8] sm:$0xff] }
 0x769   :  { %5866 = vpow2.f32 %v3617_v29  ;;  %v1753_v29 = vld [vmem:[#allocation3 + $0x258] sm:$0xff]  ;;  %v2013_v60 = vld [vmem:[#allocation5 + $0x190] sm:$0xff] }
 0x76a   :  { %5868 = vpow2.f32 %v3618_v34  ;;  %v1757_v34 = vld [vmem:[#allocation3 + $0x278] sm:$0xff] }
 0x773   :  { %v5867_v41 = vpop.eup %5866 }
 0x774   :  { %v1543_v19 = vadd.f32 1.0, %v5867_v41  ;;  %v5869_v25 = vpop.eup %5868  ;;  %v1760_v41 = vld [vmem:[#allocation3 + $0x290] sm:$0xff] }
 0x775   :  { %v1550_v30 = vadd.f32 1.0, %v5869_v25  ;;  %v1761_v25 = vld [vmem:[#allocation3 + $0x298] sm:$0xff] }
 0x776   :  { %5870 = vrcp.f32 %v1543_v19  ;;  %v1758_v19 = vld [vmem:[#allocation3 + $0x280] sm:$0xff] }
 0x777   :  { %5872 = vrcp.f32 %v1550_v30  ;;  %v5206_v30 = vpack.c.bf16 %v1753_v29, %v1750_v20  ;;  %v2038_v20 = vld [vmem:[#allocation5 + $0x258] sm:$0xff] }
 0x780   :  { %v5871_v38 = vpop.eup %5870 }
 0x781   :  { %v1554_v43 = vmul.f32 %v5871_v38, %v1553_v33  ;;  %v5873_v50 = vpop.eup %5872  ;;  %v5208_v33 = vpack.c.bf16 %v1760_v41, %v1757_v34  ;;  %v5240_v38 = vpack.c.bf16 %v1761_v25, %v1758_v19  ;;  %v2042_v34 = vld [vmem:[#allocation5 + $0x278] sm:$0xff]  ;;  %v2045_v41 = vld [vmem:[#allocation5 + $0x290] sm:$0xff] }
 0x782   :  { %v1557_v48 = vsub.f32 1.0, %v5873_v50  ;;  %v1559_v46 = vmul.f32 %v5873_v50, %v6607_v23  ;;  %v1763_v50 = vld [vmem:[#allocation3 + $0x2a8] sm:$0xff]  ;;  %v6706_v19 = vpack.c.bf16 %v2045_v41, %v2042_v34  ;;  %v2041_v25 = vld [vmem:[#allocation5 + $0x270] sm:$0xff] }
 0x783   :  { %v1555_v47 = vadd.f32 %v1554_v43, %v6379_v63  ;;  %v1739_v63 = vld [vmem:[#allocation3 + $0x1e8] sm:$0xff]  ;;  %v1756_v43 = vld [vmem:[#allocation3 + $0x270] sm:$0xff] }
 0x784   :  { %v5196_v9 = vpack.c.bf16 %v1742_v61, %v1739_v63  ;;  %v1771_v61 = vld [vmem:[#allocation3 + $0x2e8] sm:$0xff] }
 0x785   :  { %5874 = vtanh.f32 %v1555_v47  ;;  %v1759_v47 = vld [vmem:[#allocation3 + $0x288] sm:$0xff] }
 0x78f   :  { %v5875_v12 = vpop.eup %5874 }
 0x790   :  { %v1558_v27 = vmul.f32 %v5875_v12, %v1557_v48  ;;  %v1766_v48 = vld [vmem:[#allocation3 + $0x2c0] sm:$0xff]  ;;  %v5210_v12 = vpack.c.bf16 %v1759_v47, %v1756_v43 }
 0x791   :  { %v5212_v36 = vpack.c.bf16 %v1766_v48, %v1763_v50  ;;  %v2051_v43 = vld [vmem:[#allocation5 + $0x2c0] sm:$0xff]  ;;  %v2050_v48 = vld [vmem:[#allocation5 + $0x2b8] sm:$0xff] }
 0x792   :  { %v6649_v16 = vadd.f32 %v1559_v46, %v1558_v27  ;;  %v1762_v27 = vld [vmem:[#allocation3 + $0x2a0] sm:$0xff]  ;;  %v1765_v46 = vld [vmem:[#allocation3 + $0x2b8] sm:$0xff] }
 0x793   :  { %v5214_v55 = vpack.c.bf16 %v1765_v46, %v1762_v27  ;;  %v2047_v47 = vld [vmem:[#allocation5 + $0x2a0] sm:$0xff]  ;;  %v2057_v27 = vld [vmem:[#allocation5 + $0x2f0] sm:$0xff] }
 0x794   :  { %1626 = vmatmul.mubr.f32.vlgmr.msra.gmra.mrb[14].mxu0 %v6649_v16  ;;  %4306 = vmatmul.mubr.f32.vlgmr.msra.gmra.mrb[38].mxu1 %v6649_v16 }
 0x795   :  { %5191 = vmatpush1.bf16.msra.mxu0 %v5190_v10  ;;  %5223 = vmatpush3.bf16.msra.mxu1 %v5220_v44  ;;  %v1754_v44 = vld [vmem:[#allocation3 + $0x260] sm:$0xff] }
 0x796   :  { %4340 = vmatprep.mubr.f32.mxu1 %v6387_v21  ;;  %5193 = vmatprep.subr.bf16.mxu0 %v5192_v42  ;;  %v5204_v6 = vpack.c.bf16 %v1754_v44, %v1751_v39  ;;  %v1770_v10 = vld [vmem:[#allocation3 + $0x2e0] sm:$0xff]  ;;  %v1773_v42 = vld [vmem:[#allocation3 + $0x2f8] sm:$0xff]  ;;  %v2029_v39 = vld [vmem:[#allocation5 + $0x210] sm:$0xff] }
 0x797   :  { %5225 = vmatprep.subr.bf16.mxu1 %v5224_v49  ;;  %1856 = vmatprep.mubr.f32.mxu0 %v7285_v56  ;;  %v5248_v63 = vpack.c.bf16 %v1773_v42, %v1770_v10  ;;  %v2032_v44 = vld [vmem:[#allocation5 + $0x228] sm:$0xff]  ;;  %v6725_v10 = vpack.c.bf16 %v2056_v24, %v2053_v54  ;;  %v2019_v42 = vld [vmem:[#allocation5 + $0x1c0] sm:$0xff] }
 0x798   :  { %v6696_v52 = vpack.c.bf16 %v2032_v44, %v2029_v39 }
 0x799   :  { %5195 = vmatpush1.bf16.msra.mxu0 %v5194_v8  ;;  %5227 = vmatpush3.bf16.msra.mxu1 %v5224_v49  ;;  %v1768_v49 = vld [vmem:[#allocation3 + $0x2d0] sm:$0xff] }
 0x79a   :  { %5197 = vmatprep.subr.bf16.mxu0 %v5196_v9  ;;  %5229 = vmatprep.subr.bf16.mxu1 %v5228_v0  ;;  %v5218_v4 = vpack.c.bf16 %v1771_v61, %v1768_v49  ;;  %v2028_v49 = vld [vmem:[#allocation5 + $0x208] sm:$0xff]  ;;  %v2031_v61 = vld [vmem:[#allocation5 + $0x220] sm:$0xff] }
 0x79d   :  { %5199 = vmatpush1.bf16.msra.mxu0 %v5198_v31  ;;  %5231 = vmatpush3.bf16.msra.mxu1 %v5228_v0  ;;  %v2017_v0 = vld [vmem:[#allocation5 + $0x1b0] sm:$0xff]  ;;  %v2026_v31 = vld [vmem:[#allocation5 + $0x1f8] sm:$0xff] }
 0x79e   :  { %5201 = vmatprep.subr.bf16.mxu0 %v5200_v13  ;;  %5233 = vmatprep.subr.bf16.mxu1 %v5232_v22  ;;  %v6684_v40 = vpack.c.bf16 %v2020_v18, %v2017_v0  ;;  %v6690_v13 = vpack.c.bf16 %v2026_v31, %v2023_v2  ;;  %v2046_v0 = vld [vmem:[#allocation5 + $0x298] sm:$0xff]  ;;  %v6748_v2 = vpack.c.bf16 %v2052_v14, %v2049_v11  ;;  %v2055_v31 = vld [vmem:[#allocation5 + $0x2e0] sm:$0xff] }
 0x7a1   :  { %5203 = vmatpush1.bf16.msra.mxu0 %v5202_v1  ;;  %5235 = vmatpush3.bf16.msra.mxu1 %v5232_v22  ;;  %v2030_v22 = vld [vmem:[#allocation5 + $0x218] sm:$0xff]  ;;  %v2039_v1 = vld [vmem:[#allocation5 + $0x260] sm:$0xff] }
 0x7a2   :  { %5205 = vmatprep.subr.bf16.mxu0 %v5204_v6  ;;  %5237 = vmatprep.subr.bf16.mxu1 %v5236_v15  ;;  %v6694_v35 = vpack.c.bf16 %v2033_v26, %v2030_v22  ;;  %v6700_v6 = vpack.c.bf16 %v2039_v1, %v2036_v57  ;;  %v2058_v22 = vld [vmem:[#allocation5 + $0x2f8] sm:$0xff] }
 0x7a3   :  { %v6752_v26 = vpack.c.bf16 %v2058_v22, %v2055_v31 }
 0x7a5   :  { %5207 = vmatpush1.bf16.msra.mxu0 %v5206_v30  ;;  %5239 = vmatpush3.bf16.msra.mxu1 %v5236_v15  ;;  %v2035_v15 = vld [vmem:[#allocation5 + $0x240] sm:$0xff]  ;;  %v2044_v30 = vld [vmem:[#allocation5 + $0x288] sm:$0xff] }
 0x7a6   :  { %5209 = vmatprep.subr.bf16.mxu0 %v5208_v33  ;;  %5241 = vmatprep.subr.bf16.mxu1 %v5240_v38  ;;  %v6702_v29 = vpack.c.bf16 %v2038_v20, %v2035_v15  ;;  %v6708_v33 = vpack.c.bf16 %v2044_v30, %v2041_v25 }
 0x7a9   :  { %5211 = vmatpush1.bf16.msra.mxu0 %v5210_v12  ;;  %5243 = vmatpush3.bf16.msra.mxu1 %v5240_v38  ;;  %v2048_v38 = vld [vmem:[#allocation5 + $0x2a8] sm:$0xff]  ;;  %v6714_v12 = vpack.c.bf16 %v2050_v48, %v2047_v47  ;;  %v5998_v47 = vld [vmem:[%s7270_s4] ss:$0 sm:$0xff] }
 0x7aa   :  { %5213 = vmatprep.subr.bf16.mxu0 %v5212_v36  ;;  %5245 = vmatprep.subr.bf16.mxu1 %v5244_v17  ;;  %v6712_v50 = vpack.c.bf16 %v2051_v43, %v2048_v38  ;;  %v6716_v36 = vpack.c.bf16 %v2016_v37, %v2013_v60 }
 0x7ad   :  { %5215 = vmatpush1.bf16.msra.mxu0 %v5214_v55  ;;  %5247 = vmatpush3.bf16.msra.mxu1 %v5244_v17  ;;  %v2054_v17 = vld [vmem:[#allocation5 + $0x2d8] sm:$0xff] }
 0x7ae   :  { %5217 = vmatprep.subr.bf16.mxu0 %v5216_v5  ;;  %5249 = vmatprep.subr.bf16.mxu1 %v5248_v63  ;;  %v6719_v46 = vpack.c.bf16 %v2057_v27, %v2054_v17  ;;  %v2022_v55 = vld [vmem:[#allocation5 + $0x1d8] sm:$0xff] }
 0x7af   :  { %v6727_v5 = vpack.c.bf16 %v2022_v55, %v2019_v42 }
 0x7b1   :  { %5219 = vmatpush1.bf16.msra.mxu0 %v5218_v4  ;;  %5251 = vmatpush3.bf16.msra.mxu1 %v5248_v63  ;;  %v2025_v63 = vld [vmem:[#allocation5 + $0x1f0] sm:$0xff] }
 0x7b2   :  { %5284 = vmatprep.subr.bf16.mxu1 %v7284_v51  ;;  %v6733_v4 = vpack.c.bf16 %v2028_v49, %v2025_v63 }
 0x7b4   :  { %1857 = vmatmul.mubr.f32.vlgmr.msra.gmra.mrb[16].mxu0 %v6387_v21  ;;  %4341 = vmatmul.mubr.f32.vlgmr.msra.gmra.mrb[40].mxu1 %v6431_v28  ;;  %v2012_v21 = vld [vmem:[#allocation5 + $0x188] sm:$0xff] }
 0x7b5   :  { %4343 = vmatprep.mubr.f32.mxu1 %v6475_v58  ;;  %1862 = vmatprep.mubr.f32.mxu0 %v7285_v56 }
 0x7b6   :  { %5286 = vmatpush3.bf16.msra.mxu1 %v6716_v36 }
 0x7b7   :  { %5287 = vmatprep.subr.bf16.mxu1 %v7284_v51 }
 0x7b8   :  { %1863 = vmatmul.mubr.f32.gmra.mrb[18].mxu0 %v6431_v28  ;;  %4344 = vmatmul.mubr.f32.gmra.mrb[42].mxu1 %v6519_v32  ;;  %v2015_v28 = vld [vmem:[#allocation5 + $0x1a0] sm:$0xff] }
 0x7b9   :  { %4346 = vmatprep.mubr.f32.mxu1 %v6563_v53  ;;  %1868 = vmatprep.mubr.f32.mxu0 %v7285_v56 }
 0x7ba   :  { %5289 = vmatpush3.bf16.msra.mxu1 %v6727_v5 }
 0x7bb   :  { %5290 = vmatprep.subr.bf16.mxu1 %v7284_v51 }
 0x7bc   :  { %1869 = vmatmul.mubr.f32.gmra.mrb[20].mxu0 %v6475_v58  ;;  %4347 = vmatmul.mubr.f32.gmra.mrb[44].mxu1 %v6607_v23  ;;  %v6676_v58 = vpack.c.bf16 %v2015_v28, %v2012_v21  ;;  %v2034_v21 = vld [vmem:[#allocation5 + $0x238] sm:$0xff] }
 0x7bd   :  { %4349 = vmatprep.mubr.f32.mxu1 %v6649_v16  ;;  %1874 = vmatprep.mubr.f32.mxu0 %v7285_v56  ;;  %v6736_v28 = vpack.c.bf16 %v2034_v21, %v2031_v61 }
 0x7be   :  { %5253 = vmatprep.subr.bf16.mxu0 %v6676_v58  ;;  %5292 = vmatpush3.bf16.msra.mxu1 %v6733_v4 }
 0x7bf   :  { %5293 = vmatprep.subr.bf16.mxu1 %v7284_v51 }
 0x7c0   :  { %1875 = vmatmul.mubr.f32.gmra.mrb[22].mxu0 %v6519_v32  ;;  %v2014_v32 = vld [vmem:[#allocation5 + $0x198] sm:$0xff] }
 0x7c1   :  { %1880 = vmatprep.mubr.f32.mxu0 %v7285_v56  ;;  %v6678_v8 = vpack.c.bf16 %v2014_v32, %v2011_v7  ;;  %v2037_v7 = vld [vmem:[#allocation5 + $0x250] sm:$0xff]  ;;  %v2040_v32 = vld [vmem:[#allocation5 + $0x268] sm:$0xff] }
 0x7c2   :  { %5295 = vmatpush3.bf16.msra.mxu1 %v6736_v28 }
 0x7c3   :  { %5255 = vmatpush1.bf16.msra.mxu0 %v6678_v8  ;;  %5296 = vmatprep.subr.bf16.mxu1 %v7284_v51 }
 0x7c4   :  { %1881 = vmatmul.mubr.f32.gmra.mrb[24].mxu0 %v6563_v53  ;;  %v2018_v53 = vld [vmem:[#allocation5 + $0x1b8] sm:$0xff] }
 0x7c5   :  { %1886 = vmatprep.mubr.f32.mxu0 %v7285_v56 }
 0x7c8   :  { %1887 = vmatmul.mubr.f32.gmra.mrb[26].mxu0 %v6607_v23  ;;  %v2021_v23 = vld [vmem:[#allocation5 + $0x1d0] sm:$0xff] }
 0x7c9   :  { %1892 = vmatprep.mubr.f32.mxu0 %v7285_v56  ;;  %v6682_v9 = vpack.c.bf16 %v2021_v23, %v2018_v53  ;;  %v6740_v53 = vpack.c.bf16 %v2040_v32, %v2037_v7  ;;  %v2043_v23 = vld [vmem:[#allocation5 + $0x280] sm:$0xff] }
 0x7ca   :  { %v6744_v18 = vpack.c.bf16 %v2046_v0, %v2043_v23  ;;  %v7286_v23 = vld [vmem:[#allocation10_spill] sm:$0xff] }
 0x7cb   :  { %5257 = vmatprep.subr.bf16.mxu0 %v6682_v9  ;;  %5298 = vmatpush3.bf16.msra.mxu1 %v6740_v53  ;;  %v7287_v0 = vsub.s32 0, %v7286_v23  ;;  %v7288_v31 = vsub.s32 1, %v7286_v23 }
 0x7cc   :  { %1893 = vmatmul.mubr.f32.gmra.mrb[28].mxu0 %v6649_v16  ;;  %5299 = vmatprep.subr.bf16.mxu1 %v7284_v51 }
 0x7cd   :  { %1898 = vmatprep.mubr.f32.mxu0 %v7285_v56  ;;  %5259 = vmatpush1.bf16.msra.mxu0 %v6684_v40 }
 0x7ce   :  { %5261 = vmatprep.subr.bf16.mxu0 %v6688_v45 }
 0x7cf   :  { %5301 = vmatpush3.bf16.msra.mxu1 %v6744_v18 }
 0x7d0   :  { %5302 = vmatprep.subr.bf16.mxu1 %v7284_v51 }
 0x7d1   :  { %5263 = vmatpush1.bf16.msra.mxu0 %v6690_v13 }
 0x7d2   :  { %5265 = vmatprep.subr.bf16.mxu0 %v6694_v35 }
 0x7d3   :  { %5304 = vmatpush3.bf16.msra.mxu1 %v6748_v2 }
 0x7d4   :  { %5305 = vmatprep.subr.bf16.mxu1 %v7284_v51 }
 0x7d5   :  { %5267 = vmatpush1.bf16.msra.mxu0 %v6696_v52 }
 0x7d6   :  { %5269 = vmatprep.subr.bf16.mxu0 %v6700_v6 }
 0x7d7   :  { %5307 = vmatpush3.bf16.msra.mxu1 %v6752_v26 }
 0x7d8   :  { %5340 = vmatprep.subr.bf16.mxu1 %v7284_v51 }
 0x7d9   :  { %5271 = vmatpush1.bf16.msra.mxu0 %v6702_v29 }
 0x7da   :  { %5273 = vmatprep.subr.bf16.mxu0 %v6706_v19 }
 0x7dd   :  { %5275 = vmatpush1.bf16.msra.mxu0 %v6708_v33 }
 0x7de   :  { %5277 = vmatprep.subr.bf16.mxu0 %v6712_v50 }
 0x7e1   :  { %5279 = vmatpush1.bf16.msra.mxu0 %v6714_v12 }
 0x7e2   :  { %5281 = vmatprep.subr.bf16.mxu0 %v6719_v46 }
 0x7e5   :  { %5283 = vmatpush1.bf16.msra.mxu0 %v6725_v10 }
 0x7e6   :  { %5309 = vmatprep.subr.bf16.mxu0 %v6676_v58 }
 0x867   :  { %v1627_v39 = vpop.f32.mrb[14].mxu0  ;;  %v1698_v44 = vpop.f32.mrb[38].mxu1 }
 0x868   :  { %v1702_v57 = vadd.f32 %v1627_v39, %v6361_v62  ;;  %v1629_v1 = vpop.f32.mrb[15].mxu0  ;;  %v4307_v15 = vpop.f32.mrb[39].mxu1  ;;  %v1716_v48 = vadd.f32 %v5998_v47, %v1698_v44 }
 0x869   :  { %v1709_v20 = vadd.f32 %v1629_v1, %v6365_v3 }
 0x86a   :  { %v3619_v34 = vmul.f32 -1.442695, %v1702_v57 }
 0x86b   :  { %v3620_v41 = vmul.f32 -1.442695, %v1709_v20 }
 0x86c   :  { %5876 = vpow2.f32 %v3619_v34 }
 0x86d   :  { %5878 = vpow2.f32 %v3620_v41 }
 0x876   :  { %v5877_v25 = vpop.eup %5876 }
 0x877   :  { %v1706_v30 = vadd.f32 1.0, %v5877_v25  ;;  %v5879_v38 = vpop.eup %5878 }
 0x878   :  { %v1713_v43 = vadd.f32 1.0, %v5879_v38  ;;  %v6833_v38 = vld [vmem:[%s7270_s4 + $0x1] ss:$0 sm:$0xff] }
 0x879   :  { %5880 = vrcp.f32 %v1706_v30 }
 0x87a   :  { %5882 = vrcp.f32 %v1713_v43  ;;  %v7289_v43 = vsub.s32 2, %v7286_v23 }
 0x883   :  { %v5881_v60 = vpop.eup %5880 }
 0x884   :  { %v1717_v62 = vmul.f32 %v5881_v60, %v1716_v48  ;;  %v5883_v24 = vpop.eup %5882 }
 0x885   :  { %v1720_v63 = vsub.f32 1.0, %v5883_v24  ;;  %v1722_v21 = vmul.f32 %v5883_v24, %v6649_v16  ;;  %v1775_v16 = vld [vmem:[#allocation7 + $0x3] sm:$0x7] }
 0x886   :  { %v1718_v37 = vadd.f32 %v1717_v62, %v6377_v59  ;;  %v6822_v11 = vrot.slane %v1775_v16, %v7287_v0  ;;  %v6826_v22 = vrot.slane %v1775_v16, %v7288_v31  ;;  %v6837_v47 = vrot.slane %v1775_v16, %v7289_v43 }
 0x887   :  { %v6763_v3 = vpop.f32.mrb[40].mxu1 }
 0x888   :  { %5884 = vtanh.f32 %v1718_v37  ;;  %v6765_v17 = vpop.f32.mrb[41].mxu1  ;;  %v1977_v43 = vadd.f32 %v6763_v3, %v6837_v47 }
 0x889   :  { %v1972_v37 = vadd.f32 %v6765_v17, %v6837_v47 }
 0x88b   :  { %v6767_v27 = vpop.f32.mrb[42].mxu1 }
 0x88c   :  { %v6769_v54 = vpop.f32.mrb[43].mxu1 }
 0x88f   :  { %v6771_v42 = vpop.f32.mrb[44].mxu1 }
 0x890   :  { %v6773_v55 = vpop.f32.mrb[45].mxu1 }
 0x892   :  { %v5885_v49 = vpop.eup %5884 }
 0x893   :  { %v1721_v61 = vmul.f32 %v5885_v49, %v1720_v63 }
 0x895   :  { %v1723_v59 = vadd.f32 %v1722_v21, %v1721_v61 }
 0x897   :  { %1899 = vmatmul.mubr.f32.gmra.mrb[30].mxu0 %v1723_v59  ;;  %4350 = vmatmul.mubr.f32.gmra.mrb[46].mxu1 %v1723_v59 }
 0x898   :  { %2127 = vmatprep.mubr.f32.mxu0 %v7285_v56  ;;  %4384 = vmatprep.mubr.msk.f32.mxu1 %vm6078_vm0, %v7285_v56 }
 0x89b   :  { %2128 = vmatmul.mubr.f32.vlgmr.msra.gmra.mrb[16].mxu0 %v7285_v56  ;;  %4385 = vmatmul.mubr.f32.vlgmr.msra.gmra.mrb[48].mxu1 %v7285_v56 }
 0x89c   :  { %5311 = vmatpush1.bf16.msra.mxu0 %v6678_v8  ;;  %5342 = vmatpush3.bf16.msra.mxu1 %v6716_v36 }
 0x89d   :  { %5313 = vmatprep.subr.bf16.mxu0 %v6682_v9  ;;  %5343 = vmatprep.subr.bf16.mxu1 %v7284_v51 }
 0x89e   :  { %2296 = vmatprep.mubr.f32.mxu0 %v7285_v56  ;;  %4419 = vmatprep.mubr.msk.f32.mxu1 %vm6078_vm0, %v7285_v56 }
 0x8a0   :  { %5315 = vmatpush1.bf16.msra.mxu0 %v6684_v40  ;;  %5345 = vmatpush3.bf16.msra.mxu1 %v6727_v5 }
 0x8a1   :  { %5317 = vmatprep.subr.bf16.mxu0 %v6688_v45  ;;  %5346 = vmatprep.subr.bf16.mxu1 %v7284_v51 }
 0x8a4   :  { %5319 = vmatpush1.bf16.msra.mxu0 %v6690_v13  ;;  %5348 = vmatpush3.bf16.msra.mxu1 %v6733_v4 }
 0x8a5   :  { %5321 = vmatprep.subr.bf16.mxu0 %v6694_v35  ;;  %5349 = vmatprep.subr.bf16.mxu1 %v7284_v51 }
 0x8a8   :  { %5323 = vmatpush1.bf16.msra.mxu0 %v6696_v52  ;;  %5351 = vmatpush3.bf16.msra.mxu1 %v6736_v28 }
 0x8a9   :  { %5325 = vmatprep.subr.bf16.mxu0 %v6700_v6  ;;  %5352 = vmatprep.subr.bf16.mxu1 %v7284_v51 }
 0x8ac   :  { %5327 = vmatpush1.bf16.msra.mxu0 %v6702_v29  ;;  %5354 = vmatpush3.bf16.msra.mxu1 %v6740_v53 }
 0x8ad   :  { %5329 = vmatprep.subr.bf16.mxu0 %v6706_v19  ;;  %5355 = vmatprep.subr.bf16.mxu1 %v7284_v51 }
 0x8b0   :  { %5331 = vmatpush1.bf16.msra.mxu0 %v6708_v33  ;;  %5357 = vmatpush3.bf16.msra.mxu1 %v6744_v18 }
 0x8b1   :  { %5333 = vmatprep.subr.bf16.mxu0 %v6712_v50  ;;  %5358 = vmatprep.subr.bf16.mxu1 %v7284_v51 }
 0x8b4   :  { %5335 = vmatpush1.bf16.msra.mxu0 %v6714_v12  ;;  %5360 = vmatpush3.bf16.msra.mxu1 %v6748_v2 }
 0x8b5   :  { %5337 = vmatprep.subr.bf16.mxu0 %v6719_v46  ;;  %5361 = vmatprep.subr.bf16.mxu1 %v7284_v51 }
 0x8b8   :  { %5339 = vmatpush1.bf16.msra.mxu0 %v6725_v10  ;;  %5363 = vmatpush3.bf16.msra.mxu1 %v6752_v26 }
 0x8b9   :  { %5365 = vmatprep.subr.bf16.mxu0 %v6676_v58  ;;  %5396 = vmatprep.subr.bf16.mxu1 %v7284_v51 }
 0x96a   :  { %v6816_v7 = vpop.f32.mrb[46].mxu1 }
 0x96b   :  { %v6818_v32 = vpop.f32.mrb[47].mxu1 }
 0x96e   :  { %v2129_v14 = vpop.f32.mrb[16].mxu0  ;;  %v2200_v39 = vpop.f32.mrb[48].mxu1 }
 0x96f   :  { %v5764_v44 = vadd.f32 %v2129_v14, %v6822_v11  ;;  %v2131_v57 = vpop.f32.mrb[17].mxu0  ;;  %v4386_v1 = vpop.f32.mrb[49].mxu1  ;;  %v2224_v60 = vadd.f32 %v6833_v38, %v2200_v39 }
 0x970   :  { %v5765_v20 = vadd.f32 %v2131_v57, %v6826_v22 }
 0x971   :  { %v3622_v15 = vmul.f32 -1.442695, %v5764_v44 }
 0x972   :  { %v3623_v34 = vmul.f32 -1.442695, %v5765_v20 }
 0x973   :  { %5886 = vpow2.f32 %v3622_v15 }
 0x974   :  { %5888 = vpow2.f32 %v3623_v34 }
 0x97d   :  { %v5887_v41 = vpop.eup %5886 }
 0x97e   :  { %v2208_v25 = vadd.f32 1.0, %v5887_v41  ;;  %v5889_v30 = vpop.eup %5888 }
 0x97f   :  { %v2215_v48 = vadd.f32 1.0, %v5889_v30 }
 0x980   :  { %5890 = vrcp.f32 %v2208_v25 }
 0x981   :  { %5892 = vrcp.f32 %v2215_v48 }
 0x98a   :  { %v5891_v62 = vpop.eup %5890 }
 0x98b   :  { %v2225_v24 = vmul.f32 %v5891_v62, %v2224_v60  ;;  %v5893_v49 = vpop.eup %5892 }
 0x98c   :  { %v2228_v61 = vsub.f32 1.0, %v5893_v49  ;;  %v2230_v0 = vmul.f32 0.0, %v5893_v49 }
 0x98d   :  { %v2226_v63 = vadd.f32 %v2225_v24, %v1972_v37 }
 0x98f   :  { %5894 = vtanh.f32 %v2226_v63 }
 0x999   :  { %v5895_v21 = vpop.eup %5894 }
 0x99a   :  { %v2229_v59 = vmul.f32 %v5895_v21, %v2228_v61 }
 0x99c   :  { %v6842_v14 = vadd.f32 %v2230_v0, %v2229_v59 }
 0x99e   :  { %2297 = vmatmul.mubr.f32.vlgmr.msra.gmra.mrb[18].mxu0 %v6842_v14  ;;  %4420 = vmatmul.mubr.f32.vlgmr.msra.gmra.mrb[50].mxu1 %v6842_v14 }
 0x99f   :  { %5367 = vmatpush1.bf16.msra.mxu0 %v6678_v8  ;;  %5398 = vmatpush3.bf16.msra.mxu1 %v6716_v36 }
 0x9a0   :  { %5369 = vmatprep.subr.bf16.mxu0 %v6682_v9  ;;  %5399 = vmatprep.subr.bf16.mxu1 %v7284_v51 }
 0x9a1   :  { %2459 = vmatprep.mubr.f32.mxu0 %v7285_v56  ;;  %4454 = vmatprep.mubr.msk.f32.mxu1 %vm6078_vm0, %v7285_v56 }
 0x9a3   :  { %5371 = vmatpush1.bf16.msra.mxu0 %v6684_v40  ;;  %5401 = vmatpush3.bf16.msra.mxu1 %v6727_v5 }
 0x9a4   :  { %5373 = vmatprep.subr.bf16.mxu0 %v6688_v45  ;;  %5402 = vmatprep.subr.bf16.mxu1 %v7284_v51 }
 0x9a7   :  { %5375 = vmatpush1.bf16.msra.mxu0 %v6690_v13  ;;  %5404 = vmatpush3.bf16.msra.mxu1 %v6733_v4 }
 0x9a8   :  { %5377 = vmatprep.subr.bf16.mxu0 %v6694_v35  ;;  %5405 = vmatprep.subr.bf16.mxu1 %v7284_v51 }
 0x9ab   :  { %5379 = vmatpush1.bf16.msra.mxu0 %v6696_v52  ;;  %5407 = vmatpush3.bf16.msra.mxu1 %v6736_v28 }
 0x9ac   :  { %5381 = vmatprep.subr.bf16.mxu0 %v6700_v6  ;;  %5408 = vmatprep.subr.bf16.mxu1 %v7284_v51 }
 0x9af   :  { %5383 = vmatpush1.bf16.msra.mxu0 %v6702_v29  ;;  %5410 = vmatpush3.bf16.msra.mxu1 %v6740_v53 }
 0x9b0   :  { %5385 = vmatprep.subr.bf16.mxu0 %v6706_v19  ;;  %5411 = vmatprep.subr.bf16.mxu1 %v7284_v51 }
 0x9b3   :  { %5387 = vmatpush1.bf16.msra.mxu0 %v6708_v33  ;;  %5413 = vmatpush3.bf16.msra.mxu1 %v6744_v18 }
 0x9b4   :  { %5389 = vmatprep.subr.bf16.mxu0 %v6712_v50  ;;  %5414 = vmatprep.subr.bf16.mxu1 %v7284_v51 }
 0x9b7   :  { %5391 = vmatpush1.bf16.msra.mxu0 %v6714_v12  ;;  %5416 = vmatpush3.bf16.msra.mxu1 %v6748_v2 }
 0x9b8   :  { %5393 = vmatprep.subr.bf16.mxu0 %v6719_v46  ;;  %5417 = vmatprep.subr.bf16.mxu1 %v7284_v51 }
 0x9bb   :  { %5395 = vmatpush1.bf16.msra.mxu0 %v6725_v10  ;;  %5419 = vmatpush3.bf16.msra.mxu1 %v6752_v26 }
 0x9bc   :  { %5421 = vmatprep.subr.bf16.mxu0 %v6676_v58  ;;  %5452 = vmatprep.subr.bf16.mxu1 %v7284_v51 }
 0xa71   :  { %v2298_v17 = vpop.f32.mrb[18].mxu0  ;;  %v2369_v16 = vpop.f32.mrb[50].mxu1 }
 0xa72   :  { %v5766_v23 = vadd.f32 %v2298_v17, %v6822_v11  ;;  %v2300_v31 = vpop.f32.mrb[19].mxu0  ;;  %v4421_v39 = vpop.f32.mrb[51].mxu1  ;;  %v2387_v25 = vadd.f32 %v6833_v38, %v2369_v16 }
 0xa73   :  { %v5767_v57 = vadd.f32 %v2300_v31, %v6826_v22 }
 0xa74   :  { %v3625_v44 = vmul.f32 -1.442695, %v5766_v23 }
 0xa75   :  { %v3626_v1 = vmul.f32 -1.442695, %v5767_v57 }
 0xa76   :  { %5896 = vpow2.f32 %v3625_v44 }
 0xa77   :  { %5898 = vpow2.f32 %v3626_v1 }
 0xa80   :  { %v5897_v15 = vpop.eup %5896 }
 0xa81   :  { %v2377_v20 = vadd.f32 1.0, %v5897_v15  ;;  %v5899_v34 = vpop.eup %5898 }
 0xa82   :  { %v2384_v41 = vadd.f32 1.0, %v5899_v34  ;;  %v1982_v34 = vadd.f32 %v6769_v54, %v6837_v47 }
 0xa83   :  { %5900 = vrcp.f32 %v2377_v20 }
 0xa84   :  { %5902 = vrcp.f32 %v2384_v41 }
 0xa8d   :  { %v5901_v30 = vpop.eup %5900 }
 0xa8e   :  { %v2388_v48 = vmul.f32 %v5901_v30, %v2387_v25  ;;  %v5903_v62 = vpop.eup %5902 }
 0xa8f   :  { %v2391_v37 = vsub.f32 1.0, %v5903_v62  ;;  %v2393_v49 = vmul.f32 %v5903_v62, %v6842_v14 }
 0xa90   :  { %v2389_v60 = vadd.f32 %v2388_v48, %v1977_v43 }
 0xa92   :  { %5904 = vtanh.f32 %v2389_v60 }
 0xa9c   :  { %v5905_v24 = vpop.eup %5904 }
 0xa9d   :  { %v2392_v63 = vmul.f32 %v5905_v24, %v2391_v37 }
 0xa9f   :  { %v6887_v61 = vadd.f32 %v2393_v49, %v2392_v63 }
 0xaa1   :  { %2460 = vmatmul.mubr.f32.vlgmr.msra.gmra.mrb[20].mxu0 %v6887_v61  ;;  %4455 = vmatmul.mubr.f32.vlgmr.msra.gmra.mrb[52].mxu1 %v6887_v61 }
 0xaa2   :  { %5423 = vmatpush1.bf16.msra.mxu0 %v6678_v8  ;;  %5454 = vmatpush3.bf16.msra.mxu1 %v6716_v36 }
 0xaa3   :  { %5425 = vmatprep.subr.bf16.mxu0 %v6682_v9  ;;  %5455 = vmatprep.subr.bf16.mxu1 %v7284_v51 }
 0xaa4   :  { %2622 = vmatprep.mubr.f32.mxu0 %v7285_v56  ;;  %4489 = vmatprep.mubr.msk.f32.mxu1 %vm6078_vm0, %v7285_v56 }
 0xaa6   :  { %5427 = vmatpush1.bf16.msra.mxu0 %v6684_v40  ;;  %5457 = vmatpush3.bf16.msra.mxu1 %v6727_v5 }
 0xaa7   :  { %5429 = vmatprep.subr.bf16.mxu0 %v6688_v45  ;;  %5458 = vmatprep.subr.bf16.mxu1 %v7284_v51 }
 0xaaa   :  { %5431 = vmatpush1.bf16.msra.mxu0 %v6690_v13  ;;  %5460 = vmatpush3.bf16.msra.mxu1 %v6733_v4 }
 0xaab   :  { %5433 = vmatprep.subr.bf16.mxu0 %v6694_v35  ;;  %5461 = vmatprep.subr.bf16.mxu1 %v7284_v51 }
 0xaae   :  { %5435 = vmatpush1.bf16.msra.mxu0 %v6696_v52  ;;  %5463 = vmatpush3.bf16.msra.mxu1 %v6736_v28 }
 0xaaf   :  { %5437 = vmatprep.subr.bf16.mxu0 %v6700_v6  ;;  %5464 = vmatprep.subr.bf16.mxu1 %v7284_v51 }
 0xab2   :  { %5439 = vmatpush1.bf16.msra.mxu0 %v6702_v29  ;;  %5466 = vmatpush3.bf16.msra.mxu1 %v6740_v53 }
 0xab3   :  { %5441 = vmatprep.subr.bf16.mxu0 %v6706_v19  ;;  %5467 = vmatprep.subr.bf16.mxu1 %v7284_v51 }
 0xab6   :  { %5443 = vmatpush1.bf16.msra.mxu0 %v6708_v33  ;;  %5469 = vmatpush3.bf16.msra.mxu1 %v6744_v18 }
 0xab7   :  { %5445 = vmatprep.subr.bf16.mxu0 %v6712_v50  ;;  %5470 = vmatprep.subr.bf16.mxu1 %v7284_v51 }
 0xaba   :  { %5447 = vmatpush1.bf16.msra.mxu0 %v6714_v12  ;;  %5472 = vmatpush3.bf16.msra.mxu1 %v6748_v2 }
 0xabb   :  { %5449 = vmatprep.subr.bf16.mxu0 %v6719_v46  ;;  %5473 = vmatprep.subr.bf16.mxu1 %v7284_v51 }
 0xabe   :  { %5451 = vmatpush1.bf16.msra.mxu0 %v6725_v10  ;;  %5475 = vmatpush3.bf16.msra.mxu1 %v6752_v26 }
 0xabf   :  { %5477 = vmatprep.subr.bf16.mxu0 %v6676_v58  ;;  %5508 = vmatprep.subr.bf16.mxu1 %v7284_v51 }
 0xb74   :  { %v2461_v3 = vpop.f32.mrb[20].mxu0  ;;  %v2532_v21 = vpop.f32.mrb[52].mxu1 }
 0xb75   :  { %v5768_v59 = vadd.f32 %v2461_v3, %v6822_v11  ;;  %v2463_v0 = vpop.f32.mrb[21].mxu0  ;;  %v4456_v17 = vpop.f32.mrb[53].mxu1  ;;  %v2550_v15 = vadd.f32 %v6833_v38, %v2532_v21 }
 0xb76   :  { %v5769_v23 = vadd.f32 %v2463_v0, %v6826_v22 }
 0xb77   :  { %v3627_v16 = vmul.f32 -1.442695, %v5768_v59 }
 0xb78   :  { %v3628_v31 = vmul.f32 -1.442695, %v5769_v23 }
 0xb79   :  { %5906 = vpow2.f32 %v3627_v16 }
 0xb7a   :  { %5908 = vpow2.f32 %v3628_v31 }
 0xb83   :  { %v5907_v39 = vpop.eup %5906 }
 0xb84   :  { %v2540_v44 = vadd.f32 1.0, %v5907_v39  ;;  %v5909_v57 = vpop.eup %5908 }
 0xb85   :  { %v2547_v1 = vadd.f32 1.0, %v5909_v57  ;;  %v1987_v57 = vadd.f32 %v6767_v27, %v6837_v47 }
 0xb86   :  { %5910 = vrcp.f32 %v2540_v44 }
 0xb87   :  { %5912 = vrcp.f32 %v2547_v1 }
 0xb90   :  { %v5911_v20 = vpop.eup %5910 }
 0xb91   :  { %v2551_v41 = vmul.f32 %v5911_v20, %v2550_v15  ;;  %v5913_v30 = vpop.eup %5912 }
 0xb92   :  { %v2554_v43 = vsub.f32 1.0, %v5913_v30  ;;  %v2556_v62 = vmul.f32 %v5913_v30, %v6887_v61 }
 0xb93   :  { %v2552_v25 = vadd.f32 %v2551_v41, %v1982_v34 }
 0xb95   :  { %5914 = vtanh.f32 %v2552_v25 }
 0xb9f   :  { %v5915_v48 = vpop.eup %5914 }
 0xba0   :  { %v2555_v60 = vmul.f32 %v5915_v48, %v2554_v43 }
 0xba2   :  { %v6932_v37 = vadd.f32 %v2556_v62, %v2555_v60 }
 0xba4   :  { %2623 = vmatmul.mubr.f32.vlgmr.msra.gmra.mrb[22].mxu0 %v6932_v37  ;;  %4490 = vmatmul.mubr.f32.vlgmr.msra.gmra.mrb[54].mxu1 %v6932_v37 }
 0xba5   :  { %5479 = vmatpush1.bf16.msra.mxu0 %v6678_v8  ;;  %5510 = vmatpush3.bf16.msra.mxu1 %v6716_v36 }
 0xba6   :  { %5481 = vmatprep.subr.bf16.mxu0 %v6682_v9  ;;  %5511 = vmatprep.subr.bf16.mxu1 %v7284_v51 }
 0xba7   :  { %2785 = vmatprep.mubr.f32.mxu0 %v7285_v56  ;;  %4524 = vmatprep.mubr.msk.f32.mxu1 %vm6078_vm0, %v7285_v56 }
 0xba9   :  { %5483 = vmatpush1.bf16.msra.mxu0 %v6684_v40  ;;  %5513 = vmatpush3.bf16.msra.mxu1 %v6727_v5 }
 0xbaa   :  { %5485 = vmatprep.subr.bf16.mxu0 %v6688_v45  ;;  %5514 = vmatprep.subr.bf16.mxu1 %v7284_v51 }
 0xbad   :  { %5487 = vmatpush1.bf16.msra.mxu0 %v6690_v13  ;;  %5516 = vmatpush3.bf16.msra.mxu1 %v6733_v4 }
 0xbae   :  { %5489 = vmatprep.subr.bf16.mxu0 %v6694_v35  ;;  %5517 = vmatprep.subr.bf16.mxu1 %v7284_v51 }
 0xbb1   :  { %5491 = vmatpush1.bf16.msra.mxu0 %v6696_v52  ;;  %5519 = vmatpush3.bf16.msra.mxu1 %v6736_v28 }
 0xbb2   :  { %5493 = vmatprep.subr.bf16.mxu0 %v6700_v6  ;;  %5520 = vmatprep.subr.bf16.mxu1 %v7284_v51 }
 0xbb5   :  { %5495 = vmatpush1.bf16.msra.mxu0 %v6702_v29  ;;  %5522 = vmatpush3.bf16.msra.mxu1 %v6740_v53 }
 0xbb6   :  { %5497 = vmatprep.subr.bf16.mxu0 %v6706_v19  ;;  %5523 = vmatprep.subr.bf16.mxu1 %v7284_v51 }
 0xbb9   :  { %5499 = vmatpush1.bf16.msra.mxu0 %v6708_v33  ;;  %5525 = vmatpush3.bf16.msra.mxu1 %v6744_v18 }
 0xbba   :  { %5501 = vmatprep.subr.bf16.mxu0 %v6712_v50  ;;  %5526 = vmatprep.subr.bf16.mxu1 %v7284_v51 }
 0xbbd   :  { %5503 = vmatpush1.bf16.msra.mxu0 %v6714_v12  ;;  %5528 = vmatpush3.bf16.msra.mxu1 %v6748_v2 }
 0xbbe   :  { %5505 = vmatprep.subr.bf16.mxu0 %v6719_v46  ;;  %5529 = vmatprep.subr.bf16.mxu1 %v7284_v51 }
 0xbc1   :  { %5507 = vmatpush1.bf16.msra.mxu0 %v6725_v10  ;;  %5531 = vmatpush3.bf16.msra.mxu1 %v6752_v26 }
 0xbc2   :  { %5533 = vmatprep.subr.bf16.mxu0 %v6676_v58  ;;  %5564 = vmatprep.subr.bf16.mxu1 %v7284_v51 }
 0xc77   :  { %v2624_v54 = vpop.f32.mrb[22].mxu0  ;;  %v2695_v24 = vpop.f32.mrb[54].mxu1 }
 0xc78   :  { %v5770_v63 = vadd.f32 %v2624_v54, %v6822_v11  ;;  %v2626_v49 = vpop.f32.mrb[23].mxu0  ;;  %v4491_v3 = vpop.f32.mrb[55].mxu1  ;;  %v2713_v39 = vadd.f32 %v6833_v38, %v2695_v24 }
 0xc79   :  { %v5771_v59 = vadd.f32 %v2626_v49, %v6826_v22 }
 0xc7a   :  { %v3629_v21 = vmul.f32 -1.442695, %v5770_v63 }
 0xc7b   :  { %v3630_v0 = vmul.f32 -1.442695, %v5771_v59 }
 0xc7c   :  { %5916 = vpow2.f32 %v3629_v21 }
 0xc7d   :  { %5918 = vpow2.f32 %v3630_v0 }
 0xc86   :  { %v5917_v17 = vpop.eup %5916 }
 0xc87   :  { %v2703_v16 = vadd.f32 1.0, %v5917_v17  ;;  %v5919_v23 = vpop.eup %5918 }
 0xc88   :  { %v2710_v31 = vadd.f32 1.0, %v5919_v23  ;;  %v1992_v23 = vadd.f32 %v6773_v55, %v6837_v47 }
 0xc89   :  { %5920 = vrcp.f32 %v2703_v16 }
 0xc8a   :  { %5922 = vrcp.f32 %v2710_v31 }
 0xc93   :  { %v5921_v44 = vpop.eup %5920 }
 0xc94   :  { %v2714_v1 = vmul.f32 %v5921_v44, %v2713_v39  ;;  %v5923_v20 = vpop.eup %5922 }
 0xc95   :  { %v2717_v34 = vsub.f32 1.0, %v5923_v20  ;;  %v2719_v30 = vmul.f32 %v5923_v20, %v6932_v37 }
 0xc96   :  { %v2715_v15 = vadd.f32 %v2714_v1, %v1987_v57 }
 0xc98   :  { %5924 = vtanh.f32 %v2715_v15 }
 0xca2   :  { %v5925_v41 = vpop.eup %5924 }
 0xca3   :  { %v2718_v25 = vmul.f32 %v5925_v41, %v2717_v34 }
 0xca5   :  { %v6977_v43 = vadd.f32 %v2719_v30, %v2718_v25 }
 0xca7   :  { %2786 = vmatmul.mubr.f32.vlgmr.msra.gmra.mrb[24].mxu0 %v6977_v43  ;;  %4525 = vmatmul.mubr.f32.vlgmr.msra.gmra.mrb[56].mxu1 %v6977_v43 }
 0xca8   :  { %5535 = vmatpush1.bf16.msra.mxu0 %v6678_v8  ;;  %5566 = vmatpush3.bf16.msra.mxu1 %v6716_v36 }
 0xca9   :  { %5537 = vmatprep.subr.bf16.mxu0 %v6682_v9  ;;  %5567 = vmatprep.subr.bf16.mxu1 %v7284_v51 }
 0xcaa   :  { %2948 = vmatprep.mubr.f32.mxu0 %v7285_v56  ;;  %4559 = vmatprep.mubr.msk.f32.mxu1 %vm6078_vm0, %v7285_v56 }
 0xcac   :  { %5539 = vmatpush1.bf16.msra.mxu0 %v6684_v40  ;;  %5569 = vmatpush3.bf16.msra.mxu1 %v6727_v5 }
 0xcad   :  { %5541 = vmatprep.subr.bf16.mxu0 %v6688_v45  ;;  %5570 = vmatprep.subr.bf16.mxu1 %v7284_v51 }
 0xcb0   :  { %5543 = vmatpush1.bf16.msra.mxu0 %v6690_v13  ;;  %5572 = vmatpush3.bf16.msra.mxu1 %v6733_v4 }
 0xcb1   :  { %5545 = vmatprep.subr.bf16.mxu0 %v6694_v35  ;;  %5573 = vmatprep.subr.bf16.mxu1 %v7284_v51 }
 0xcb4   :  { %5547 = vmatpush1.bf16.msra.mxu0 %v6696_v52  ;;  %5575 = vmatpush3.bf16.msra.mxu1 %v6736_v28 }
 0xcb5   :  { %5549 = vmatprep.subr.bf16.mxu0 %v6700_v6  ;;  %5576 = vmatprep.subr.bf16.mxu1 %v7284_v51 }
 0xcb8   :  { %5551 = vmatpush1.bf16.msra.mxu0 %v6702_v29  ;;  %5578 = vmatpush3.bf16.msra.mxu1 %v6740_v53 }
 0xcb9   :  { %5553 = vmatprep.subr.bf16.mxu0 %v6706_v19  ;;  %5579 = vmatprep.subr.bf16.mxu1 %v7284_v51 }
 0xcbc   :  { %5555 = vmatpush1.bf16.msra.mxu0 %v6708_v33  ;;  %5581 = vmatpush3.bf16.msra.mxu1 %v6744_v18 }
 0xcbd   :  { %5557 = vmatprep.subr.bf16.mxu0 %v6712_v50  ;;  %5582 = vmatprep.subr.bf16.mxu1 %v7284_v51 }
 0xcc0   :  { %5559 = vmatpush1.bf16.msra.mxu0 %v6714_v12  ;;  %5584 = vmatpush3.bf16.msra.mxu1 %v6748_v2 }
 0xcc1   :  { %5561 = vmatprep.subr.bf16.mxu0 %v6719_v46  ;;  %5585 = vmatprep.subr.bf16.mxu1 %v7284_v51 }
 0xcc4   :  { %5563 = vmatpush1.bf16.msra.mxu0 %v6725_v10  ;;  %5587 = vmatpush3.bf16.msra.mxu1 %v6752_v26 }
 0xcc5   :  { %5589 = vmatprep.subr.bf16.mxu0 %v6676_v58  ;;  %5620 = vmatprep.subr.bf16.mxu1 %v7284_v51 }
 0xd7a   :  { %v2787_v27 = vpop.f32.mrb[24].mxu0  ;;  %v2858_v48 = vpop.f32.mrb[56].mxu1 }
 0xd7b   :  { %v5772_v60 = vadd.f32 %v2787_v27, %v6822_v11  ;;  %v2789_v62 = vpop.f32.mrb[25].mxu0  ;;  %v4526_v54 = vpop.f32.mrb[57].mxu1  ;;  %v2876_v17 = vadd.f32 %v6833_v38, %v2858_v48 }
 0xd7c   :  { %v5773_v63 = vadd.f32 %v2789_v62, %v6826_v22 }
 0xd7d   :  { %v3631_v24 = vmul.f32 -1.442695, %v5772_v60 }
 0xd7e   :  { %v3632_v49 = vmul.f32 -1.442695, %v5773_v63 }
 0xd7f   :  { %5926 = vpow2.f32 %v3631_v24 }
 0xd80   :  { %5928 = vpow2.f32 %v3632_v49 }
 0xd89   :  { %v5927_v3 = vpop.eup %5926 }
 0xd8a   :  { %v2866_v21 = vadd.f32 1.0, %v5927_v3  ;;  %v5929_v59 = vpop.eup %5928 }
 0xd8b   :  { %v2873_v0 = vadd.f32 1.0, %v5929_v59 }
 0xd8c   :  { %5930 = vrcp.f32 %v2866_v21  ;;  %v1997_v21 = vadd.f32 %v6771_v42, %v6837_v47 }
 0xd8d   :  { %5932 = vrcp.f32 %v2873_v0 }
 0xd96   :  { %v5931_v16 = vpop.eup %5930 }
 0xd97   :  { %v2877_v31 = vmul.f32 %v5931_v16, %v2876_v17  ;;  %v5933_v44 = vpop.eup %5932 }
 0xd98   :  { %v2880_v57 = vsub.f32 1.0, %v5933_v44  ;;  %v2882_v20 = vmul.f32 %v5933_v44, %v6977_v43 }
 0xd99   :  { %v2878_v39 = vadd.f32 %v2877_v31, %v1992_v23 }
 0xd9b   :  { %5934 = vtanh.f32 %v2878_v39 }
 0xda5   :  { %v5935_v1 = vpop.eup %5934 }
 0xda6   :  { %v2881_v15 = vmul.f32 %v5935_v1, %v2880_v57 }
 0xda8   :  { %v7022_v34 = vadd.f32 %v2882_v20, %v2881_v15  ;;  %v3378_v15 = vld [vmem:[%s7271_s5 + $0x20] sm:$0xff]  ;;  %v3379_v20 = vld [vmem:[%s7271_s5 + $0x28] sm:$0xff] }
 0xdaa   :  { %2949 = vmatmul.mubr.f32.vlgmr.msra.gmra.mrb[26].mxu0 %v7022_v34  ;;  %4560 = vmatmul.mubr.f32.vlgmr.msra.gmra.mrb[58].mxu1 %v7022_v34 }
 0xdab   :  { %5591 = vmatpush1.bf16.msra.mxu0 %v6678_v8  ;;  %5622 = vmatpush3.bf16.msra.mxu1 %v6716_v36 }
 0xdac   :  { %5593 = vmatprep.subr.bf16.mxu0 %v6682_v9  ;;  %5623 = vmatprep.subr.bf16.mxu1 %v7284_v51 }
 0xdad   :  { %3111 = vmatprep.mubr.f32.mxu0 %v7285_v56  ;;  %4594 = vmatprep.mubr.msk.f32.mxu1 %vm6078_vm0, %v7285_v56 }
 0xdaf   :  { %5595 = vmatpush1.bf16.msra.mxu0 %v6684_v40  ;;  %5625 = vmatpush3.bf16.msra.mxu1 %v6727_v5 }
 0xdb0   :  { %5597 = vmatprep.subr.bf16.mxu0 %v6688_v45  ;;  %5626 = vmatprep.subr.bf16.mxu1 %v7284_v51 }
 0xdb3   :  { %5599 = vmatpush1.bf16.msra.mxu0 %v6690_v13  ;;  %5628 = vmatpush3.bf16.msra.mxu1 %v6733_v4 }
 0xdb4   :  { %5601 = vmatprep.subr.bf16.mxu0 %v6694_v35  ;;  %5629 = vmatprep.subr.bf16.mxu1 %v7284_v51 }
 0xdb7   :  { %5603 = vmatpush1.bf16.msra.mxu0 %v6696_v52  ;;  %5631 = vmatpush3.bf16.msra.mxu1 %v6736_v28 }
 0xdb8   :  { %5605 = vmatprep.subr.bf16.mxu0 %v6700_v6  ;;  %5632 = vmatprep.subr.bf16.mxu1 %v7284_v51 }
 0xdbb   :  { %5607 = vmatpush1.bf16.msra.mxu0 %v6702_v29  ;;  %5634 = vmatpush3.bf16.msra.mxu1 %v6740_v53 }
 0xdbc   :  { %5609 = vmatprep.subr.bf16.mxu0 %v6706_v19  ;;  %5635 = vmatprep.subr.bf16.mxu1 %v7284_v51 }
 0xdbf   :  { %5611 = vmatpush1.bf16.msra.mxu0 %v6708_v33  ;;  %5637 = vmatpush3.bf16.msra.mxu1 %v6744_v18 }
 0xdc0   :  { %5613 = vmatprep.subr.bf16.mxu0 %v6712_v50  ;;  %5638 = vmatprep.subr.bf16.mxu1 %v7284_v51 }
 0xdc3   :  { %5615 = vmatpush1.bf16.msra.mxu0 %v6714_v12  ;;  %5640 = vmatpush3.bf16.msra.mxu1 %v6748_v2 }
 0xdc4   :  { %5617 = vmatprep.subr.bf16.mxu0 %v6719_v46  ;;  %5641 = vmatprep.subr.bf16.mxu1 %v7284_v51 }
 0xdc7   :  { %5619 = vmatpush1.bf16.msra.mxu0 %v6725_v10  ;;  %5643 = vmatpush3.bf16.msra.mxu1 %v6752_v26 }
 0xdc8   :  { %5645 = vmatprep.subr.bf16.mxu0 %v6676_v58  ;;  %5676 = vmatprep.subr.bf16.mxu1 %v7284_v51 }
 0xe7d   :  { %v2950_v55 = vpop.f32.mrb[26].mxu0  ;;  %v3021_v41 = vpop.f32.mrb[58].mxu1 }
 0xe7e   :  { %v5774_v25 = vadd.f32 %v2950_v55, %v6822_v11  ;;  %v2952_v30 = vpop.f32.mrb[27].mxu0  ;;  %v4561_v27 = vpop.f32.mrb[59].mxu1  ;;  %v3039_v58 = vadd.f32 %v6833_v38, %v3021_v41  ;;  %v5708_v55 = vpack.c.bf16 %v3379_v20, %v3378_v15  ;;  %v3380_v41 = vld [vmem:[%s7271_s5 + $0x30] sm:$0xff] }
 0xe7f   :  { %v5775_v60 = vadd.f32 %v2952_v30, %v6826_v22  ;;  %v3382_v27 = vld [vmem:[%s7271_s5 + $0x40] sm:$0xff] }
 0xe80   :  { %v3633_v48 = vmul.f32 -1.442695, %v5774_v25  ;;  %v3381_v25 = vld [vmem:[%s7271_s5 + $0x38] sm:$0xff] }
 0xe81   :  { %v3634_v62 = vmul.f32 -1.442695, %v5775_v60  ;;  %v5712_v30 = vpack.c.bf16 %v3381_v25, %v3380_v41  ;;  %v3384_v60 = vld [vmem:[%s7271_s5 + $0x50] sm:$0xff] }
 0xe82   :  { %5936 = vpow2.f32 %v3633_v48 }
 0xe83   :  { %5938 = vpow2.f32 %v3634_v62  ;;  %v3385_v62 = vld [vmem:[%s7271_s5 + $0x58] sm:$0xff] }
 0xe8c   :  { %v5937_v54 = vpop.eup %5936 }
 0xe8d   :  { %v3029_v24 = vadd.f32 1.0, %v5937_v54  ;;  %v5939_v63 = vpop.eup %5938  ;;  %v5720_v54 = vpack.c.bf16 %v3385_v62, %v3384_v60 }
 0xe8e   :  { %v3036_v49 = vadd.f32 1.0, %v5939_v63  ;;  %v3387_v63 = vld [vmem:[%s7271_s5 + $0x68] sm:$0xff] }
 0xe8f   :  { %5940 = vrcp.f32 %v3029_v24  ;;  %v3386_v24 = vld [vmem:[%s7271_s5 + $0x60] sm:$0xff] }
 0xe90   :  { %5942 = vrcp.f32 %v3036_v49  ;;  %v5724_v49 = vpack.c.bf16 %v3387_v63, %v3386_v24 }
 0xe99   :  { %v5941_v3 = vpop.eup %5940 }
 0xe9a   :  { %v3040_v59 = vmul.f32 %v5941_v3, %v3039_v58  ;;  %v5943_v17 = vpop.eup %5942  ;;  %v3388_v58 = vld [vmem:[%s7271_s5 + $0x70] sm:$0xff]  ;;  %v3389_v3 = vld [vmem:[%s7271_s5 + $0x78] sm:$0xff] }
 0xe9b   :  { %v3043_v16 = vsub.f32 1.0, %v5943_v17  ;;  %v3045_v39 = vmul.f32 %v5943_v17, %v7022_v34 }
 0xe9c   :  { %v3041_v0 = vadd.f32 %v3040_v59, %v1997_v21  ;;  %v5728_v21 = vpack.c.bf16 %v3389_v3, %v3388_v58 }
 0xe9e   :  { %5944 = vtanh.f32 %v3041_v0 }
 0xea8   :  { %v5945_v23 = vpop.eup %5944 }
 0xea9   :  { %v3044_v31 = vmul.f32 %v5945_v23, %v3043_v16 }
 0xeab   :  { %v7067_v44 = vadd.f32 %v3045_v39, %v3044_v31 }
 0xead   :  { %3112 = vmatmul.mubr.f32.vlgmr.msra.gmra.mrb[28].mxu0 %v7067_v44  ;;  %4595 = vmatmul.mubr.f32.vlgmr.msra.gmra.mrb[60].mxu1 %v7067_v44 }
 0xeae   :  { %5647 = vmatpush1.bf16.msra.mxu0 %v6678_v8  ;;  %5678 = vmatpush3.bf16.msra.mxu1 %v6716_v36  ;;  %v3375_v8 = vld [vmem:[%s7271_s5 + $0x8] sm:$0xff] }
 0xeaf   :  { %5649 = vmatprep.subr.bf16.mxu0 %v6682_v9  ;;  %5679 = vmatprep.subr.bf16.mxu1 %v7284_v51 }
 0xeb0   :  { %3274 = vmatprep.mubr.f32.mxu0 %v7285_v56  ;;  %4629 = vmatprep.mubr.msk.f32.mxu1 %vm6078_vm0, %v7285_v56  ;;  %v3374_v56 = vld [vmem:[%s7271_s5] sm:$0xff] }
 0xeb1   :  { %v5700_v9 = vpack.c.bf16 %v3375_v8, %v3374_v56 }
 0xeb2   :  { %5651 = vmatpush1.bf16.msra.mxu0 %v6684_v40  ;;  %5681 = vmatpush3.bf16.msra.mxu1 %v6727_v5 }
 0xeb3   :  { %5653 = vmatprep.subr.bf16.mxu0 %v6688_v45  ;;  %5682 = vmatprep.subr.bf16.mxu1 %v7284_v51 }
 0xeb6   :  { %5655 = vmatpush1.bf16.msra.mxu0 %v6690_v13  ;;  %5684 = vmatpush3.bf16.msra.mxu1 %v6733_v4 }
 0xeb7   :  { %5657 = vmatprep.subr.bf16.mxu0 %v6694_v35  ;;  %5685 = vmatprep.subr.bf16.mxu1 %v7284_v51 }
 0xeba   :  { %5659 = vmatpush1.bf16.msra.mxu0 %v6696_v52  ;;  %5687 = vmatpush3.bf16.msra.mxu1 %v6736_v28 }
 0xebb   :  { %5661 = vmatprep.subr.bf16.mxu0 %v6700_v6  ;;  %5688 = vmatprep.subr.bf16.mxu1 %v7284_v51 }
 0xebe   :  { %5663 = vmatpush1.bf16.msra.mxu0 %v6702_v29  ;;  %5690 = vmatpush3.bf16.msra.mxu1 %v6740_v53 }
 0xebf   :  { %5665 = vmatprep.subr.bf16.mxu0 %v6706_v19  ;;  %5691 = vmatprep.subr.bf16.mxu1 %v7284_v51 }
 0xec2   :  { %5667 = vmatpush1.bf16.msra.mxu0 %v6708_v33  ;;  %5693 = vmatpush3.bf16.msra.mxu1 %v6744_v18 }
 0xec3   :  { %5669 = vmatprep.subr.bf16.mxu0 %v6712_v50  ;;  %5694 = vmatprep.subr.bf16.mxu1 %v7284_v51 }
 0xec6   :  { %5671 = vmatpush1.bf16.msra.mxu0 %v6714_v12  ;;  %5696 = vmatpush3.bf16.msra.mxu1 %v6748_v2  ;;  %v3376_v2 = vld [vmem:[%s7271_s5 + $0x10] sm:$0xff] }
 0xec7   :  { %5673 = vmatprep.subr.bf16.mxu0 %v6719_v46  ;;  %5697 = vmatprep.subr.bf16.mxu1 %v7284_v51 }
 0xeca   :  { %5675 = vmatpush1.bf16.msra.mxu0 %v6725_v10  ;;  %5699 = vmatpush3.bf16.msra.mxu1 %v6752_v26  ;;  %v2002_v10 = vadd.f32 %v6818_v32, %v6837_v47  ;;  %v3377_v26 = vld [vmem:[%s7271_s5 + $0x18] sm:$0xff] }
 0xecb   :  { %5701 = vmatprep.subr.bf16.mxu0 %v5700_v9  ;;  %v5704_v32 = vpack.c.bf16 %v3377_v26, %v3376_v2 }
 0xf80   :  { %v3113_v40 = vpop.f32.mrb[28].mxu0  ;;  %v3184_v45 = vpop.f32.mrb[60].mxu1 }
 0xf81   :  { %v5776_v13 = vadd.f32 %v3113_v40, %v6822_v11  ;;  %v3115_v35 = vpop.f32.mrb[29].mxu0  ;;  %v4596_v51 = vpop.f32.mrb[61].mxu1  ;;  %v3202_v36 = vadd.f32 %v6833_v38, %v3184_v45 }
 0xf82   :  { %v5777_v6 = vadd.f32 %v3115_v35, %v6826_v22 }
 0xf83   :  { %v3635_v52 = vmul.f32 -1.442695, %v5776_v13 }
 0xf84   :  { %v3636_v29 = vmul.f32 -1.442695, %v5777_v6 }
 0xf85   :  { %5946 = vpow2.f32 %v3635_v52 }
 0xf86   :  { %5948 = vpow2.f32 %v3636_v29 }
 0xf8f   :  { %v5947_v19 = vpop.eup %5946 }
 0xf90   :  { %v3192_v33 = vadd.f32 1.0, %v5947_v19  ;;  %v5949_v50 = vpop.eup %5948 }
 0xf91   :  { %v3199_v12 = vadd.f32 1.0, %v5949_v50 }
 0xf92   :  { %5950 = vrcp.f32 %v3192_v33 }
 0xf93   :  { %5952 = vrcp.f32 %v3199_v12 }
 0xf9c   :  { %v5951_v46 = vpop.eup %5950 }
 0xf9d   :  { %v3203_v5 = vmul.f32 %v5951_v46, %v3202_v36  ;;  %v5953_v28 = vpop.eup %5952 }
 0xf9e   :  { %v3206_v53 = vsub.f32 1.0, %v5953_v28  ;;  %v3208_v57 = vmul.f32 %v5953_v28, %v7067_v44 }
 0xf9f   :  { %v3204_v4 = vadd.f32 %v3203_v5, %v2002_v10 }
 0xfa1   :  { %5954 = vtanh.f32 %v3204_v4 }
 0xfab   :  { %v5955_v18 = vpop.eup %5954 }
 0xfac   :  { %v3207_v42 = vmul.f32 %v5955_v18, %v3206_v53 }
 0xfae   :  { %v7122_v1 = vadd.f32 %v3208_v57, %v3207_v42 }
 0xfb0   :  { %3275 = vmatmul.mubr.f32.vlgmr.msra.gmra.mrb[30].mxu0 %v7122_v1  ;;  %4630 = vmatmul.mubr.f32.vlgmr.msra.gmra.mrb[62].mxu1 %v7122_v1 }
 0xfb1   :  { %5703 = vmatpush3.bf16.msra.mxu0 %v5700_v9  ;;  %4664 = vmatprep.mubr.f32.mxu0 %v6842_v14  ;;  %v3383_v14 = vld [vmem:[%s7271_s5 + $0x48] sm:$0xff]  ;;  %v2007_v9 = vadd.f32 %v6816_v7, %v6837_v47 }
 0xfb2   :  { %5705 = vmatprep.subr.bf16.mxu0 %v5704_v32  ;;  %v5716_v48 = vpack.c.bf16 %v3383_v14, %v3382_v27 }
 0xfb5   :  { %5707 = vmatpush3.bf16.msra.mxu0 %v5704_v32 }
 0xfb6   :  { %5709 = vmatprep.subr.bf16.mxu0 %v5708_v55 }
 0xfb9   :  { %5711 = vmatpush3.bf16.msra.mxu0 %v5708_v55 }
 0xfba   :  { %5713 = vmatprep.subr.bf16.mxu0 %v5712_v30 }
 0xfbd   :  { %5715 = vmatpush3.bf16.msra.mxu0 %v5712_v30 }
 0xfbe   :  { %5717 = vmatprep.subr.bf16.mxu0 %v5716_v48 }
 0xfc1   :  { %5719 = vmatpush3.bf16.msra.mxu0 %v5716_v48 }
 0xfc2   :  { %5721 = vmatprep.subr.bf16.mxu0 %v5720_v54 }
 0xfc5   :  { %5723 = vmatpush3.bf16.msra.mxu0 %v5720_v54 }
 0xfc6   :  { %5725 = vmatprep.subr.bf16.mxu0 %v5724_v49 }
 0xfc9   :  { %5727 = vmatpush3.bf16.msra.mxu0 %v5724_v49 }
 0xfca   :  { %5729 = vmatprep.subr.bf16.mxu0 %v5728_v21 }
 0xfcd   :  { %5731 = vmatpush3.bf16.msra.mxu0 %v5728_v21 }
 0xfd0   :  { %4665 = vmatmul.mubr.f32.vlgmr.msra.gmra.mrb[32].mxu0 %v6887_v61 }
 0xfd1   :  { %4667 = vmatprep.mubr.f32.mxu0 %v6932_v37 }
 0xfd4   :  { %4668 = vmatmul.mubr.f32.gmra.mrb[34].mxu0 %v6977_v43 }
 0xfd5   :  { %4670 = vmatprep.mubr.f32.mxu0 %v7022_v34 }
 0xfd8   :  { %4671 = vmatmul.mubr.f32.gmra.mrb[36].mxu0 %v7067_v44 }
 0xfd9   :  { %4673 = vmatprep.mubr.f32.mxu0 %v7122_v1 }
0x1083   :  { %v3276_v59 = vpop.f32.mrb[30].mxu0  ;;  %v3347_v0 = vpop.f32.mrb[62].mxu1 }
0x1084   :  { %v5778_v17 = vadd.f32 %v3276_v59, %v6822_v11  ;;  %v3278_v16 = vpop.f32.mrb[31].mxu0  ;;  %v4631_v23 = vpop.f32.mrb[63].mxu1  ;;  %v3365_v44 = vadd.f32 %v6833_v38, %v3347_v0 }
0x1085   :  { %v5779_v39 = vadd.f32 %v3278_v16, %v6826_v22  ;;  %v3639_v22 = vld [vmem:[%s7272_s6] ss:$0 sm:$0xff] }
0x1086   :  { %v3637_v31 = vmul.f32 -1.442695, %v5778_v17 }
0x1087   :  { %v3638_v61 = vmul.f32 -1.442695, %v5779_v39 }
0x1088   :  { %5956 = vpow2.f32 %v3637_v31 }
0x1089   :  { %5958 = vpow2.f32 %v3638_v61 }
0x1092   :  { %v5957_v37 = vpop.eup %5956 }
0x1093   :  { %v3355_v43 = vadd.f32 1.0, %v5957_v37  ;;  %v5959_v34 = vpop.eup %5958 }
0x1094   :  { %v3362_v56 = vadd.f32 1.0, %v5959_v34 }
0x1095   :  { %5960 = vrcp.f32 %v3355_v43 }
0x1096   :  { %5962 = vrcp.f32 %v3362_v56 }
0x109f   :  { %v5961_v8 = vpop.eup %5960 }
0x10a0   :  { %v3366_v11 = vmul.f32 %v5961_v8, %v3365_v44  ;;  %v5963_v47 = vpop.eup %5962 }
0x10a1   :  { %v3369_v50 = vsub.f32 1.0, %v5963_v47  ;;  %v3371_v46 = vmul.f32 %v5963_v47, %v7122_v1 }
0x10a2   :  { %v3367_v40 = vadd.f32 %v3366_v11, %v2007_v9 }
0x10a3   :  { %v4666_v45 = vpop.f32.mrb[32].mxu0 }
0x10a4   :  { %5964 = vtanh.f32 %v3367_v40  ;;  %v7177_v13 = vadd.f32 %v4666_v45, %v3639_v22  ;;  %v3463_v35 = vpop.f32.mrb[33].mxu0 }
0x10a5   :  { %v7180_v38 = vadd.f32 %v3639_v22, %v3463_v35 }
0x10a6   :  { %3504 = vmax.xlane.f32.xlu0 %v7177_v13 }
0x10a7   :  { %v4669_v51 = vpop.f32.mrb[34].mxu0 }
0x10a8   :  { %v7182_v52 = vadd.f32 %v4669_v51, %v3639_v22  ;;  %v3473_v7 = vpop.f32.mrb[35].mxu0 }
0x10a9   :  { %v7186_v29 = vadd.f32 %v3639_v22, %v3473_v7 }
0x10aa   :  { %3508 = vmax.xlane.f32.xlu1 %v7182_v52  ;;  %3502 = vmax.xlane.f32.xlu0 %v7180_v38 }
0x10ab   :  { %v4672_v6 = vpop.f32.mrb[36].mxu0 }
0x10ac   :  { %v3483_v19 = vpop.f32.mrb[37].mxu0  ;;  %v7193_v10 = vadd.f32 %v4672_v6, %v3639_v22 }
0x10ad   :  { %v7188_v33 = vadd.f32 %v3639_v22, %v3483_v19 }
0x10ae   :  { %v5965_v12 = vpop.eup %5964  ;;  %3506 = vmax.xlane.f32.xlu1 %v7186_v29 }
0x10af   :  { %3510 = vmax.xlane.f32.xlu0 %v7188_v33  ;;  %v3370_v36 = vmul.f32 %v5965_v12, %v3369_v50 }
0x10b1   :  { %v3372_v5 = vadd.f32 %v3371_v46, %v3370_v36 }
0x10b2   :  { %3512 = vmax.xlane.f32.xlu1 %v7193_v10 }
0x10b3   :  { %4674 = vmatmul.mubr.f32.gmra.mrb[38].mxu0 %v3372_v5 }
0x1133   :  { %v7196_v4 = vpop.xlane.xlu0 %3504 }
0x1134   :  { %v3519_v2 = vsub.f32 %v7177_v13, %v7196_v4 }
0x1136   :  { %v3528_v42 = vmul.f32 1.442695, %v3519_v2 }
0x1137   :  { %v7198_v28 = vpop.xlane.xlu1 %3508  ;;  %v7200_v53 = vpop.xlane.xlu0 %3502 }
0x1138   :  { %v3518_v26 = vsub.f32 %v7180_v38, %v7200_v53  ;;  %v3521_v57 = vsub.f32 %v7182_v52, %v7198_v28  ;;  %5966 = vpow2.f32 %v3528_v42 }
0x113a   :  { %v3526_v1 = vmul.f32 1.442695, %v3518_v26  ;;  %v3532_v55 = vmul.f32 1.442695, %v3521_v57 }
0x113b   :  { %v7202_v18 = vpop.xlane.xlu1 %3506 }
0x113c   :  { %v3520_v32 = vsub.f32 %v7186_v29, %v7202_v18  ;;  %v7214_v20 = vpop.xlane.xlu0 %3510  ;;  %5968 = vpow2.f32 %v3526_v1 }
0x113d   :  { %v3522_v30 = vsub.f32 %v7188_v33, %v7214_v20  ;;  %5970 = vpow2.f32 %v3532_v55 }
0x113e   :  { %v3530_v25 = vmul.f32 1.442695, %v3520_v32 }
0x113f   :  { %v7212_v15 = vpop.xlane.xlu1 %3512  ;;  %v3534_v48 = vmul.f32 1.442695, %v3522_v30 }
0x1140   :  { %v3523_v41 = vsub.f32 %v7193_v10, %v7212_v15  ;;  %5972 = vpow2.f32 %v3530_v25 }
0x1142   :  { %v3536_v27 = vmul.f32 1.442695, %v3523_v41  ;;  %v5967_v24 = vpop.eup %5966 }
0x1144   :  { %5974 = vpow2.f32 %v3536_v27 }
0x1145   :  { %5976 = vpow2.f32 %v3534_v48 }
0x1146   :  { %v5969_v63 = vpop.eup %5968 }
0x1147   :  { %v5971_v49 = vpop.eup %5970 }
0x114a   :  { %v5973_v58 = vpop.eup %5972 }
0x114e   :  { %v5975_v3 = vpop.eup %5974 }
0x114f   :  { %v5977_v21 = vpop.eup %5976 }
0x1186   :  { %v4675_v14 = vpop.f32.mrb[38].mxu0 }
0x1187   :  { %v7220_v60 = vadd.f32 %v4675_v14, %v3639_v22  ;;  %v3493_v62 = vpop.f32.mrb[39].mxu0 }
0x1188   :  { %v7222_v54 = vadd.f32 %v3639_v22, %v3493_v62 }
0x1189   :  { %3516 = vmax.xlane.f32.xlu1 %v7220_v60 }
0x118a   :  { %3514 = vmax.xlane.f32.xlu0 %v7222_v54 }
0x118d   :  { %3544 = vadd.xlane.f32.xlu1 %v5967_v24 }
0x118e   :  { %3542 = vadd.xlane.f32.xlu0 %v5969_v63 }
0x1191   :  { %3548 = vadd.xlane.f32.xlu1 %v5971_v49 }
0x1192   :  { %3546 = vadd.xlane.f32.xlu0 %v5973_v58 }
0x1195   :  { %3552 = vadd.xlane.f32.xlu1 %v5975_v3 }
0x1196   :  { %3550 = vadd.xlane.f32.xlu0 %v5977_v21 }
0x1216   :  { %v3517_v59 = vpop.xlane.xlu1 %3516 }
0x1217   :  { %v3525_v0 = vsub.f32 %v7220_v60, %v3517_v59  ;;  %v3515_v17 = vpop.xlane.xlu0 %3514 }
0x1218   :  { %v3524_v16 = vsub.f32 %v7222_v54, %v3515_v17 }
0x1219   :  { %v3540_v23 = vmul.f32 1.442695, %v3525_v0 }
0x121a   :  { %v3538_v31 = vmul.f32 1.442695, %v3524_v16  ;;  %v3545_v39 = vpop.xlane.xlu1 %3544 }
0x121b   :  { %5978 = vpow2.f32 %v3540_v23  ;;  %v3543_v61 = vpop.xlane.xlu0 %3542 }
0x121c   :  { %5980 = vpow2.f32 %v3538_v31 }
0x121d   :  { %5982 = vlog2.f32 %v3545_v39 }
0x121e   :  { %5984 = vlog2.f32 %v3543_v61  ;;  %v3549_v37 = vpop.xlane.xlu1 %3548 }
0x121f   :  { %5986 = vlog2.f32 %v3549_v37  ;;  %v3547_v43 = vpop.xlane.xlu0 %3546 }
0x1220   :  { %5988 = vlog2.f32 %v3547_v43 }
0x1222   :  { %v3553_v34 = vpop.xlane.xlu1 %3552 }
0x1223   :  { %5990 = vlog2.f32 %v3553_v34  ;;  %v3551_v56 = vpop.xlane.xlu0 %3550 }
0x1224   :  { %5992 = vlog2.f32 %v3551_v56 }
0x1225   :  { %v5979_v44 = vpop.eup %5978 }
0x1226   :  { %v5981_v8 = vpop.eup %5980  ;;  %3556 = vadd.xlane.f32.xlu1 %v5979_v44 }
0x1227   :  { %v5983_v9 = vpop.eup %5982  ;;  %3554 = vadd.xlane.f32.xlu0 %v5981_v8 }
0x1228   :  { %v5985_v11 = vpop.eup %5984  ;;  %v3561_v22 = vmul.f32 0.6931472, %v5983_v9 }
0x1229   :  { %v5987_v40 = vpop.eup %5986  ;;  %v3559_v45 = vmul.f32 0.6931472, %v5985_v11 }
0x122a   :  { %v5989_v35 = vpop.eup %5988  ;;  %v3575_v51 = vadd.f32 %v3561_v22, %v7196_v4  ;;  %v3565_v7 = vmul.f32 0.6931472, %v5987_v40 }
0x122b   :  { %v3574_v47 = vadd.f32 %v3559_v45, %v7200_v53  ;;  %v3563_v6 = vmul.f32 0.6931472, %v5989_v35 }
0x122c   :  { %v3583_v19 = vsub.f32 %v7177_v13, %v3575_v51  ;;  %v3577_v50 = vadd.f32 %v3565_v7, %v7198_v28 }
0x122d   :  { %v5991_v12 = vpop.eup %5990  ;;  %v3582_v36 = vsub.f32 %v7180_v38, %v3574_v47  ;;  %v3576_v46 = vadd.f32 %v3563_v6, %v7202_v18 }
0x122e   :  { %v5993_v5 = vpop.eup %5992  ;;  %3591 = vst [vmem:[%s7273_s7 + $0x8] sm:$0xff] %v3583_v19  ;;  %v3585_v4 = vsub.f32 %v7182_v52, %v3577_v50  ;;  %v3569_v2 = vmul.f32 0.6931472, %v5991_v12 }
0x122f   :  { %3590 = vst [vmem:[%s7273_s7] sm:$0xff] %v3582_v36  ;;  %v3584_v13 = vsub.f32 %v7186_v29, %v3576_v46  ;;  %v3567_v28 = vmul.f32 0.6931472, %v5993_v5 }
0x1230   :  { %3593 = vst [vmem:[%s7273_s7 + $0x18] sm:$0xff] %v3585_v4  ;;  %v3579_v38 = vadd.f32 %v3569_v2, %v7212_v15 }
0x1231   :  { %3592 = vst [vmem:[%s7273_s7 + $0x10] sm:$0xff] %v3584_v13  ;;  %v3578_v52 = vadd.f32 %v3567_v28, %v7214_v20 }
0x1232   :  { %v3587_v53 = vsub.f32 %v7193_v10, %v3579_v38 }
0x1233   :  { %v3586_v18 = vsub.f32 %v7188_v33, %v3578_v52 }
0x1234   :  { %3595 = vst [vmem:[%s7273_s7 + $0x28] sm:$0xff] %v3587_v53 }
0x1235   :  { %3594 = vst [vmem:[%s7273_s7 + $0x20] sm:$0xff] %v3586_v18 }
0x12b3   :  { %v3557_v29 = vpop.xlane.xlu1 %3556 }
0x12b4   :  { %5994 = vlog2.f32 %v3557_v29  ;;  %v3555_v26 = vpop.xlane.xlu0 %3554 }
0x12b5   :  { %5996 = vlog2.f32 %v3555_v26 }
0x12be   :  { %v5995_v42 = vpop.eup %5994 }
0x12bf   :  { %v5997_v57 = vpop.eup %5996  ;;  %v3573_v1 = vmul.f32 0.6931472, %v5995_v42 }
0x12c0   :  { %v3571_v32 = vmul.f32 0.6931472, %v5997_v57 }
0x12c1   :  { %v3581_v15 = vadd.f32 %v3573_v1, %v3517_v59 }
0x12c2   :  { %v3580_v10 = vadd.f32 %v3571_v32, %v3515_v17 }
0x12c3   :  { %v3589_v33 = vsub.f32 %v7220_v60, %v3581_v15 }
0x12c4   :  { %v3588_v20 = vsub.f32 %v7222_v54, %v3580_v10 }
0x12c5   :  { %3597 = vst [vmem:[%s7273_s7 + $0x38] sm:$0xff] %v3589_v33 }
0x12c6   :  { %3596 = vst [vmem:[%s7273_s7 + $0x30] sm:$0xff] %v3588_v20 }
0x12c7   :  { %3602 = vsyncpa [#allocation4], 1 }
0x12c8   :  { %3603 = vsyncpa [#allocation6], 1 }

</bundles_post_ra>
